<compile_context>
chip_gen: v7x
topology: tpu7x:2x2x1
jax: 0.10.0
libtpu: 0.0.40
codegen_flags: <defaults>
</compile_context>

<pallas_src>
import math

import numpy as np
import jax
import jax.numpy as jnp
from jax.experimental import pallas as pl
from jax.experimental.pallas import tpu as pltpu

LEAKY_SLOPE = 0.01   # nn.LeakyReLU default
BN_EPS = 1e-5        # nn.BatchNorm2d default
LATENT = 16
BATCH = 2

# row indices inside the packed "vecs" constant (one (1,64) row each)
V_B1, V_G1, V_BE1 = 0, 1, 2
V_B2, V_G2, V_BE2 = 3, 4, 5
V_BP, V_BMU, V_BSIG = 6, 7, 8
V_BD0 = 9                       # 9, 10, 11
V_BT1, V_GT1, V_BET1 = 12, 13, 14
V_BT2, V_GT2, V_BET2 = 15, 16, 17
N_VROWS = 18


# ----------------------------- in-kernel helpers -----------------------------

def _act(y, kind):
    if kind == "leakyrelu":
        return jnp.where(y > 0, y, LEAKY_SLOPE * y)
    if kind == "relu":
        return jnp.maximum(y, 0.0)
    if kind == "sigmoid":
        return jax.nn.sigmoid(y)
    return y


# ------------------------------- fused kernel --------------------------------

def vnext_kernel(x_ref, noise_ref,
                 ae1_ref, ce1_ref, ae2_ref, ce2_ref,
                 ap_ref, wp_ref, wh_ref,
                 ad_ref, wd_ref,
                 at1_ref, ct1_ref, at2_ref, ct2_ref,
                 pf_ref, vec_ref,
                 out_ref, kl_ref):
    F32 = jnp.float32

    def vrow(i, n):
        # one packed (1, 64) constant row, trimmed to its valid lane width
        return vec_ref[i][:, 0:n]

    def spatial_layer(x, a_ref, c_ref):
        """sum_k  A_k @ x @ C_k  (row routing, then width+channel weights)."""
        acc = None
        for k in range(a_ref.shape[0]):
            t = jnp.dot(a_ref[k], x, preferred_element_type=F32)
            t = jnp.dot(t, c_ref[k], preferred_element_type=F32)
            acc = t if acc is None else acc + t
        return acc

    def bn_act(y, p_idx, g_idx, b_idx, C, W, count, kind):
        """BatchNorm2d (training batch stats) + activation, without leaving the
        (rows, W*C) lane layout: per-channel stats via a tiny fold matmul,
        per-channel affine broadcast back via jnp.tile."""
        wc = W * C
        P = pf_ref[p_idx][0:wc, 0:C]                               # (W*C, C)
        inv = 1.0 / count
        ch1 = jnp.dot(y, P, preferred_element_type=F32)            # (R, C)
        ch2 = jnp.dot(y * y, P, preferred_element_type=F32)        # (R, C)
        mean = jnp.sum(ch1, axis=0, keepdims=True) * inv           # (1, C)
        ex2 = jnp.sum(ch2, axis=0, keepdims=True) * inv
        var = jnp.maximum(ex2 - mean * mean, 0.0)                  # clamp 1-pass var
        scale = vrow(g_idx, C) * jax.lax.rsqrt(var + BN_EPS)
        shift = vrow(b_idx, C) - mean * scale
        sw = jnp.tile(scale, (1, W))                               # (1, W*C)
        tw = jnp.tile(shift, (1, W))
        return _act(y * sw + tw, kind)

    x = x_ref[...]                                                 # (32, 64)

    # ------------------------------ encoder ------------------------------
    y1 = spatial_layer(x, ae1_ref, ce1_ref) + vrow(V_B1, 56)       # (14, 56)
    a1 = bn_act(y1, 0, V_G1, V_BE1, 8, 7, 98.0, "leakyrelu")
    y2 = spatial_layer(a1, ae2_ref, ce2_ref) + vrow(V_B2, 48)      # (6, 48)
    a2 = bn_act(y2, 1, V_G2, V_BE2, 16, 3, 18.0, "leakyrelu")

    # ------------ flatten (NCHW order folded into w_p) + pack_LL ------------
    hp = spatial_layer(a2, ap_ref, wp_ref) + vrow(V_BP, 32)        # (2, 32)
    hp = _act(hp, "leakyrelu")

    # -------------------- mu / sig heads + bottleneck --------------------
    mu = jnp.dot(hp, wh_ref[0], preferred_element_type=F32) + vrow(V_BMU, 16)
    sig = jnp.dot(hp, wh_ref[1], preferred_element_type=F32) + vrow(V_BSIG, 16)
    es = jnp.exp(sig)
    z = mu + es * noise_ref[...]                                   # (2, 16)
    kl_ref[...] = -0.5 * jnp.sum(1.0 + sig - mu * mu - es,
                                 axis=(0, 1), keepdims=True)

    # --------------- d1 + unflatten (row scatter over h) ---------------
    d0 = None
    for h in range(3):
        t = jnp.dot(z, wd_ref[h], preferred_element_type=F32) + vrow(V_BD0 + h, 48)
        t = jnp.dot(ad_ref[h], t, preferred_element_type=F32)
        d0 = t if d0 is None else d0 + t
    d0 = jnp.maximum(d0, 0.0)                                      # (6, 48)

    # ------------------------------ decoder ------------------------------
    y3 = spatial_layer(d0, at1_ref, ct1_ref) + vrow(V_BT1, 56)     # (14, 56)
    a3 = bn_act(y3, 2, V_GT1, V_BET1, 8, 7, 98.0, "relu")
    y4 = spatial_layer(a3, at2_ref, ct2_ref) + vrow(V_BT2, 64)     # (32, 64)
    out_ref[...] = bn_act(y4, 3, V_GT2, V_BET2, 4, 16, 512.0, "sigmoid")


# --------------- constant builders (static shapes, built offline) ---------------

def _row_gather_conv(N, Hin, Hout, kh, stride):
    A = np.zeros((kh, N * Hout, N * Hin), np.float32)
    for ki in range(kh):
        for n in range(N):
            for oh in range(Hout):
                A[ki, n * Hout + oh, n * Hin + stride * oh + ki] = 1.0
    return A


def _row_scatter_convt(N, Hin, Hout, kh, stride):
    A = np.zeros((kh, N * Hout, N * Hin), np.float32)
    for ki in range(kh):
        for n in range(N):
            for ih in range(Hin):
                A[ki, n * Hout + stride * ih + ki, n * Hin + ih] = 1.0
    return A


def _col_weights_conv(w, Win, Wout, stride):
    # w: (Cout, Cin, kh, kw) PyTorch Conv2d weight ->
    # C[ki][wi*Cin+ci, wo*Cout+co] = w[co, ci, ki, wi - stride*wo]
    co, ci, kh, kw = w.shape
    C = np.zeros((kh, Win * ci, Wout * co), np.float32)
    for ki in range(kh):
        for wo in range(Wout):
            for kj in range(kw):
                wi = stride * wo + kj
                C[ki, wi * ci:(wi + 1) * ci, wo * co:(wo + 1) * co] = w[:, :, ki, kj].T
    return C


def _col_weights_convt(w, Win, Wout, stride):
    # w: (Cin, Cout, kh, kw) PyTorch ConvTranspose2d weight ->
    # C[ki][wi*Cin+ci, wo*Cout+co] = w[ci, co, ki, wo - stride*wi]
    ci, co, kh, kw = w.shape
    C = np.zeros((kh, Win * ci, Wout * co), np.float32)
    for ki in range(kh):
        for wi in range(Win):
            for kj in range(kw):
                wo = stride * wi + kj
                C[ki, wi * ci:(wi + 1) * ci, wo * co:(wo + 1) * co] = w[:, :, ki, kj]
    return C


def _bn_fold(Wout, C):
    P = np.zeros((Wout * C, C), np.float32)
    for wo in range(Wout):
        for c in range(C):
            P[wo * C + c, c] = 1.0
    return P


def build_constants(p):
    f32 = np.float32
    g = lambda k: np.asarray(p[k], f32)

    c = {}
    # encoder convolutions
    c["a_e1"] = jnp.asarray(_row_gather_conv(BATCH, 16, 7, 3, 2))   # (3, 14, 32)
    c["c_e1"] = jnp.asarray(_col_weights_conv(g("e1_w"), 16, 7, 2)) # (3, 64, 56)
    c["a_e2"] = jnp.asarray(_row_gather_conv(BATCH, 7, 3, 3, 2))    # (3,  6, 14)
    c["c_e2"] = jnp.asarray(_col_weights_conv(g("e2_w"), 7, 3, 2))  # (3, 56, 48)
    # decoder transposed convolutions
    c["a_t1"] = jnp.asarray(_row_scatter_convt(BATCH, 3, 7, 3, 2))   # (3, 14,  6)
    c["c_t1"] = jnp.asarray(_col_weights_convt(g("t1_w"), 3, 7, 2))  # (3, 48, 56)
    c["a_t2"] = jnp.asarray(_row_scatter_convt(BATCH, 7, 16, 4, 2))  # (4, 32, 14)
    c["c_t2"] = jnp.asarray(_col_weights_convt(g("t2_w"), 7, 16, 2)) # (4, 56, 64)

    # pack_LL / d1: torch.flatten index is c*9 + h*3 + w -> per-h column slices
    # in the kernel's (w*16 + c) lane order, with row gather/scatter over h.
    pack_w, d1_w, d1_b = g("pack_w"), g("d1_w"), g("d1_b")
    wp = np.zeros((3, 48, 32), f32)
    wd = np.zeros((3, 16, 48), f32)
    bd = np.zeros((3, 64), f32)
    for h in range(3):
        for w in range(3):
            for ch in range(16):
                f = ch * 9 + h * 3 + w
                wp[h, w * 16 + ch, :] = pack_w[f, :]
                wd[h, :, w * 16 + ch] = d1_w[:, f]
                bd[h, w * 16 + ch] = d1_b[f]
    c["w_p"] = jnp.asarray(wp)
    c["w_d"] = jnp.asarray(wd)
    ap = np.zeros((3, 2, 6), f32)
    ad = np.zeros((3, 6, 2), f32)
    for h in range(3):
        for n in range(BATCH):
            ap[h, n, n * 3 + h] = 1.0
            ad[h, n * 3 + h, n] = 1.0
    c["a_p"] = jnp.asarray(ap)
    c["a_d"] = jnp.asarray(ad)

    # mu / sig heads
    c["w_heads"] = jnp.asarray(np.stack([g("mu_w"), g("sig_w")], axis=0))  # (2,32,16)

    # BN per-channel fold matrices (W*C -> C), zero-padded to (64, 64)
    pf = np.zeros((4, 64, 64), f32)
    for i, (wout, ch) in enumerate([(7, 8), (3, 16), (7, 8), (16, 4)]):
        P = _bn_fold(wout, ch)
        pf[i, :P.shape[0], :P.shape[1]] = P
    c["pfold"] = jnp.asarray(pf)

    # all (1, k) row constants packed into one operand
    vecs = np.zeros((N_VROWS, 1, 64), f32)

    def put(i, v):
        v = np.asarray(v, f32).reshape(-1)
        vecs[i, 0, :v.shape[0]] = v

    put(V_B1, np.tile(g("e1_b"), 7));   put(V_G1, g("e1_g"));   put(V_BE1, g("e1_bt"))
    put(V_B2, np.tile(g("e2_b"), 3));   put(V_G2, g("e2_g"));   put(V_BE2, g("e2_bt"))
    put(V_BP, g("pack_b"));             put(V_BMU, g("mu_b"));  put(V_BSIG, g("sig_b"))
    for h in range(3):
        put(V_BD0 + h, bd[h])
    put(V_BT1, np.tile(g("t1_b"), 7));  put(V_GT1, g("t1_g"));  put(V_BET1, g("t1_bt"))
    put(V_BT2, np.tile(g("t2_b"), 16)); put(V_GT2, g("t2_g"));  put(V_BET2, g("t2_bt"))
    c["vecs"] = jnp.asarray(vecs)
    return c


# ------------------------------ fused forward --------------------------------

@jax.jit
def var_next_forward(x, noise, consts):
    N = x.shape[0]
    # NCHW is only touched at the call boundary; the kernel works on flat
    # (N*H, W*C) matrices end to end.
    x_mat = jnp.transpose(x, (0, 2, 3, 1)).reshape(N * 16, 16 * 4)

    operands = (
        x_mat, noise,
        consts["a_e1"], consts["c_e1"], consts["a_e2"], consts["c_e2"],
        consts["a_p"], consts["w_p"], consts["w_heads"],
        consts["a_d"], consts["w_d"],
        consts["a_t1"], consts["c_t1"], consts["a_t2"], consts["c_t2"],
        consts["pfold"], consts["vecs"],
    )
    vmem = pl.BlockSpec(memory_space=pltpu.MemorySpace.VMEM)
    out_mat, kl = pl.pallas_call(
        vnext_kernel,
        out_shape=(jax.ShapeDtypeStruct((N * 16, 16 * 4), jnp.float32),
                   jax.ShapeDtypeStruct((1, 1), jnp.float32)),
        in_specs=[vmem] * len(operands),
        out_specs=(vmem, vmem),
    )(*operands)

    recon = jnp.transpose(out_mat.reshape(N, 16, 16, 4), (0, 3, 1, 2))   # NCHW
    return recon, kl[0, 0]


# ------------------------------ parameter init --------------------------------

def init_params(key):
    ks = list(jax.random.split(key, 24))
    idx = [0]

    def nk():
        k = ks[idx[0]]
        idx[0] += 1
        return k

    def u(shape, bound):
        return jax.random.uniform(nk(), shape, jnp.float32, -bound, bound)

    p = {}
    b = 1.0 / math.sqrt(4 * 9)
    p["e1_w"], p["e1_b"] = u((8, 4, 3, 3), b), u((8,), b)
    p["e1_g"], p["e1_bt"] = jnp.ones((8,), jnp.float32), jnp.zeros((8,), jnp.float32)
    b = 1.0 / math.sqrt(8 * 9)
    p["e2_w"], p["e2_b"] = u((16, 8, 3, 3), b), u((16,), b)
    p["e2_g"], p["e2_bt"] = jnp.ones((16,), jnp.float32), jnp.zeros((16,), jnp.float32)
    b = 1.0 / math.sqrt(144)
    p["pack_w"], p["pack_b"] = u((144, 32), b), u((32,), b)       # stored (in, out)
    b = 1.0 / math.sqrt(32)
    p["mu_w"], p["mu_b"] = u((32, 16), b), u((16,), b)
    p["sig_w"], p["sig_b"] = u((32, 16), 0.08), u((16,), b)       # torch.nn.init.uniform_(-0.08, 0.08)
    b = 1.0 / math.sqrt(16)
    p["d1_w"], p["d1_b"] = u((16, 144), b), u((144,), b)
    b = 1.0 / math.sqrt(16 * 9)
    p["t1_w"], p["t1_b"] = u((16, 8, 3, 3), b), u((8,), b)        # ConvTranspose2d weight (Cin,Cout,kh,kw)
    p["t1_g"], p["t1_bt"] = jnp.ones((8,), jnp.float32), jnp.zeros((8,), jnp.float32)
    b = 1.0 / math.sqrt(8 * 16)
    p["t2_w"], p["t2_b"] = u((8, 4, 4, 4), b), u((4,), b)
    p["t2_g"], p["t2_bt"] = jnp.ones((4,), jnp.float32), jnp.zeros((4,), jnp.float32)
    return p


# ---------------------------------- main --------------------------------------

if __name__ == "__main__":
    key = jax.random.PRNGKey(0)
    kx, kn, kp = jax.random.split(key, 3)
    x = jax.random.normal(kx, (BATCH, 4, 16, 16), jnp.float32)
    # TODO(synk): torch.randn_like uses torch's global RNG; the Gaussian noise
    # for the reparameterization is supplied explicitly as an input instead.
    noise = jax.random.normal(kn, (BATCH, LATENT), jnp.float32)
    params = init_params(kp)
    consts = build_constants(params)    # routing + repacked weights, built once

    recon, kl = var_next_forward(x, noise, consts)
    jax.block_until_ready((recon, kl))

    assert recon.shape == (BATCH, 4, 16, 16)
    assert recon.dtype == jnp.float32
    assert jnp.all(jnp.isfinite(recon)) and jnp.isfinite(kl)
    print("KERNEL_OK")
</pallas_src>

<mosaic_0001>
module attributes {stable_mosaic.version = 11 : i64} {
  func.func @vnext_kernel(%arg0: memref<32x64xf32, #tpu.memory_space<vmem>>, %arg1: memref<2x16xf32, #tpu.memory_space<vmem>>, %arg2: memref<3x14x32xf32, #tpu.memory_space<vmem>>, %arg3: memref<3x64x56xf32, #tpu.memory_space<vmem>>, %arg4: memref<3x6x14xf32, #tpu.memory_space<vmem>>, %arg5: memref<3x56x48xf32, #tpu.memory_space<vmem>>, %arg6: memref<3x2x6xf32, #tpu.memory_space<vmem>>, %arg7: memref<3x48x32xf32, #tpu.memory_space<vmem>>, %arg8: memref<2x32x16xf32, #tpu.memory_space<vmem>>, %arg9: memref<3x6x2xf32, #tpu.memory_space<vmem>>, %arg10: memref<3x16x48xf32, #tpu.memory_space<vmem>>, %arg11: memref<3x14x6xf32, #tpu.memory_space<vmem>>, %arg12: memref<3x48x56xf32, #tpu.memory_space<vmem>>, %arg13: memref<4x32x14xf32, #tpu.memory_space<vmem>>, %arg14: memref<4x56x64xf32, #tpu.memory_space<vmem>>, %arg15: memref<4x64x64xf32, #tpu.memory_space<vmem>>, %arg16: memref<18x1x64xf32, #tpu.memory_space<vmem>>, %arg17: memref<32x64xf32, #tpu.memory_space<vmem>>, %arg18: memref<1x1xf32, #tpu.memory_space<vmem>>) attributes {dimension_semantics = [], scalar_prefetch = 0 : i64, scratch_operands = 0 : i64, tpu.core_type = #tpu.core_type<tc>} {
    %c0 = arith.constant 0 : index
    %c0_0 = arith.constant 0 : index
    %0 = vector.load %arg0[%c0, %c0_0] : memref<32x64xf32, #tpu.memory_space<vmem>>, vector<32x64xf32>
    %c0_1 = arith.constant 0 : index
    %c0_2 = arith.constant 0 : index
    %c0_3 = arith.constant 0 : index
    %1 = vector.load %arg2[%c0_1, %c0_2, %c0_3] : memref<3x14x32xf32, #tpu.memory_space<vmem>>, vector<1x14x32xf32>
    %2 = vector.shape_cast %1 : vector<1x14x32xf32> to vector<14x32xf32>
    %cst = arith.constant dense<0.000000e+00> : vector<14x64xf32>
    %3 = tpu.matmul %2, %0, %cst {dimension_numbers = #tpu.dot_dimension_numbers<[1], [0], [0], [1], [0, 0, 1, 1], [], []>} : vector<14x32xf32>, vector<32x64xf32>, vector<14x64xf32> -> vector<14x64xf32>
    %c0_4 = arith.constant 0 : index
    %c0_5 = arith.constant 0 : index
    %c0_6 = arith.constant 0 : index
    %4 = vector.load %arg3[%c0_4, %c0_5, %c0_6] : memref<3x64x56xf32, #tpu.memory_space<vmem>>, vector<1x64x56xf32>
    %5 = vector.shape_cast %4 : vector<1x64x56xf32> to vector<64x56xf32>
    %cst_7 = arith.constant dense<0.000000e+00> : vector<14x56xf32>
    %6 = tpu.matmul %3, %5, %cst_7 {dimension_numbers = #tpu.dot_dimension_numbers<[1], [0], [0], [1], [0, 0, 1, 1], [], []>} : vector<14x64xf32>, vector<64x56xf32>, vector<14x56xf32> -> vector<14x56xf32>
    %c1 = arith.constant 1 : index
    %c0_8 = arith.constant 0 : index
    %c0_9 = arith.constant 0 : index
    %7 = vector.load %arg2[%c1, %c0_8, %c0_9] : memref<3x14x32xf32, #tpu.memory_space<vmem>>, vector<1x14x32xf32>
    %8 = vector.shape_cast %7 : vector<1x14x32xf32> to vector<14x32xf32>
    %cst_10 = arith.constant dense<0.000000e+00> : vector<14x64xf32>
    %9 = tpu.matmul %8, %0, %cst_10 {dimension_numbers = #tpu.dot_dimension_numbers<[1], [0], [0], [1], [0, 0, 1, 1], [], []>} : vector<14x32xf32>, vector<32x64xf32>, vector<14x64xf32> -> vector<14x64xf32>
    %c1_11 = arith.constant 1 : index
    %c0_12 = arith.constant 0 : index
    %c0_13 = arith.constant 0 : index
    %10 = vector.load %arg3[%c1_11, %c0_12, %c0_13] : memref<3x64x56xf32, #tpu.memory_space<vmem>>, vector<1x64x56xf32>
    %11 = vector.shape_cast %10 : vector<1x64x56xf32> to vector<64x56xf32>
    %cst_14 = arith.constant dense<0.000000e+00> : vector<14x56xf32>
    %12 = tpu.matmul %9, %11, %cst_14 {dimension_numbers = #tpu.dot_dimension_numbers<[1], [0], [0], [1], [0, 0, 1, 1], [], []>} : vector<14x64xf32>, vector<64x56xf32>, vector<14x56xf32> -> vector<14x56xf32>
    %13 = arith.addf %6, %12 : vector<14x56xf32>
    %c2 = arith.constant 2 : index
    %c0_15 = arith.constant 0 : index
    %c0_16 = arith.constant 0 : index
    %14 = vector.load %arg2[%c2, %c0_15, %c0_16] : memref<3x14x32xf32, #tpu.memory_space<vmem>>, vector<1x14x32xf32>
    %15 = vector.shape_cast %14 : vector<1x14x32xf32> to vector<14x32xf32>
    %cst_17 = arith.constant dense<0.000000e+00> : vector<14x64xf32>
    %16 = tpu.matmul %15, %0, %cst_17 {dimension_numbers = #tpu.dot_dimension_numbers<[1], [0], [0], [1], [0, 0, 1, 1], [], []>} : vector<14x32xf32>, vector<32x64xf32>, vector<14x64xf32> -> vector<14x64xf32>
    %c2_18 = arith.constant 2 : index
    %c0_19 = arith.constant 0 : index
    %c0_20 = arith.constant 0 : index
    %17 = vector.load %arg3[%c2_18, %c0_19, %c0_20] : memref<3x64x56xf32, #tpu.memory_space<vmem>>, vector<1x64x56xf32>
    %18 = vector.shape_cast %17 : vector<1x64x56xf32> to vector<64x56xf32>
    %cst_21 = arith.constant dense<0.000000e+00> : vector<14x56xf32>
    %19 = tpu.matmul %16, %18, %cst_21 {dimension_numbers = #tpu.dot_dimension_numbers<[1], [0], [0], [1], [0, 0, 1, 1], [], []>} : vector<14x64xf32>, vector<64x56xf32>, vector<14x56xf32> -> vector<14x56xf32>
    %20 = arith.addf %13, %19 : vector<14x56xf32>
    %c0_22 = arith.constant 0 : index
    %c0_23 = arith.constant 0 : index
    %c0_24 = arith.constant 0 : index
    %21 = vector.load %arg16[%c0_22, %c0_23, %c0_24] : memref<18x1x64xf32, #tpu.memory_space<vmem>>, vector<1x1x64xf32>
    %22 = vector.shape_cast %21 : vector<1x1x64xf32> to vector<1x64xf32>
    %23 = vector.extract_strided_slice %22 {offsets = [0, 0], sizes = [1, 56], strides = [1, 1]} : vector<1x64xf32> to vector<1x56xf32>
    %24 = vector.broadcast %23 : vector<1x56xf32> to vector<14x56xf32>
    %25 = arith.addf %20, %24 : vector<14x56xf32>
    %c0_25 = arith.constant 0 : index
    %c0_26 = arith.constant 0 : index
    %c0_27 = arith.constant 0 : index
    %26 = vector.load %arg15[%c0_25, %c0_26, %c0_27] : memref<4x64x64xf32, #tpu.memory_space<vmem>>, vector<1x64x64xf32>
    %27 = vector.shape_cast %26 : vector<1x64x64xf32> to vector<64x64xf32>
    %28 = vector.extract_strided_slice %27 {offsets = [0, 0], sizes = [56, 8], strides = [1, 1]} : vector<64x64xf32> to vector<56x8xf32>
    %cst_28 = arith.constant dense<0.000000e+00> : vector<14x8xf32>
    %29 = tpu.matmul %25, %28, %cst_28 {dimension_numbers = #tpu.dot_dimension_numbers<[1], [0], [0], [1], [0, 0, 1, 1], [], []>} : vector<14x56xf32>, vector<56x8xf32>, vector<14x8xf32> -> vector<14x8xf32>
    %30 = arith.mulf %25, %25 : vector<14x56xf32>
    %cst_29 = arith.constant dense<0.000000e+00> : vector<14x8xf32>
    %31 = tpu.matmul %30, %28, %cst_29 {dimension_numbers = #tpu.dot_dimension_numbers<[1], [0], [0], [1], [0, 0, 1, 1], [], []>} : vector<14x56xf32>, vector<56x8xf32>, vector<14x8xf32> -> vector<14x8xf32>
    %cst_30 = arith.constant dense<0.000000e+00> : vector<8xf32>
    %32 = vector.multi_reduction <add>, %29, %cst_30 [0] : vector<14x8xf32> to vector<8xf32>
    %33 = vector.shape_cast %32 : vector<8xf32> to vector<1x8xf32>
    %cst_31 = arith.constant 0.0102040814 : f32
    %34 = vector.broadcast %cst_31 : f32 to vector<1x8xf32>
    %35 = arith.mulf %33, %34 : vector<1x8xf32>
    %cst_32 = arith.constant dense<0.000000e+00> : vector<8xf32>
    %36 = vector.multi_reduction <add>, %31, %cst_32 [0] : vector<14x8xf32> to vector<8xf32>
    %37 = vector.shape_cast %36 : vector<8xf32> to vector<1x8xf32>
    %cst_33 = arith.constant 0.0102040814 : f32
    %38 = vector.broadcast %cst_33 : f32 to vector<1x8xf32>
    %39 = arith.mulf %37, %38 : vector<1x8xf32>
    %40 = arith.mulf %35, %35 : vector<1x8xf32>
    %41 = arith.subf %39, %40 : vector<1x8xf32>
    %cst_34 = arith.constant 0.000000e+00 : f32
    %42 = vector.broadcast %cst_34 : f32 to vector<1x8xf32>
    %43 = arith.maximumf %41, %42 : vector<1x8xf32>
    %c1_35 = arith.constant 1 : index
    %c0_36 = arith.constant 0 : index
    %c0_37 = arith.constant 0 : index
    %44 = vector.load %arg16[%c1_35, %c0_36, %c0_37] : memref<18x1x64xf32, #tpu.memory_space<vmem>>, vector<1x1x64xf32>
    %45 = vector.shape_cast %44 : vector<1x1x64xf32> to vector<1x64xf32>
    %46 = vector.extract_strided_slice %45 {offsets = [0, 0], sizes = [1, 8], strides = [1, 1]} : vector<1x64xf32> to vector<1x8xf32>
    %cst_38 = arith.constant 9.99999974E-6 : f32
    %47 = vector.broadcast %cst_38 : f32 to vector<1x8xf32>
    %48 = arith.addf %43, %47 : vector<1x8xf32>
    %49 = math.rsqrt %48 : vector<1x8xf32>
    %50 = arith.mulf %46, %49 : vector<1x8xf32>
    %c2_39 = arith.constant 2 : index
    %c0_40 = arith.constant 0 : index
    %c0_41 = arith.constant 0 : index
    %51 = vector.load %arg16[%c2_39, %c0_40, %c0_41] : memref<18x1x64xf32, #tpu.memory_space<vmem>>, vector<1x1x64xf32>
    %52 = vector.shape_cast %51 : vector<1x1x64xf32> to vector<1x64xf32>
    %53 = vector.extract_strided_slice %52 {offsets = [0, 0], sizes = [1, 8], strides = [1, 1]} : vector<1x64xf32> to vector<1x8xf32>
    %54 = arith.mulf %35, %50 : vector<1x8xf32>
    %55 = arith.subf %53, %54 : vector<1x8xf32>
    %56 = tpu.concatenate %50, %50, %50, %50, %50, %50, %50 in 1 : vector<1x8xf32>, vector<1x8xf32>, vector<1x8xf32>, vector<1x8xf32>, vector<1x8xf32>, vector<1x8xf32>, vector<1x8xf32> -> vector<1x56xf32>
    %57 = tpu.concatenate %55, %55, %55, %55, %55, %55, %55 in 1 : vector<1x8xf32>, vector<1x8xf32>, vector<1x8xf32>, vector<1x8xf32>, vector<1x8xf32>, vector<1x8xf32>, vector<1x8xf32> -> vector<1x56xf32>
    %58 = vector.broadcast %56 : vector<1x56xf32> to vector<14x56xf32>
    %59 = arith.mulf %25, %58 : vector<14x56xf32>
    %60 = vector.broadcast %57 : vector<1x56xf32> to vector<14x56xf32>
    %61 = arith.addf %59, %60 : vector<14x56xf32>
    %cst_42 = arith.constant 0.000000e+00 : f32
    %62 = vector.broadcast %cst_42 : f32 to vector<14x56xf32>
    %63 = arith.cmpf ogt, %61, %62 : vector<14x56xf32>
    %cst_43 = arith.constant 0.00999999977 : f32
    %64 = vector.broadcast %cst_43 : f32 to vector<14x56xf32>
    %65 = arith.mulf %64, %61 : vector<14x56xf32>
    %66 = arith.select %63, %61, %65 : vector<14x56xi1>, vector<14x56xf32>
    %c0_44 = arith.constant 0 : index
    %c0_45 = arith.constant 0 : index
    %c0_46 = arith.constant 0 : index
    %67 = vector.load %arg4[%c0_44, %c0_45, %c0_46] : memref<3x6x14xf32, #tpu.memory_space<vmem>>, vector<1x6x14xf32>
    %68 = vector.shape_cast %67 : vector<1x6x14xf32> to vector<6x14xf32>
    %cst_47 = arith.constant dense<0.000000e+00> : vector<6x56xf32>
    %69 = tpu.matmul %68, %66, %cst_47 {dimension_numbers = #tpu.dot_dimension_numbers<[1], [0], [0], [1], [0, 0, 1, 1], [], []>} : vector<6x14xf32>, vector<14x56xf32>, vector<6x56xf32> -> vector<6x56xf32>
    %c0_48 = arith.constant 0 : index
    %c0_49 = arith.constant 0 : index
    %c0_50 = arith.constant 0 : index
    %70 = vector.load %arg5[%c0_48, %c0_49, %c0_50] : memref<3x56x48xf32, #tpu.memory_space<vmem>>, vector<1x56x48xf32>
    %71 = vector.shape_cast %70 : vector<1x56x48xf32> to vector<56x48xf32>
    %cst_51 = arith.constant dense<0.000000e+00> : vector<6x48xf32>
    %72 = tpu.matmul %69, %71, %cst_51 {dimension_numbers = #tpu.dot_dimension_numbers<[1], [0], [0], [1], [0, 0, 1, 1], [], []>} : vector<6x56xf32>, vector<56x48xf32>, vector<6x48xf32> -> vector<6x48xf32>
    %c1_52 = arith.constant 1 : index
    %c0_53 = arith.constant 0 : index
    %c0_54 = arith.constant 0 : index
    %73 = vector.load %arg4[%c1_52, %c0_53, %c0_54] : memref<3x6x14xf32, #tpu.memory_space<vmem>>, vector<1x6x14xf32>
    %74 = vector.shape_cast %73 : vector<1x6x14xf32> to vector<6x14xf32>
    %cst_55 = arith.constant dense<0.000000e+00> : vector<6x56xf32>
    %75 = tpu.matmul %74, %66, %cst_55 {dimension_numbers = #tpu.dot_dimension_numbers<[1], [0], [0], [1], [0, 0, 1, 1], [], []>} : vector<6x14xf32>, vector<14x56xf32>, vector<6x56xf32> -> vector<6x56xf32>
    %c1_56 = arith.constant 1 : index
    %c0_57 = arith.constant 0 : index
    %c0_58 = arith.constant 0 : index
    %76 = vector.load %arg5[%c1_56, %c0_57, %c0_58] : memref<3x56x48xf32, #tpu.memory_space<vmem>>, vector<1x56x48xf32>
    %77 = vector.shape_cast %76 : vector<1x56x48xf32> to vector<56x48xf32>
    %cst_59 = arith.constant dense<0.000000e+00> : vector<6x48xf32>
    %78 = tpu.matmul %75, %77, %cst_59 {dimension_numbers = #tpu.dot_dimension_numbers<[1], [0], [0], [1], [0, 0, 1, 1], [], []>} : vector<6x56xf32>, vector<56x48xf32>, vector<6x48xf32> -> vector<6x48xf32>
    %79 = arith.addf %72, %78 : vector<6x48xf32>
    %c2_60 = arith.constant 2 : index
    %c0_61 = arith.constant 0 : index
    %c0_62 = arith.constant 0 : index
    %80 = vector.load %arg4[%c2_60, %c0_61, %c0_62] : memref<3x6x14xf32, #tpu.memory_space<vmem>>, vector<1x6x14xf32>
    %81 = vector.shape_cast %80 : vector<1x6x14xf32> to vector<6x14xf32>
    %cst_63 = arith.constant dense<0.000000e+00> : vector<6x56xf32>
    %82 = tpu.matmul %81, %66, %cst_63 {dimension_numbers = #tpu.dot_dimension_numbers<[1], [0], [0], [1], [0, 0, 1, 1], [], []>} : vector<6x14xf32>, vector<14x56xf32>, vector<6x56xf32> -> vector<6x56xf32>
    %c2_64 = arith.constant 2 : index
    %c0_65 = arith.constant 0 : index
    %c0_66 = arith.constant 0 : index
    %83 = vector.load %arg5[%c2_64, %c0_65, %c0_66] : memref<3x56x48xf32, #tpu.memory_space<vmem>>, vector<1x56x48xf32>
    %84 = vector.shape_cast %83 : vector<1x56x48xf32> to vector<56x48xf32>
    %cst_67 = arith.constant dense<0.000000e+00> : vector<6x48xf32>
    %85 = tpu.matmul %82, %84, %cst_67 {dimension_numbers = #tpu.dot_dimension_numbers<[1], [0], [0], [1], [0, 0, 1, 1], [], []>} : vector<6x56xf32>, vector<56x48xf32>, vector<6x48xf32> -> vector<6x48xf32>
    %86 = arith.addf %79, %85 : vector<6x48xf32>
    %c3 = arith.constant 3 : index
    %c0_68 = arith.constant 0 : index
    %c0_69 = arith.constant 0 : index
    %87 = vector.load %arg16[%c3, %c0_68, %c0_69] : memref<18x1x64xf32, #tpu.memory_space<vmem>>, vector<1x1x64xf32>
    %88 = vector.shape_cast %87 : vector<1x1x64xf32> to vector<1x64xf32>
    %89 = vector.extract_strided_slice %88 {offsets = [0, 0], sizes = [1, 48], strides = [1, 1]} : vector<1x64xf32> to vector<1x48xf32>
    %90 = vector.broadcast %89 : vector<1x48xf32> to vector<6x48xf32>
    %91 = arith.addf %86, %90 : vector<6x48xf32>
    %c1_70 = arith.constant 1 : index
    %c0_71 = arith.constant 0 : index
    %c0_72 = arith.constant 0 : index
    %92 = vector.load %arg15[%c1_70, %c0_71, %c0_72] : memref<4x64x64xf32, #tpu.memory_space<vmem>>, vector<1x64x64xf32>
    %93 = vector.shape_cast %92 : vector<1x64x64xf32> to vector<64x64xf32>
    %94 = vector.extract_strided_slice %93 {offsets = [0, 0], sizes = [48, 16], strides = [1, 1]} : vector<64x64xf32> to vector<48x16xf32>
    %cst_73 = arith.constant dense<0.000000e+00> : vector<6x16xf32>
    %95 = tpu.matmul %91, %94, %cst_73 {dimension_numbers = #tpu.dot_dimension_numbers<[1], [0], [0], [1], [0, 0, 1, 1], [], []>} : vector<6x48xf32>, vector<48x16xf32>, vector<6x16xf32> -> vector<6x16xf32>
    %96 = arith.mulf %91, %91 : vector<6x48xf32>
    %cst_74 = arith.constant dense<0.000000e+00> : vector<6x16xf32>
    %97 = tpu.matmul %96, %94, %cst_74 {dimension_numbers = #tpu.dot_dimension_numbers<[1], [0], [0], [1], [0, 0, 1, 1], [], []>} : vector<6x48xf32>, vector<48x16xf32>, vector<6x16xf32> -> vector<6x16xf32>
    %cst_75 = arith.constant dense<0.000000e+00> : vector<16xf32>
    %98 = vector.multi_reduction <add>, %95, %cst_75 [0] : vector<6x16xf32> to vector<16xf32>
    %99 = vector.shape_cast %98 : vector<16xf32> to vector<1x16xf32>
    %cst_76 = arith.constant 0.055555556 : f32
    %100 = vector.broadcast %cst_76 : f32 to vector<1x16xf32>
    %101 = arith.mulf %99, %100 : vector<1x16xf32>
    %cst_77 = arith.constant dense<0.000000e+00> : vector<16xf32>
    %102 = vector.multi_reduction <add>, %97, %cst_77 [0] : vector<6x16xf32> to vector<16xf32>
    %103 = vector.shape_cast %102 : vector<16xf32> to vector<1x16xf32>
    %cst_78 = arith.constant 0.055555556 : f32
    %104 = vector.broadcast %cst_78 : f32 to vector<1x16xf32>
    %105 = arith.mulf %103, %104 : vector<1x16xf32>
    %106 = arith.mulf %101, %101 : vector<1x16xf32>
    %107 = arith.subf %105, %106 : vector<1x16xf32>
    %cst_79 = arith.constant 0.000000e+00 : f32
    %108 = vector.broadcast %cst_79 : f32 to vector<1x16xf32>
    %109 = arith.maximumf %107, %108 : vector<1x16xf32>
    %c4 = arith.constant 4 : index
    %c0_80 = arith.constant 0 : index
    %c0_81 = arith.constant 0 : index
    %110 = vector.load %arg16[%c4, %c0_80, %c0_81] : memref<18x1x64xf32, #tpu.memory_space<vmem>>, vector<1x1x64xf32>
    %111 = vector.shape_cast %110 : vector<1x1x64xf32> to vector<1x64xf32>
    %112 = vector.extract_strided_slice %111 {offsets = [0, 0], sizes = [1, 16], strides = [1, 1]} : vector<1x64xf32> to vector<1x16xf32>
    %cst_82 = arith.constant 9.99999974E-6 : f32
    %113 = vector.broadcast %cst_82 : f32 to vector<1x16xf32>
    %114 = arith.addf %109, %113 : vector<1x16xf32>
    %115 = math.rsqrt %114 : vector<1x16xf32>
    %116 = arith.mulf %112, %115 : vector<1x16xf32>
    %c5 = arith.constant 5 : index
    %c0_83 = arith.constant 0 : index
    %c0_84 = arith.constant 0 : index
    %117 = vector.load %arg16[%c5, %c0_83, %c0_84] : memref<18x1x64xf32, #tpu.memory_space<vmem>>, vector<1x1x64xf32>
    %118 = vector.shape_cast %117 : vector<1x1x64xf32> to vector<1x64xf32>
    %119 = vector.extract_strided_slice %118 {offsets = [0, 0], sizes = [1, 16], strides = [1, 1]} : vector<1x64xf32> to vector<1x16xf32>
    %120 = arith.mulf %101, %116 : vector<1x16xf32>
    %121 = arith.subf %119, %120 : vector<1x16xf32>
    %122 = tpu.concatenate %116, %116, %116 in 1 : vector<1x16xf32>, vector<1x16xf32>, vector<1x16xf32> -> vector<1x48xf32>
    %123 = tpu.concatenate %121, %121, %121 in 1 : vector<1x16xf32>, vector<1x16xf32>, vector<1x16xf32> -> vector<1x48xf32>
    %124 = vector.broadcast %122 : vector<1x48xf32> to vector<6x48xf32>
    %125 = arith.mulf %91, %124 : vector<6x48xf32>
    %126 = vector.broadcast %123 : vector<1x48xf32> to vector<6x48xf32>
    %127 = arith.addf %125, %126 : vector<6x48xf32>
    %cst_85 = arith.constant 0.000000e+00 : f32
    %128 = vector.broadcast %cst_85 : f32 to vector<6x48xf32>
    %129 = arith.cmpf ogt, %127, %128 : vector<6x48xf32>
    %cst_86 = arith.constant 0.00999999977 : f32
    %130 = vector.broadcast %cst_86 : f32 to vector<6x48xf32>
    %131 = arith.mulf %130, %127 : vector<6x48xf32>
    %132 = arith.select %129, %127, %131 : vector<6x48xi1>, vector<6x48xf32>
    %c0_87 = arith.constant 0 : index
    %c0_88 = arith.constant 0 : index
    %c0_89 = arith.constant 0 : index
    %133 = vector.load %arg6[%c0_87, %c0_88, %c0_89] : memref<3x2x6xf32, #tpu.memory_space<vmem>>, vector<1x2x6xf32>
    %134 = vector.shape_cast %133 : vector<1x2x6xf32> to vector<2x6xf32>
    %cst_90 = arith.constant dense<0.000000e+00> : vector<2x48xf32>
    %135 = tpu.matmul %134, %132, %cst_90 {dimension_numbers = #tpu.dot_dimension_numbers<[1], [0], [0], [1], [0, 0, 1, 1], [], []>} : vector<2x6xf32>, vector<6x48xf32>, vector<2x48xf32> -> vector<2x48xf32>
    %c0_91 = arith.constant 0 : index
    %c0_92 = arith.constant 0 : index
    %c0_93 = arith.constant 0 : index
    %136 = vector.load %arg7[%c0_91, %c0_92, %c0_93] : memref<3x48x32xf32, #tpu.memory_space<vmem>>, vector<1x48x32xf32>
    %137 = vector.shape_cast %136 : vector<1x48x32xf32> to vector<48x32xf32>
    %cst_94 = arith.constant dense<0.000000e+00> : vector<2x32xf32>
    %138 = tpu.matmul %135, %137, %cst_94 {dimension_numbers = #tpu.dot_dimension_numbers<[1], [0], [0], [1], [0, 0, 1, 1], [], []>} : vector<2x48xf32>, vector<48x32xf32>, vector<2x32xf32> -> vector<2x32xf32>
    %c1_95 = arith.constant 1 : index
    %c0_96 = arith.constant 0 : index
    %c0_97 = arith.constant 0 : index
    %139 = vector.load %arg6[%c1_95, %c0_96, %c0_97] : memref<3x2x6xf32, #tpu.memory_space<vmem>>, vector<1x2x6xf32>
    %140 = vector.shape_cast %139 : vector<1x2x6xf32> to vector<2x6xf32>
    %cst_98 = arith.constant dense<0.000000e+00> : vector<2x48xf32>
    %141 = tpu.matmul %140, %132, %cst_98 {dimension_numbers = #tpu.dot_dimension_numbers<[1], [0], [0], [1], [0, 0, 1, 1], [], []>} : vector<2x6xf32>, vector<6x48xf32>, vector<2x48xf32> -> vector<2x48xf32>
    %c1_99 = arith.constant 1 : index
    %c0_100 = arith.constant 0 : index
    %c0_101 = arith.constant 0 : index
    %142 = vector.load %arg7[%c1_99, %c0_100, %c0_101] : memref<3x48x32xf32, #tpu.memory_space<vmem>>, vector<1x48x32xf32>
    %143 = vector.shape_cast %142 : vector<1x48x32xf32> to vector<48x32xf32>
    %cst_102 = arith.constant dense<0.000000e+00> : vector<2x32xf32>
    %144 = tpu.matmul %141, %143, %cst_102 {dimension_numbers = #tpu.dot_dimension_numbers<[1], [0], [0], [1], [0, 0, 1, 1], [], []>} : vector<2x48xf32>, vector<48x32xf32>, vector<2x32xf32> -> vector<2x32xf32>
    %145 = arith.addf %138, %144 : vector<2x32xf32>
    %c2_103 = arith.constant 2 : index
    %c0_104 = arith.constant 0 : index
    %c0_105 = arith.constant 0 : index
    %146 = vector.load %arg6[%c2_103, %c0_104, %c0_105] : memref<3x2x6xf32, #tpu.memory_space<vmem>>, vector<1x2x6xf32>
    %147 = vector.shape_cast %146 : vector<1x2x6xf32> to vector<2x6xf32>
    %cst_106 = arith.constant dense<0.000000e+00> : vector<2x48xf32>
    %148 = tpu.matmul %147, %132, %cst_106 {dimension_numbers = #tpu.dot_dimension_numbers<[1], [0], [0], [1], [0, 0, 1, 1], [], []>} : vector<2x6xf32>, vector<6x48xf32>, vector<2x48xf32> -> vector<2x48xf32>
    %c2_107 = arith.constant 2 : index
    %c0_108 = arith.constant 0 : index
    %c0_109 = arith.constant 0 : index
    %149 = vector.load %arg7[%c2_107, %c0_108, %c0_109] : memref<3x48x32xf32, #tpu.memory_space<vmem>>, vector<1x48x32xf32>
    %150 = vector.shape_cast %149 : vector<1x48x32xf32> to vector<48x32xf32>
    %cst_110 = arith.constant dense<0.000000e+00> : vector<2x32xf32>
    %151 = tpu.matmul %148, %150, %cst_110 {dimension_numbers = #tpu.dot_dimension_numbers<[1], [0], [0], [1], [0, 0, 1, 1], [], []>} : vector<2x48xf32>, vector<48x32xf32>, vector<2x32xf32> -> vector<2x32xf32>
    %152 = arith.addf %145, %151 : vector<2x32xf32>
    %c6 = arith.constant 6 : index
    %c0_111 = arith.constant 0 : index
    %c0_112 = arith.constant 0 : index
    %153 = vector.load %arg16[%c6, %c0_111, %c0_112] : memref<18x1x64xf32, #tpu.memory_space<vmem>>, vector<1x1x64xf32>
    %154 = vector.shape_cast %153 : vector<1x1x64xf32> to vector<1x64xf32>
    %155 = vector.extract_strided_slice %154 {offsets = [0, 0], sizes = [1, 32], strides = [1, 1]} : vector<1x64xf32> to vector<1x32xf32>
    %156 = vector.broadcast %155 : vector<1x32xf32> to vector<2x32xf32>
    %157 = arith.addf %152, %156 : vector<2x32xf32>
    %cst_113 = arith.constant 0.000000e+00 : f32
    %158 = vector.broadcast %cst_113 : f32 to vector<2x32xf32>
    %159 = arith.cmpf ogt, %157, %158 : vector<2x32xf32>
    %cst_114 = arith.constant 0.00999999977 : f32
    %160 = vector.broadcast %cst_114 : f32 to vector<2x32xf32>
    %161 = arith.mulf %160, %157 : vector<2x32xf32>
    %162 = arith.select %159, %157, %161 : vector<2x32xi1>, vector<2x32xf32>
    %c0_115 = arith.constant 0 : index
    %c0_116 = arith.constant 0 : index
    %c0_117 = arith.constant 0 : index
    %163 = vector.load %arg8[%c0_115, %c0_116, %c0_117] : memref<2x32x16xf32, #tpu.memory_space<vmem>>, vector<1x32x16xf32>
    %164 = vector.shape_cast %163 : vector<1x32x16xf32> to vector<32x16xf32>
    %cst_118 = arith.constant dense<0.000000e+00> : vector<2x16xf32>
    %165 = tpu.matmul %162, %164, %cst_118 {dimension_numbers = #tpu.dot_dimension_numbers<[1], [0], [0], [1], [0, 0, 1, 1], [], []>} : vector<2x32xf32>, vector<32x16xf32>, vector<2x16xf32> -> vector<2x16xf32>
    %c7 = arith.constant 7 : index
    %c0_119 = arith.constant 0 : index
    %c0_120 = arith.constant 0 : index
    %166 = vector.load %arg16[%c7, %c0_119, %c0_120] : memref<18x1x64xf32, #tpu.memory_space<vmem>>, vector<1x1x64xf32>
    %167 = vector.shape_cast %166 : vector<1x1x64xf32> to vector<1x64xf32>
    %168 = vector.extract_strided_slice %167 {offsets = [0, 0], sizes = [1, 16], strides = [1, 1]} : vector<1x64xf32> to vector<1x16xf32>
    %169 = vector.broadcast %168 : vector<1x16xf32> to vector<2x16xf32>
    %170 = arith.addf %165, %169 : vector<2x16xf32>
    %c1_121 = arith.constant 1 : index
    %c0_122 = arith.constant 0 : index
    %c0_123 = arith.constant 0 : index
    %171 = vector.load %arg8[%c1_121, %c0_122, %c0_123] : memref<2x32x16xf32, #tpu.memory_space<vmem>>, vector<1x32x16xf32>
    %172 = vector.shape_cast %171 : vector<1x32x16xf32> to vector<32x16xf32>
    %cst_124 = arith.constant dense<0.000000e+00> : vector<2x16xf32>
    %173 = tpu.matmul %162, %172, %cst_124 {dimension_numbers = #tpu.dot_dimension_numbers<[1], [0], [0], [1], [0, 0, 1, 1], [], []>} : vector<2x32xf32>, vector<32x16xf32>, vector<2x16xf32> -> vector<2x16xf32>
    %c8 = arith.constant 8 : index
    %c0_125 = arith.constant 0 : index
    %c0_126 = arith.constant 0 : index
    %174 = vector.load %arg16[%c8, %c0_125, %c0_126] : memref<18x1x64xf32, #tpu.memory_space<vmem>>, vector<1x1x64xf32>
    %175 = vector.shape_cast %174 : vector<1x1x64xf32> to vector<1x64xf32>
    %176 = vector.extract_strided_slice %175 {offsets = [0, 0], sizes = [1, 16], strides = [1, 1]} : vector<1x64xf32> to vector<1x16xf32>
    %177 = vector.broadcast %176 : vector<1x16xf32> to vector<2x16xf32>
    %178 = arith.addf %173, %177 : vector<2x16xf32>
    %179 = math.exp %178 : vector<2x16xf32>
    %c0_127 = arith.constant 0 : index
    %c0_128 = arith.constant 0 : index
    %180 = vector.load %arg1[%c0_127, %c0_128] : memref<2x16xf32, #tpu.memory_space<vmem>>, vector<2x16xf32>
    %181 = arith.mulf %179, %180 : vector<2x16xf32>
    %182 = arith.addf %170, %181 : vector<2x16xf32>
    %cst_129 = arith.constant 1.000000e+00 : f32
    %183 = vector.broadcast %cst_129 : f32 to vector<2x16xf32>
    %184 = arith.addf %183, %178 : vector<2x16xf32>
    %185 = arith.mulf %170, %170 : vector<2x16xf32>
    %186 = arith.subf %184, %185 : vector<2x16xf32>
    %187 = arith.subf %186, %179 : vector<2x16xf32>
    %188 = vector.shape_cast %187 : vector<2x16xf32> to vector<1x2x16xf32>
    %cst_130 = arith.constant dense<0.000000e+00> : vector<1xf32>
    %189 = vector.multi_reduction <add>, %188, %cst_130 [1, 2] : vector<1x2x16xf32> to vector<1xf32>
    %190 = vector.shape_cast %189 : vector<1xf32> to vector<1x1x1xf32>
    %191 = vector.extract %190[0, 0, 0] : f32 from vector<1x1x1xf32>
    %192 = vector.broadcast %191 : f32 to vector<1x1xf32>
    %cst_131 = arith.constant -5.000000e-01 : f32
    %193 = vector.broadcast %cst_131 : f32 to vector<1x1xf32>
    %194 = arith.mulf %193, %192 : vector<1x1xf32>
    %c0_132 = arith.constant 0 : index
    %c0_133 = arith.constant 0 : index
    %195 = vector.load %arg18[%c0_132, %c0_133] : memref<1x1xf32, #tpu.memory_space<vmem>>, vector<1x1xf32>
    tpu.vector_store %arg18[%c0_132, %c0_133], %194 {strides = array<i32>} : memref<1x1xf32, #tpu.memory_space<vmem>>, vector<1x1xf32>,
    %c0_134 = arith.constant 0 : index
    %c0_135 = arith.constant 0 : index
    %c0_136 = arith.constant 0 : index
    %196 = vector.load %arg10[%c0_134, %c0_135, %c0_136] : memref<3x16x48xf32, #tpu.memory_space<vmem>>, vector<1x16x48xf32>
    %197 = vector.shape_cast %196 : vector<1x16x48xf32> to vector<16x48xf32>
    %cst_137 = arith.constant dense<0.000000e+00> : vector<2x48xf32>
    %198 = tpu.matmul %182, %197, %cst_137 {dimension_numbers = #tpu.dot_dimension_numbers<[1], [0], [0], [1], [0, 0, 1, 1], [], []>} : vector<2x16xf32>, vector<16x48xf32>, vector<2x48xf32> -> vector<2x48xf32>
    %c9 = arith.constant 9 : index
    %c0_138 = arith.constant 0 : index
    %c0_139 = arith.constant 0 : index
    %199 = vector.load %arg16[%c9, %c0_138, %c0_139] : memref<18x1x64xf32, #tpu.memory_space<vmem>>, vector<1x1x64xf32>
    %200 = vector.shape_cast %199 : vector<1x1x64xf32> to vector<1x64xf32>
    %201 = vector.extract_strided_slice %200 {offsets = [0, 0], sizes = [1, 48], strides = [1, 1]} : vector<1x64xf32> to vector<1x48xf32>
    %202 = vector.broadcast %201 : vector<1x48xf32> to vector<2x48xf32>
    %203 = arith.addf %198, %202 : vector<2x48xf32>
    %c0_140 = arith.constant 0 : index
    %c0_141 = arith.constant 0 : index
    %c0_142 = arith.constant 0 : index
    %204 = vector.load %arg9[%c0_140, %c0_141, %c0_142] : memref<3x6x2xf32, #tpu.memory_space<vmem>>, vector<1x6x2xf32>
    %205 = vector.shape_cast %204 : vector<1x6x2xf32> to vector<6x2xf32>
    %cst_143 = arith.constant dense<0.000000e+00> : vector<6x48xf32>
    %206 = tpu.matmul %205, %203, %cst_143 {dimension_numbers = #tpu.dot_dimension_numbers<[1], [0], [0], [1], [0, 0, 1, 1], [], []>} : vector<6x2xf32>, vector<2x48xf32>, vector<6x48xf32> -> vector<6x48xf32>
    %c1_144 = arith.constant 1 : index
    %c0_145 = arith.constant 0 : index
    %c0_146 = arith.constant 0 : index
    %207 = vector.load %arg10[%c1_144, %c0_145, %c0_146] : memref<3x16x48xf32, #tpu.memory_space<vmem>>, vector<1x16x48xf32>
    %208 = vector.shape_cast %207 : vector<1x16x48xf32> to vector<16x48xf32>
    %cst_147 = arith.constant dense<0.000000e+00> : vector<2x48xf32>
    %209 = tpu.matmul %182, %208, %cst_147 {dimension_numbers = #tpu.dot_dimension_numbers<[1], [0], [0], [1], [0, 0, 1, 1], [], []>} : vector<2x16xf32>, vector<16x48xf32>, vector<2x48xf32> -> vector<2x48xf32>
    %c10 = arith.constant 10 : index
    %c0_148 = arith.constant 0 : index
    %c0_149 = arith.constant 0 : index
    %210 = vector.load %arg16[%c10, %c0_148, %c0_149] : memref<18x1x64xf32, #tpu.memory_space<vmem>>, vector<1x1x64xf32>
    %211 = vector.shape_cast %210 : vector<1x1x64xf32> to vector<1x64xf32>
    %212 = vector.extract_strided_slice %211 {offsets = [0, 0], sizes = [1, 48], strides = [1, 1]} : vector<1x64xf32> to vector<1x48xf32>
    %213 = vector.broadcast %212 : vector<1x48xf32> to vector<2x48xf32>
    %214 = arith.addf %209, %213 : vector<2x48xf32>
    %c1_150 = arith.constant 1 : index
    %c0_151 = arith.constant 0 : index
    %c0_152 = arith.constant 0 : index
    %215 = vector.load %arg9[%c1_150, %c0_151, %c0_152] : memref<3x6x2xf32, #tpu.memory_space<vmem>>, vector<1x6x2xf32>
    %216 = vector.shape_cast %215 : vector<1x6x2xf32> to vector<6x2xf32>
    %cst_153 = arith.constant dense<0.000000e+00> : vector<6x48xf32>
    %217 = tpu.matmul %216, %214, %cst_153 {dimension_numbers = #tpu.dot_dimension_numbers<[1], [0], [0], [1], [0, 0, 1, 1], [], []>} : vector<6x2xf32>, vector<2x48xf32>, vector<6x48xf32> -> vector<6x48xf32>
    %218 = arith.addf %206, %217 : vector<6x48xf32>
    %c2_154 = arith.constant 2 : index
    %c0_155 = arith.constant 0 : index
    %c0_156 = arith.constant 0 : index
    %219 = vector.load %arg10[%c2_154, %c0_155, %c0_156] : memref<3x16x48xf32, #tpu.memory_space<vmem>>, vector<1x16x48xf32>
    %220 = vector.shape_cast %219 : vector<1x16x48xf32> to vector<16x48xf32>
    %cst_157 = arith.constant dense<0.000000e+00> : vector<2x48xf32>
    %221 = tpu.matmul %182, %220, %cst_157 {dimension_numbers = #tpu.dot_dimension_numbers<[1], [0], [0], [1], [0, 0, 1, 1], [], []>} : vector<2x16xf32>, vector<16x48xf32>, vector<2x48xf32> -> vector<2x48xf32>
    %c11 = arith.constant 11 : index
    %c0_158 = arith.constant 0 : index
    %c0_159 = arith.constant 0 : index
    %222 = vector.load %arg16[%c11, %c0_158, %c0_159] : memref<18x1x64xf32, #tpu.memory_space<vmem>>, vector<1x1x64xf32>
    %223 = vector.shape_cast %222 : vector<1x1x64xf32> to vector<1x64xf32>
    %224 = vector.extract_strided_slice %223 {offsets = [0, 0], sizes = [1, 48], strides = [1, 1]} : vector<1x64xf32> to vector<1x48xf32>
    %225 = vector.broadcast %224 : vector<1x48xf32> to vector<2x48xf32>
    %226 = arith.addf %221, %225 : vector<2x48xf32>
    %c2_160 = arith.constant 2 : index
    %c0_161 = arith.constant 0 : index
    %c0_162 = arith.constant 0 : index
    %227 = vector.load %arg9[%c2_160, %c0_161, %c0_162] : memref<3x6x2xf32, #tpu.memory_space<vmem>>, vector<1x6x2xf32>
    %228 = vector.shape_cast %227 : vector<1x6x2xf32> to vector<6x2xf32>
    %cst_163 = arith.constant dense<0.000000e+00> : vector<6x48xf32>
    %229 = tpu.matmul %228, %226, %cst_163 {dimension_numbers = #tpu.dot_dimension_numbers<[1], [0], [0], [1], [0, 0, 1, 1], [], []>} : vector<6x2xf32>, vector<2x48xf32>, vector<6x48xf32> -> vector<6x48xf32>
    %230 = arith.addf %218, %229 : vector<6x48xf32>
    %cst_164 = arith.constant 0.000000e+00 : f32
    %231 = vector.broadcast %cst_164 : f32 to vector<6x48xf32>
    %232 = arith.maximumf %230, %231 : vector<6x48xf32>
    %c0_165 = arith.constant 0 : index
    %c0_166 = arith.constant 0 : index
    %c0_167 = arith.constant 0 : index
    %233 = vector.load %arg11[%c0_165, %c0_166, %c0_167] : memref<3x14x6xf32, #tpu.memory_space<vmem>>, vector<1x14x6xf32>
    %234 = vector.shape_cast %233 : vector<1x14x6xf32> to vector<14x6xf32>
    %cst_168 = arith.constant dense<0.000000e+00> : vector<14x48xf32>
    %235 = tpu.matmul %234, %232, %cst_168 {dimension_numbers = #tpu.dot_dimension_numbers<[1], [0], [0], [1], [0, 0, 1, 1], [], []>} : vector<14x6xf32>, vector<6x48xf32>, vector<14x48xf32> -> vector<14x48xf32>
    %c0_169 = arith.constant 0 : index
    %c0_170 = arith.constant 0 : index
    %c0_171 = arith.constant 0 : index
    %236 = vector.load %arg12[%c0_169, %c0_170, %c0_171] : memref<3x48x56xf32, #tpu.memory_space<vmem>>, vector<1x48x56xf32>
    %237 = vector.shape_cast %236 : vector<1x48x56xf32> to vector<48x56xf32>
    %cst_172 = arith.constant dense<0.000000e+00> : vector<14x56xf32>
    %238 = tpu.matmul %235, %237, %cst_172 {dimension_numbers = #tpu.dot_dimension_numbers<[1], [0], [0], [1], [0, 0, 1, 1], [], []>} : vector<14x48xf32>, vector<48x56xf32>, vector<14x56xf32> -> vector<14x56xf32>
    %c1_173 = arith.constant 1 : index
    %c0_174 = arith.constant 0 : index
    %c0_175 = arith.constant 0 : index
    %239 = vector.load %arg11[%c1_173, %c0_174, %c0_175] : memref<3x14x6xf32, #tpu.memory_space<vmem>>, vector<1x14x6xf32>
    %240 = vector.shape_cast %239 : vector<1x14x6xf32> to vector<14x6xf32>
    %cst_176 = arith.constant dense<0.000000e+00> : vector<14x48xf32>
    %241 = tpu.matmul %240, %232, %cst_176 {dimension_numbers = #tpu.dot_dimension_numbers<[1], [0], [0], [1], [0, 0, 1, 1], [], []>} : vector<14x6xf32>, vector<6x48xf32>, vector<14x48xf32> -> vector<14x48xf32>
    %c1_177 = arith.constant 1 : index
    %c0_178 = arith.constant 0 : index
    %c0_179 = arith.constant 0 : index
    %242 = vector.load %arg12[%c1_177, %c0_178, %c0_179] : memref<3x48x56xf32, #tpu.memory_space<vmem>>, vector<1x48x56xf32>
    %243 = vector.shape_cast %242 : vector<1x48x56xf32> to vector<48x56xf32>
    %cst_180 = arith.constant dense<0.000000e+00> : vector<14x56xf32>
    %244 = tpu.matmul %241, %243, %cst_180 {dimension_numbers = #tpu.dot_dimension_numbers<[1], [0], [0], [1], [0, 0, 1, 1], [], []>} : vector<14x48xf32>, vector<48x56xf32>, vector<14x56xf32> -> vector<14x56xf32>
    %245 = arith.addf %238, %244 : vector<14x56xf32>
    %c2_181 = arith.constant 2 : index
    %c0_182 = arith.constant 0 : index
    %c0_183 = arith.constant 0 : index
    %246 = vector.load %arg11[%c2_181, %c0_182, %c0_183] : memref<3x14x6xf32, #tpu.memory_space<vmem>>, vector<1x14x6xf32>
    %247 = vector.shape_cast %246 : vector<1x14x6xf32> to vector<14x6xf32>
    %cst_184 = arith.constant dense<0.000000e+00> : vector<14x48xf32>
    %248 = tpu.matmul %247, %232, %cst_184 {dimension_numbers = #tpu.dot_dimension_numbers<[1], [0], [0], [1], [0, 0, 1, 1], [], []>} : vector<14x6xf32>, vector<6x48xf32>, vector<14x48xf32> -> vector<14x48xf32>
    %c2_185 = arith.constant 2 : index
    %c0_186 = arith.constant 0 : index
    %c0_187 = arith.constant 0 : index
    %249 = vector.load %arg12[%c2_185, %c0_186, %c0_187] : memref<3x48x56xf32, #tpu.memory_space<vmem>>, vector<1x48x56xf32>
    %250 = vector.shape_cast %249 : vector<1x48x56xf32> to vector<48x56xf32>
    %cst_188 = arith.constant dense<0.000000e+00> : vector<14x56xf32>
    %251 = tpu.matmul %248, %250, %cst_188 {dimension_numbers = #tpu.dot_dimension_numbers<[1], [0], [0], [1], [0, 0, 1, 1], [], []>} : vector<14x48xf32>, vector<48x56xf32>, vector<14x56xf32> -> vector<14x56xf32>
    %252 = arith.addf %245, %251 : vector<14x56xf32>
    %c12 = arith.constant 12 : index
    %c0_189 = arith.constant 0 : index
    %c0_190 = arith.constant 0 : index
    %253 = vector.load %arg16[%c12, %c0_189, %c0_190] : memref<18x1x64xf32, #tpu.memory_space<vmem>>, vector<1x1x64xf32>
    %254 = vector.shape_cast %253 : vector<1x1x64xf32> to vector<1x64xf32>
    %255 = vector.extract_strided_slice %254 {offsets = [0, 0], sizes = [1, 56], strides = [1, 1]} : vector<1x64xf32> to vector<1x56xf32>
    %256 = vector.broadcast %255 : vector<1x56xf32> to vector<14x56xf32>
    %257 = arith.addf %252, %256 : vector<14x56xf32>
    %c2_191 = arith.constant 2 : index
    %c0_192 = arith.constant 0 : index
    %c0_193 = arith.constant 0 : index
    %258 = vector.load %arg15[%c2_191, %c0_192, %c0_193] : memref<4x64x64xf32, #tpu.memory_space<vmem>>, vector<1x64x64xf32>
    %259 = vector.shape_cast %258 : vector<1x64x64xf32> to vector<64x64xf32>
    %260 = vector.extract_strided_slice %259 {offsets = [0, 0], sizes = [56, 8], strides = [1, 1]} : vector<64x64xf32> to vector<56x8xf32>
    %cst_194 = arith.constant dense<0.000000e+00> : vector<14x8xf32>
    %261 = tpu.matmul %257, %260, %cst_194 {dimension_numbers = #tpu.dot_dimension_numbers<[1], [0], [0], [1], [0, 0, 1, 1], [], []>} : vector<14x56xf32>, vector<56x8xf32>, vector<14x8xf32> -> vector<14x8xf32>
    %262 = arith.mulf %257, %257 : vector<14x56xf32>
    %cst_195 = arith.constant dense<0.000000e+00> : vector<14x8xf32>
    %263 = tpu.matmul %262, %260, %cst_195 {dimension_numbers = #tpu.dot_dimension_numbers<[1], [0], [0], [1], [0, 0, 1, 1], [], []>} : vector<14x56xf32>, vector<56x8xf32>, vector<14x8xf32> -> vector<14x8xf32>
    %cst_196 = arith.constant dense<0.000000e+00> : vector<8xf32>
    %264 = vector.multi_reduction <add>, %261, %cst_196 [0] : vector<14x8xf32> to vector<8xf32>
    %265 = vector.shape_cast %264 : vector<8xf32> to vector<1x8xf32>
    %cst_197 = arith.constant 0.0102040814 : f32
    %266 = vector.broadcast %cst_197 : f32 to vector<1x8xf32>
    %267 = arith.mulf %265, %266 : vector<1x8xf32>
    %cst_198 = arith.constant dense<0.000000e+00> : vector<8xf32>
    %268 = vector.multi_reduction <add>, %263, %cst_198 [0] : vector<14x8xf32> to vector<8xf32>
    %269 = vector.shape_cast %268 : vector<8xf32> to vector<1x8xf32>
    %cst_199 = arith.constant 0.0102040814 : f32
    %270 = vector.broadcast %cst_199 : f32 to vector<1x8xf32>
    %271 = arith.mulf %269, %270 : vector<1x8xf32>
    %272 = arith.mulf %267, %267 : vector<1x8xf32>
    %273 = arith.subf %271, %272 : vector<1x8xf32>
    %cst_200 = arith.constant 0.000000e+00 : f32
    %274 = vector.broadcast %cst_200 : f32 to vector<1x8xf32>
    %275 = arith.maximumf %273, %274 : vector<1x8xf32>
    %c13 = arith.constant 13 : index
    %c0_201 = arith.constant 0 : index
    %c0_202 = arith.constant 0 : index
    %276 = vector.load %arg16[%c13, %c0_201, %c0_202] : memref<18x1x64xf32, #tpu.memory_space<vmem>>, vector<1x1x64xf32>
    %277 = vector.shape_cast %276 : vector<1x1x64xf32> to vector<1x64xf32>
    %278 = vector.extract_strided_slice %277 {offsets = [0, 0], sizes = [1, 8], strides = [1, 1]} : vector<1x64xf32> to vector<1x8xf32>
    %cst_203 = arith.constant 9.99999974E-6 : f32
    %279 = vector.broadcast %cst_203 : f32 to vector<1x8xf32>
    %280 = arith.addf %275, %279 : vector<1x8xf32>
    %281 = math.rsqrt %280 : vector<1x8xf32>
    %282 = arith.mulf %278, %281 : vector<1x8xf32>
    %c14 = arith.constant 14 : index
    %c0_204 = arith.constant 0 : index
    %c0_205 = arith.constant 0 : index
    %283 = vector.load %arg16[%c14, %c0_204, %c0_205] : memref<18x1x64xf32, #tpu.memory_space<vmem>>, vector<1x1x64xf32>
    %284 = vector.shape_cast %283 : vector<1x1x64xf32> to vector<1x64xf32>
    %285 = vector.extract_strided_slice %284 {offsets = [0, 0], sizes = [1, 8], strides = [1, 1]} : vector<1x64xf32> to vector<1x8xf32>
    %286 = arith.mulf %267, %282 : vector<1x8xf32>
    %287 = arith.subf %285, %286 : vector<1x8xf32>
    %288 = tpu.concatenate %282, %282, %282, %282, %282, %282, %282 in 1 : vector<1x8xf32>, vector<1x8xf32>, vector<1x8xf32>, vector<1x8xf32>, vector<1x8xf32>, vector<1x8xf32>, vector<1x8xf32> -> vector<1x56xf32>
    %289 = tpu.concatenate %287, %287, %287, %287, %287, %287, %287 in 1 : vector<1x8xf32>, vector<1x8xf32>, vector<1x8xf32>, vector<1x8xf32>, vector<1x8xf32>, vector<1x8xf32>, vector<1x8xf32> -> vector<1x56xf32>
    %290 = vector.broadcast %288 : vector<1x56xf32> to vector<14x56xf32>
    %291 = arith.mulf %257, %290 : vector<14x56xf32>
    %292 = vector.broadcast %289 : vector<1x56xf32> to vector<14x56xf32>
    %293 = arith.addf %291, %292 : vector<14x56xf32>
    %cst_206 = arith.constant 0.000000e+00 : f32
    %294 = vector.broadcast %cst_206 : f32 to vector<14x56xf32>
    %295 = arith.maximumf %293, %294 : vector<14x56xf32>
    %c0_207 = arith.constant 0 : index
    %c0_208 = arith.constant 0 : index
    %c0_209 = arith.constant 0 : index
    %296 = vector.load %arg13[%c0_207, %c0_208, %c0_209] : memref<4x32x14xf32, #tpu.memory_space<vmem>>, vector<1x32x14xf32>
    %297 = vector.shape_cast %296 : vector<1x32x14xf32> to vector<32x14xf32>
    %cst_210 = arith.constant dense<0.000000e+00> : vector<32x56xf32>
    %298 = tpu.matmul %297, %295, %cst_210 {dimension_numbers = #tpu.dot_dimension_numbers<[1], [0], [0], [1], [0, 0, 1, 1], [], []>} : vector<32x14xf32>, vector<14x56xf32>, vector<32x56xf32> -> vector<32x56xf32>
    %c0_211 = arith.constant 0 : index
    %c0_212 = arith.constant 0 : index
    %c0_213 = arith.constant 0 : index
    %299 = vector.load %arg14[%c0_211, %c0_212, %c0_213] : memref<4x56x64xf32, #tpu.memory_space<vmem>>, vector<1x56x64xf32>
    %300 = vector.shape_cast %299 : vector<1x56x64xf32> to vector<56x64xf32>
    %cst_214 = arith.constant dense<0.000000e+00> : vector<32x64xf32>
    %301 = tpu.matmul %298, %300, %cst_214 {dimension_numbers = #tpu.dot_dimension_numbers<[1], [0], [0], [1], [0, 0, 1, 1], [], []>} : vector<32x56xf32>, vector<56x64xf32>, vector<32x64xf32> -> vector<32x64xf32>
    %c1_215 = arith.constant 1 : index
    %c0_216 = arith.constant 0 : index
    %c0_217 = arith.constant 0 : index
    %302 = vector.load %arg13[%c1_215, %c0_216, %c0_217] : memref<4x32x14xf32, #tpu.memory_space<vmem>>, vector<1x32x14xf32>
    %303 = vector.shape_cast %302 : vector<1x32x14xf32> to vector<32x14xf32>
    %cst_218 = arith.constant dense<0.000000e+00> : vector<32x56xf32>
    %304 = tpu.matmul %303, %295, %cst_218 {dimension_numbers = #tpu.dot_dimension_numbers<[1], [0], [0], [1], [0, 0, 1, 1], [], []>} : vector<32x14xf32>, vector<14x56xf32>, vector<32x56xf32> -> vector<32x56xf32>
    %c1_219 = arith.constant 1 : index
    %c0_220 = arith.constant 0 : index
    %c0_221 = arith.constant 0 : index
    %305 = vector.load %arg14[%c1_219, %c0_220, %c0_221] : memref<4x56x64xf32, #tpu.memory_space<vmem>>, vector<1x56x64xf32>
    %306 = vector.shape_cast %305 : vector<1x56x64xf32> to vector<56x64xf32>
    %cst_222 = arith.constant dense<0.000000e+00> : vector<32x64xf32>
    %307 = tpu.matmul %304, %306, %cst_222 {dimension_numbers = #tpu.dot_dimension_numbers<[1], [0], [0], [1], [0, 0, 1, 1], [], []>} : vector<32x56xf32>, vector<56x64xf32>, vector<32x64xf32> -> vector<32x64xf32>
    %308 = arith.addf %301, %307 : vector<32x64xf32>
    %c2_223 = arith.constant 2 : index
    %c0_224 = arith.constant 0 : index
    %c0_225 = arith.constant 0 : index
    %309 = vector.load %arg13[%c2_223, %c0_224, %c0_225] : memref<4x32x14xf32, #tpu.memory_space<vmem>>, vector<1x32x14xf32>
    %310 = vector.shape_cast %309 : vector<1x32x14xf32> to vector<32x14xf32>
    %cst_226 = arith.constant dense<0.000000e+00> : vector<32x56xf32>
    %311 = tpu.matmul %310, %295, %cst_226 {dimension_numbers = #tpu.dot_dimension_numbers<[1], [0], [0], [1], [0, 0, 1, 1], [], []>} : vector<32x14xf32>, vector<14x56xf32>, vector<32x56xf32> -> vector<32x56xf32>
    %c2_227 = arith.constant 2 : index
    %c0_228 = arith.constant 0 : index
    %c0_229 = arith.constant 0 : index
    %312 = vector.load %arg14[%c2_227, %c0_228, %c0_229] : memref<4x56x64xf32, #tpu.memory_space<vmem>>, vector<1x56x64xf32>
    %313 = vector.shape_cast %312 : vector<1x56x64xf32> to vector<56x64xf32>
    %cst_230 = arith.constant dense<0.000000e+00> : vector<32x64xf32>
    %314 = tpu.matmul %311, %313, %cst_230 {dimension_numbers = #tpu.dot_dimension_numbers<[1], [0], [0], [1], [0, 0, 1, 1], [], []>} : vector<32x56xf32>, vector<56x64xf32>, vector<32x64xf32> -> vector<32x64xf32>
    %315 = arith.addf %308, %314 : vector<32x64xf32>
    %c3_231 = arith.constant 3 : index
    %c0_232 = arith.constant 0 : index
    %c0_233 = arith.constant 0 : index
    %316 = vector.load %arg13[%c3_231, %c0_232, %c0_233] : memref<4x32x14xf32, #tpu.memory_space<vmem>>, vector<1x32x14xf32>
    %317 = vector.shape_cast %316 : vector<1x32x14xf32> to vector<32x14xf32>
    %cst_234 = arith.constant dense<0.000000e+00> : vector<32x56xf32>
    %318 = tpu.matmul %317, %295, %cst_234 {dimension_numbers = #tpu.dot_dimension_numbers<[1], [0], [0], [1], [0, 0, 1, 1], [], []>} : vector<32x14xf32>, vector<14x56xf32>, vector<32x56xf32> -> vector<32x56xf32>
    %c3_235 = arith.constant 3 : index
    %c0_236 = arith.constant 0 : index
    %c0_237 = arith.constant 0 : index
    %319 = vector.load %arg14[%c3_235, %c0_236, %c0_237] : memref<4x56x64xf32, #tpu.memory_space<vmem>>, vector<1x56x64xf32>
    %320 = vector.shape_cast %319 : vector<1x56x64xf32> to vector<56x64xf32>
    %cst_238 = arith.constant dense<0.000000e+00> : vector<32x64xf32>
    %321 = tpu.matmul %318, %320, %cst_238 {dimension_numbers = #tpu.dot_dimension_numbers<[1], [0], [0], [1], [0, 0, 1, 1], [], []>} : vector<32x56xf32>, vector<56x64xf32>, vector<32x64xf32> -> vector<32x64xf32>
    %322 = arith.addf %315, %321 : vector<32x64xf32>
    %c15 = arith.constant 15 : index
    %c0_239 = arith.constant 0 : index
    %c0_240 = arith.constant 0 : index
    %323 = vector.load %arg16[%c15, %c0_239, %c0_240] : memref<18x1x64xf32, #tpu.memory_space<vmem>>, vector<1x1x64xf32>
    %324 = vector.shape_cast %323 : vector<1x1x64xf32> to vector<1x64xf32>
    %325 = vector.broadcast %324 : vector<1x64xf32> to vector<32x64xf32>
    %326 = arith.addf %322, %325 : vector<32x64xf32>
    %c3_241 = arith.constant 3 : index
    %c0_242 = arith.constant 0 : index
    %c0_243 = arith.constant 0 : index
    %327 = vector.load %arg15[%c3_241, %c0_242, %c0_243] : memref<4x64x64xf32, #tpu.memory_space<vmem>>, vector<1x64x64xf32>
    %328 = vector.shape_cast %327 : vector<1x64x64xf32> to vector<64x64xf32>
    %329 = vector.extract_strided_slice %328 {offsets = [0, 0], sizes = [64, 4], strides = [1, 1]} : vector<64x64xf32> to vector<64x4xf32>
    %cst_244 = arith.constant dense<0.000000e+00> : vector<32x4xf32>
    %330 = tpu.matmul %326, %329, %cst_244 {dimension_numbers = #tpu.dot_dimension_numbers<[1], [0], [0], [1], [0, 0, 1, 1], [], []>} : vector<32x64xf32>, vector<64x4xf32>, vector<32x4xf32> -> vector<32x4xf32>
    %331 = arith.mulf %326, %326 : vector<32x64xf32>
    %cst_245 = arith.constant dense<0.000000e+00> : vector<32x4xf32>
    %332 = tpu.matmul %331, %329, %cst_245 {dimension_numbers = #tpu.dot_dimension_numbers<[1], [0], [0], [1], [0, 0, 1, 1], [], []>} : vector<32x64xf32>, vector<64x4xf32>, vector<32x4xf32> -> vector<32x4xf32>
    %cst_246 = arith.constant dense<0.000000e+00> : vector<4xf32>
    %333 = vector.multi_reduction <add>, %330, %cst_246 [0] : vector<32x4xf32> to vector<4xf32>
    %334 = vector.shape_cast %333 : vector<4xf32> to vector<1x4xf32>
    %cst_247 = arith.constant 0.001953125 : f32
    %335 = vector.broadcast %cst_247 : f32 to vector<1x4xf32>
    %336 = arith.mulf %334, %335 : vector<1x4xf32>
    %cst_248 = arith.constant dense<0.000000e+00> : vector<4xf32>
    %337 = vector.multi_reduction <add>, %332, %cst_248 [0] : vector<32x4xf32> to vector<4xf32>
    %338 = vector.shape_cast %337 : vector<4xf32> to vector<1x4xf32>
    %cst_249 = arith.constant 0.001953125 : f32
    %339 = vector.broadcast %cst_249 : f32 to vector<1x4xf32>
    %340 = arith.mulf %338, %339 : vector<1x4xf32>
    %341 = arith.mulf %336, %336 : vector<1x4xf32>
    %342 = arith.subf %340, %341 : vector<1x4xf32>
    %cst_250 = arith.constant 0.000000e+00 : f32
    %343 = vector.broadcast %cst_250 : f32 to vector<1x4xf32>
    %344 = arith.maximumf %342, %343 : vector<1x4xf32>
    %c16 = arith.constant 16 : index
    %c0_251 = arith.constant 0 : index
    %c0_252 = arith.constant 0 : index
    %345 = vector.load %arg16[%c16, %c0_251, %c0_252] : memref<18x1x64xf32, #tpu.memory_space<vmem>>, vector<1x1x64xf32>
    %346 = vector.shape_cast %345 : vector<1x1x64xf32> to vector<1x64xf32>
    %347 = vector.extract_strided_slice %346 {offsets = [0, 0], sizes = [1, 4], strides = [1, 1]} : vector<1x64xf32> to vector<1x4xf32>
    %cst_253 = arith.constant 9.99999974E-6 : f32
    %348 = vector.broadcast %cst_253 : f32 to vector<1x4xf32>
    %349 = arith.addf %344, %348 : vector<1x4xf32>
    %350 = math.rsqrt %349 : vector<1x4xf32>
    %351 = arith.mulf %347, %350 : vector<1x4xf32>
    %c17 = arith.constant 17 : index
    %c0_254 = arith.constant 0 : index
    %c0_255 = arith.constant 0 : index
    %352 = vector.load %arg16[%c17, %c0_254, %c0_255] : memref<18x1x64xf32, #tpu.memory_space<vmem>>, vector<1x1x64xf32>
    %353 = vector.shape_cast %352 : vector<1x1x64xf32> to vector<1x64xf32>
    %354 = vector.extract_strided_slice %353 {offsets = [0, 0], sizes = [1, 4], strides = [1, 1]} : vector<1x64xf32> to vector<1x4xf32>
    %355 = arith.mulf %336, %351 : vector<1x4xf32>
    %356 = arith.subf %354, %355 : vector<1x4xf32>
    %357 = tpu.concatenate %351, %351, %351, %351, %351, %351, %351, %351, %351, %351, %351, %351, %351, %351, %351, %351 in 1 : vector<1x4xf32>, vector<1x4xf32>, vector<1x4xf32>, vector<1x4xf32>, vector<1x4xf32>, vector<1x4xf32>, vector<1x4xf32>, vector<1x4xf32>, vector<1x4xf32>, vector<1x4xf32>, vector<1x4xf32>, vector<1x4xf32>, vector<1x4xf32>, vector<1x4xf32>, vector<1x4xf32>, vector<1x4xf32> -> vector<1x64xf32>
    %358 = tpu.concatenate %356, %356, %356, %356, %356, %356, %356, %356, %356, %356, %356, %356, %356, %356, %356, %356 in 1 : vector<1x4xf32>, vector<1x4xf32>, vector<1x4xf32>, vector<1x4xf32>, vector<1x4xf32>, vector<1x4xf32>, vector<1x4xf32>, vector<1x4xf32>, vector<1x4xf32>, vector<1x4xf32>, vector<1x4xf32>, vector<1x4xf32>, vector<1x4xf32>, vector<1x4xf32>, vector<1x4xf32>, vector<1x4xf32> -> vector<1x64xf32>
    %359 = vector.broadcast %357 : vector<1x64xf32> to vector<32x64xf32>
    %360 = arith.mulf %326, %359 : vector<32x64xf32>
    %361 = vector.broadcast %358 : vector<1x64xf32> to vector<32x64xf32>
    %362 = arith.addf %360, %361 : vector<32x64xf32>
    %363 = arith.negf %362 : vector<32x64xf32>
    %364 = math.exp %363 : vector<32x64xf32>
    %cst_256 = arith.constant 1.000000e+00 : f32
    %365 = vector.broadcast %cst_256 : f32 to vector<32x64xf32>
    %366 = arith.addf %365, %364 : vector<32x64xf32>
    %367 = arith.divf %365, %366 : vector<32x64xf32>
    %c0_257 = arith.constant 0 : index
    %c0_258 = arith.constant 0 : index
    %368 = vector.load %arg17[%c0_257, %c0_258] : memref<32x64xf32, #tpu.memory_space<vmem>>, vector<32x64xf32>
    tpu.vector_store %arg17[%c0_257, %c0_258], %367 {strides = array<i32>} : memref<32x64xf32, #tpu.memory_space<vmem>>, vector<32x64xf32>,
    return
  }
}

</mosaic_0001>

<bundles_post_ra>
// kernel: var_next_forward.1
= control target key start
LH: loop header
LB: loop body
LE: loop exit
PB: predicated region body
PF: predicated region fallthrough
CT: control target
= control target key end

     0   :  { %s7714_s0 = inlined_call_operand.vmem [shape: f32[32,64], index: 0, kind: input, shape index: {}]   ;;  %s7715_s1 = inlined_call_operand.vmem [shape: f32[2,16], index: 1, kind: input, shape index: {}]   ;;  %s7716_s2 = inlined_call_operand.vmem [shape: f32[3,14,32], index: 2, kind: input, shape index: {}]   ;;  %s7717_s3 = inlined_call_operand.vmem [shape: f32[3,64,56], index: 3, kind: input, shape index: {}]   ;;  %s7718_s4 = inlined_call_operand.vmem [shape: f32[3,6,14], index: 4, kind: input, shape index: {}]   ;;  %s7719_s5 = inlined_call_operand.vmem [shape: f32[3,56,48], index: 5, kind: input, shape index: {}]   ;;  %s7720_s6 = inlined_call_operand.vmem [shape: f32[3,2,6], index: 6, kind: input, shape index: {}]   ;;  %s7721_s7 = inlined_call_operand.vmem [shape: f32[3,48,32], index: 7, kind: input, shape index: {}]   ;;  %s7722_s8 = inlined_call_operand.vmem [shape: f32[2,32,16], index: 8, kind: input, shape index: {}]   ;;  %s7723_s9 = inlined_call_operand.vmem [shape: f32[3,6,2], index: 9, kind: input, shape index: {}]   ;;  %s7724_s10 = inlined_call_operand.vmem [shape: f32[3,16,48], index: 10, kind: input, shape index: {}]   ;;  %s7725_s11 = inlined_call_operand.vmem [shape: f32[3,14,6], index: 11, kind: input, shape index: {}]   ;;  %s7726_s12 = inlined_call_operand.vmem [shape: f32[3,48,56], index: 12, kind: input, shape index: {}]   ;;  %s7727_s13 = inlined_call_operand.vmem [shape: f32[4,32,14], index: 13, kind: input, shape index: {}]   ;;  %s7728_s14 = inlined_call_operand.vmem [shape: f32[4,56,64], index: 14, kind: input, shape index: {}]   ;;  %s7729_s15 = inlined_call_operand.vmem [shape: f32[4,64,64], index: 15, kind: input, shape index: {}]   ;;  %s7730_s16 = inlined_call_operand.vmem [shape: f32[18,1,64], index: 16, kind: input, shape index: {}]   ;;  %s7731_s17 = inlined_call_operand.vmem [shape: f32[32,64], index: 17, kind: output, shape index: {0}]   ;;  %s7732_s18 = inlined_call_operand.hbm [shape: f32[1,1], index: 18, kind: output, shape index: {1}]  }
   0x1   :  { %7735 = sst [smem:[#allocation5_spill]] %s7714_s0 }
   0x2   :  { %7736 = sst [smem:[#allocation6_spill]] %s7715_s1 }
   0x3   :  { %7737 = sst [smem:[#allocation7_spill]] %s7716_s2 }
   0x4   :  { %s7738_s29 = sld [smem:[#allocation5_spill]]  ;;  %vm65_vm0 = vcmask 261120   ;;  %s7739_s23 = sld [smem:[#allocation7_spill]]  ;;  %v4846_v8 = vld [vmem:[%s7717_s3 + $0x40] sm:$0xff]  ;;  %v4847_v9 = vld [vmem:[%s7717_s3 + $0x48] sm:$0xff] }
   0x5   :  { %v6037_v10 = vpack.c.bf16 %v4847_v9, %v4846_v8 }
   0xa   :  { %v59_v0 = vld [vmem:[%s7738_s29] sm:$0xff]  ;;  %v60_v1 = vld [vmem:[%s7738_s29 + $0x8] sm:$0xff]  ;;  %v61_v2 = vld [vmem:[%s7738_s29 + $0x10] sm:$0xff] }
   0xb   :  { %v6021_v3 = vpack.c.bf16 %v60_v1, %v59_v0  ;;  %v62_v4 = vld [vmem:[%s7738_s29 + $0x18] sm:$0xff]  ;;  %v4842_v5 = vld [vmem:[%s7739_s23 + $0x10] sm:$0xff]  ;;  %v63_v7 = vld [vmem:[%s7739_s23] sm:$0xff] }
   0xc   :  { %v6025_v6 = vpack.c.bf16 %v62_v4, %v61_v2  ;;  %5438 = vmatprep.mubr.msk.f32.mxu1 %vm65_vm0, %v4842_v5  ;;  %5427 = vmatprep.mubr.msk.f32.mxu0 %vm65_vm0, %v63_v7 }
   0xd   :  { %6030 = vmatprep.subr.bf16.mxu1 %v6021_v3  ;;  %6022 = vmatprep.subr.bf16.mxu0 %v6021_v3 }
   0xe   :  { %6032 = vmatpush3.bf16.msra.mxu1 %v6021_v3  ;;  %6024 = vmatpush3.bf16.msra.mxu0 %v6021_v3 }
   0xf   :  { %6034 = vmatprep.subr.bf16.mxu1 %v6025_v6  ;;  %6026 = vmatprep.subr.bf16.mxu0 %v6025_v6 }
  0x10   :  { %24 = vsyncpa [#allocation3], 0  ;;  %v4848_v11 = vld [vmem:[%s7717_s3 + $0x50] sm:$0xff]  ;;  %v4849_v12 = vld [vmem:[%s7717_s3 + $0x58] sm:$0xff]  ;;  %vm248_vm1 = vcmask 523264   ;;  %vm603_vm2 = vcmask 457728  }
  0x11   :  { %v4843_v13 = vld [vmem:[%s7739_s23 + $0x18] sm:$0x3f]  ;;  %v64_v14 = vld [vmem:[%s7739_s23 + $0x8] sm:$0x3f]  ;;  %v4858_v15 = vld [vmem:[%s7739_s23 + $0x20] sm:$0xff]  ;;  %v6041_v16 = vpack.c.bf16 %v4849_v12, %v4848_v11  ;;  %vm770_vm3 = vcmask 62464  }
  0x12   :  { %6036 = vmatpush3.bf16.msra.mxu1 %v6025_v6  ;;  %6028 = vmatpush3.bf16.msra.mxu0 %v6025_v6  ;;  %v4850_v17 = vld [vmem:[%s7717_s3 + $0x60] sm:$0xff]  ;;  %v4851_v18 = vld [vmem:[%s7717_s3 + $0x68] sm:$0xff]  ;;  %v4852_v20 = vld [vmem:[%s7717_s3 + $0x70] sm:$0xff]  ;;  %vm768_vm4 = vcmask 64512   ;;  %s6482_s27 = smov 24   ;;  %s6483_s28 = smov 8  }
  0x13   :  { %6070 = vmatprep.subr.bf16.mxu1 %v6021_v3  ;;  %6038 = vmatprep.subr.bf16.mxu0 %v6037_v10  ;;  %v6045_v19 = vpack.c.bf16 %v4851_v18, %v4850_v17  ;;  %v4853_v21 = vld [vmem:[%s7717_s3 + $0x78] sm:$0xff]  ;;  %v4859_v22 = vld [vmem:[%s7739_s23 + $0x28] sm:$0x3f]  ;;  %v147_v24 = vld [vmem:[%s7717_s3] sm:$0xff]  ;;  %s6484_s30 = smov 16   ;;  %s6485_s29 = smov 32  }
  0x14   :  { %v6049_v23 = vpack.c.bf16 %v4853_v21, %v4852_v20  ;;  %v148_v25 = vld [vmem:[%s7717_s3 + $0x8] sm:$0xff]  ;;  %v596_v27 = vld [vmem:[%s7729_s15] sm:$0xff]  ;;  %v598_v29 = vld [vmem:[%s7729_s15 + $0x10] sm:$0xff]  ;;  %s6486_s0 = smov 40   ;;  %s6487_s19 = smov 48   ;;  %vm6489_vm5 = vmmov 0  }
  0x15   :  { %5439 = vmatmul.mubr.msk.f32.vlgmr.msra.gmra.mrb[0].mxu1 %vm65_vm0, %v4843_v13  ;;  %5428 = vmatmul.mubr.msk.f32.vlgmr.msra.gmra.mrb[0].mxu0 %vm65_vm0, %v64_v14  ;;  %v6053_v26 = vpack.c.bf16 %v148_v25, %v147_v24  ;;  %v597_v28 = vld [vmem:[%s7729_s15 + $0x8] sm:$0xff]  ;;  %v599_v31 = vld [vmem:[%s7729_s15 + $0x18] sm:$0xff]  ;;  %v600_v33 = vld [vmem:[%s7729_s15 + $0x20] sm:$0xff]  ;;  %vm826_vm6 = vcmask 130048   ;;  %vm828_vm7 = vcmask 195584   ;;  %vm831_vm8 = vcmask 326656  }
  0x16   :  { %6072 = vmatpush3.bf16.msra.mxu1 %v6021_v3  ;;  %5487 = vmatprep.mubr.msk.f32.mxu1 %vm65_vm0, %v4858_v15  ;;  %v6672_v30 = vpack.c.bf16 %v597_v28, %v596_v27  ;;  %v6677_v32 = vpack.c.bf16 %v599_v31, %v598_v29  ;;  %v601_v34 = vld [vmem:[%s7729_s15 + $0x28] sm:$0xff]  ;;  %v149_v36 = vld [vmem:[%s7717_s3 + $0x10] sm:$0xff]  ;;  %v150_v37 = vld [vmem:[%s7717_s3 + $0x18] sm:$0xff]  ;;  %vm833_vm9 = vcmask 392192   ;;  %vm887_vm10 = vcmask 1045504   ;;  %s7742_s24 = sld [smem:[#allocation6_spill]] }
  0x17   :  { %6074 = vmatprep.subr.bf16.mxu1 %v6025_v6  ;;  %6040 = vmatpush3.bf16.msra.mxu0 %v6037_v10  ;;  %v6688_v35 = vpack.c.bf16 %v601_v34, %v600_v33  ;;  %v6057_v41 = vpack.c.bf16 %v150_v37, %v149_v36  ;;  %v151_v43 = vld [vmem:[%s7717_s3 + $0x20] sm:$0xff]  ;;  %v152_v44 = vld [vmem:[%s7717_s3 + $0x28] sm:$0xff]  ;;  %v153_v46 = vld [vmem:[%s7717_s3 + $0x30] sm:$0xff]  ;;  %vm6491_vm13 = vmmov 1   ;;  %vm883_vm15 = vcmask 113664   ;;  %s6500_s2 = smov 56  }
  0x18   :  { %6042 = vmatprep.subr.bf16.mxu0 %v6041_v16  ;;  %v6061_v45 = vpack.c.bf16 %v152_v44, %v151_v43  ;;  %v154_v47 = vld [vmem:[%s7717_s3 + $0x38] sm:$0xff]  ;;  %v4862_v51 = vld [vmem:[%s7717_s3 + $0x80] sm:$0xff]  ;;  %v4863_v52 = vld [vmem:[%s7717_s3 + $0x88] sm:$0xff] }
  0x19   :  { %v6065_v49 = vpack.c.bf16 %v154_v47, %v153_v46  ;;  %v6077_v53 = vpack.c.bf16 %v4863_v52, %v4862_v51  ;;  %v4864_v54 = vld [vmem:[%s7717_s3 + $0x90] sm:$0xff]  ;;  %v4865_v55 = vld [vmem:[%s7717_s3 + $0x98] sm:$0xff]  ;;  %v4866_v57 = vld [vmem:[%s7717_s3 + $0xa0] sm:$0xff]  ;;  %v6488_v46 = vmov 0.0|0.0   ;;  %v6490_v47 = vmov 0.0  }
  0x1a   :  { %6076 = vmatpush3.bf16.msra.mxu1 %v6025_v6  ;;  %v6081_v56 = vpack.c.bf16 %v4865_v55, %v4864_v54  ;;  %v4867_v58 = vld [vmem:[%s7717_s3 + $0xa8] sm:$0xff]  ;;  %v4868_v60 = vld [vmem:[%s7717_s3 + $0xb0] sm:$0xff]  ;;  %v4869_v61 = vld [vmem:[%s7717_s3 + $0xb8] sm:$0xff] }
  0x1b   :  { %6044 = vmatpush3.bf16.msra.mxu0 %v6041_v16  ;;  %6094 = vmatprep.subr.bf16.mxu1 %v6672_v30  ;;  %v6085_v59 = vpack.c.bf16 %v4867_v58, %v4866_v57  ;;  %v6089_v62 = vpack.c.bf16 %v4869_v61, %v4868_v60  ;;  %v602_v63 = vld [vmem:[%s7729_s15 + $0x30] sm:$0xff]  ;;  %v4872_v0 = vld [vmem:[%s7730_s16] ss:$0 sm:$0xff]  ;;  %v4877_v37 = vld [vmem:[%s7730_s16 + $0x1] sm:$0x1] }
  0x1c   :  { %6046 = vmatprep.subr.bf16.mxu0 %v6045_v19  ;;  %vm6816_vm14 = vmpackc.low %vm887_vm10, %vm6491_vm13  ;;  %vm1586_vm13 = vcmask 48128  }
  0x1d   :  { %5488 = vmatmul.mubr.msk.f32.vlgmr.msra.gmra.mrb[2].mxu1 %vm65_vm0, %v4859_v22 }
  0x1e   :  { %6096 = vmatpush3.bf16.msra.mxu1 %v6672_v30 }
  0x1f   :  { %6048 = vmatpush3.bf16.msra.mxu0 %v6045_v19  ;;  %6098 = vmatprep.subr.bf16.mxu1 %v6677_v32 }
  0x20   :  { %6050 = vmatprep.subr.bf16.mxu0 %v6049_v23 }
  0x22   :  { %6100 = vmatpush3.bf16.msra.mxu1 %v6677_v32 }
  0x23   :  { %6052 = vmatpush3.bf16.msra.mxu0 %v6049_v23  ;;  %6102 = vmatprep.subr.bf16.mxu1 %v6688_v35 }
  0x24   :  { %6054 = vmatprep.subr.bf16.mxu0 %v6053_v26 }
  0x26   :  { %6104 = vmatpush3.bf16.msra.mxu1 %v6688_v35 }
  0x27   :  { %5521 = vmatprep.subr.mxu1 %v602_v63 }
  0x2a   :  { %5522 = vmatpush3.msra.mxu1 %v602_v63 }
  0x2b   :  { %6106 = vmatprep.subr.bf16.mxu1 %v6672_v30 }
  0xe8   :  { %v5440_v38 = vpop.f32.mrb[0].mxu1  ;;  %v5429_v39 = vpop.f32.mrb[0].mxu0 }
  0xe9   :  { %v230_v40 = vpop.f32.mrb[1].mxu1  ;;  %v138_v42 = vpop.f32.mrb[1].mxu0 }
  0xea   :  { %5457 = vmatprep.mubr.msk.f32.mxu0 %vm248_vm1, %v230_v40 }
  0xeb   :  { %5458 = vmatmul.mubr.msk.f32.vlgmr.msra.gmra.mrb[2].mxu0 %vm248_vm1, %v5440_v38 }
  0xec   :  { %6056 = vmatpush3.bf16.msra.mxu0 %v6053_v26  ;;  %5476 = vmatprep.mubr.msk.f32.mxu0 %vm248_vm1, %v138_v42 }
  0xed   :  { %6058 = vmatprep.subr.bf16.mxu0 %v6057_v41 }
  0xf0   :  { %6060 = vmatpush3.bf16.msra.mxu0 %v6057_v41  ;;  %v5489_v48 = vpop.f32.mrb[2].mxu1  ;;  %v4878_v41 = vld [vmem:[%s7730_s16 + $0x2] sm:$0x1] }
  0xf1   :  { %6062 = vmatprep.subr.bf16.mxu0 %v6061_v45  ;;  %v486_v50 = vpop.f32.mrb[3].mxu1 }
  0xf4   :  { %6064 = vmatpush3.bf16.msra.mxu0 %v6061_v45 }
  0xf5   :  { %6066 = vmatprep.subr.bf16.mxu0 %v6065_v49 }
  0xf8   :  { %6068 = vmatpush3.bf16.msra.mxu0 %v6065_v49 }
  0xf9   :  { %6078 = vmatprep.subr.bf16.mxu0 %v6077_v53 }
  0xfb   :  { %5477 = vmatmul.mubr.msk.f32.vlgmr.msra.gmra.mrb[2].mxu0 %vm248_vm1, %v5429_v39 }
  0xfc   :  { %6080 = vmatpush3.bf16.msra.mxu0 %v6077_v53  ;;  %5506 = vmatprep.mubr.msk.f32.mxu0 %vm248_vm1, %v486_v50 }
  0xfd   :  { %6082 = vmatprep.subr.bf16.mxu0 %v6081_v56 }
 0x100   :  { %6084 = vmatpush3.bf16.msra.mxu0 %v6081_v56 }
 0x101   :  { %6086 = vmatprep.subr.bf16.mxu0 %v6085_v59 }
 0x104   :  { %6088 = vmatpush3.bf16.msra.mxu0 %v6085_v59 }
 0x105   :  { %6090 = vmatprep.subr.bf16.mxu0 %v6089_v62 }
 0x108   :  { %6092 = vmatpush3.bf16.msra.mxu0 %v6089_v62 }
 0x109   :  { %6117 = vmatprep.subr.bf16.mxu0 %v6488_v46 }
 0x10b   :  { %5507 = vmatmul.mubr.msk.f32.vlgmr.msra.gmra.mrb[2].mxu0 %vm248_vm1, %v5489_v48 }
 0x10c   :  { %5547 = vmatprep.mubr.msk.f32.mxu0 %vm6489_vm5, %v6490_v47 }
 0x1de   :  { %v5508_v1 = vpop.f32.mrb[2].mxu0 }
 0x1df   :  { %v576_v2 = vpop.f32.mrb[3].mxu0  ;;  %v6750_v4 = vadd.f32 %v5508_v1, %v4872_v0 }
 0x1e0   :  { %v6748_v3 = vadd.f32 %v4872_v0, %v576_v2 }
 0x1e1   :  { %v686_v6 = vmul.f32 %v6750_v4, %v6750_v4 }
 0x1e2   :  { %v685_v5 = vmul.f32 %v6748_v3, %v6748_v3  ;;  %5523 = vmatprep.mubr.msk.f32.mxu1 %vm603_vm2, %v6748_v3 }
 0x1e3   :  { %5524 = vmatmul.mubr.msk.f32.vlgmr.msra.gmra.mrb[4].mxu1 %vm603_vm2, %v6750_v4 }
 0x1e4   :  { %6108 = vmatpush3.bf16.msra.mxu1 %v6672_v30  ;;  %5540 = vmatprep.mubr.msk.f32.mxu1 %vm603_vm2, %v685_v5 }
 0x1e5   :  { %6110 = vmatprep.subr.bf16.mxu1 %v6677_v32 }
 0x1e8   :  { %6112 = vmatpush3.bf16.msra.mxu1 %v6677_v32 }
 0x1e9   :  { %6114 = vmatprep.subr.bf16.mxu1 %v6688_v35 }
 0x1ec   :  { %6116 = vmatpush3.bf16.msra.mxu1 %v6688_v35  ;;  %v803_v35 = vlaneseq }
 0x1ed   :  { %5538 = vmatprep.subr.mxu1 %v602_v63 }
 0x1ee   :  { %v804_v36 = vshrl.u32 %v803_v35, 7  ;;  %v4889_v35 = vld [vmem:[%s7719_s5 + $0x60] sm:$0xff] }
 0x1f0   :  { %5539 = vmatpush3.msra.mxu1 %v602_v63  ;;  %v6774_v38 = vsub.s32 0, %v804_v36  ;;  %v965_v36 = vld [vmem:[%s7719_s5 + $0x20] sm:$0xff] }
 0x1f1   :  { %5541 = vmatmul.mubr.msk.f32.vlgmr.msra.gmra.mrb[6].mxu1 %vm603_vm2, %v686_v6  ;;  %6121 = vmatprep.subr.bf16.mxu1 %v6488_v46 }
 0x1f2   :  { %5554 = vmatprep.mubr.msk.f32.mxu1 %vm6489_vm5, %v6490_v47 }
 0x2b6   :  { %v5525_v7 = vpop.f32.mrb[4].mxu1 }
 0x2b7   :  { %v771_v8 = vsel %vm770_vm3, %v5525_v7, 0.0  ;;  %v676_v9 = vpop.f32.mrb[5].mxu1 }
 0x2b8   :  { %v769_v10 = vsel %vm768_vm4, %v676_v9, 0.0 }
 0x2b9   :  { %v772_v11 = vadd.f32 %v771_v8, %v769_v10 }
 0x2bb   :  { %v773_v12 = vrot.slane %v772_v11, 4 }
 0x2bd   :  { %v774_v13 = vadd.f32 %v773_v12, %v772_v11 }
 0x2bf   :  { %v775_v14 = vrot.slane %v774_v13, 2 }
 0x2c1   :  { %v776_v16 = vadd.f32 %v775_v14, %v774_v13 }
 0x2c3   :  { %v777_v21 = vrot.slane %v776_v16, 1 }
 0x2c4   :  { %v5542_v15 = vpop.f32.mrb[6].mxu1 }
 0x2c5   :  { %v781_v17 = vsel %vm770_vm3, %v5542_v15, 0.0  ;;  %v759_v18 = vpop.f32.mrb[7].mxu1  ;;  %v778_v24 = vadd.f32 %v777_v21, %v776_v16  ;;  %v961_v21 = vld [vmem:[%s7719_s5] sm:$0xff] }
 0x2c6   :  { %v780_v19 = vsel %vm768_vm4, %v759_v18, 0.0  ;;  %v5068_v18 = vld [vmem:[%s7727_s13 + $0x68] sm:$0xff] }
 0x2c7   :  { %v782_v20 = vadd.f32 %v781_v17, %v780_v19  ;;  %v779_v27 = vmul.f32 0.010204081, %v778_v24  ;;  %v882_v24 = vld [vmem:[%s7718_s4] sm:$0x3f] }
 0x2c9   :  { %v783_v22 = vrot.slane %v782_v20, 4  ;;  %v790_v30 = vmul.f32 %v779_v27, %v779_v27 }
 0x2cb   :  { %v784_v23 = vadd.f32 %v783_v22, %v782_v20  ;;  %v4885_v20 = vld [vmem:[%s7719_s5 + $0x40] sm:$0xff]  ;;  %v962_v22 = vld [vmem:[%s7719_s5 + $0x8] sm:$0xff] }
 0x2cd   :  { %v785_v25 = vrot.slane %v784_v23, 2 }
 0x2cf   :  { %v786_v26 = vadd.f32 %v785_v25, %v784_v23  ;;  %v4881_v25 = vld [vmem:[%s7718_s4 + $0x8] sm:$0x3f] }
 0x2d1   :  { %v787_v28 = vrot.slane %v786_v26, 1 }
 0x2d3   :  { %v788_v29 = vadd.f32 %v787_v28, %v786_v26  ;;  %v4886_v28 = vld [vmem:[%s7719_s5 + $0x48] sm:$0xff] }
 0x2d5   :  { %v789_v31 = vmul.f32 0.010204081, %v788_v29  ;;  %v4887_v29 = vld [vmem:[%s7719_s5 + $0x50] sm:$0xff] }
 0x2d7   :  { %v791_v32 = vsub.f32 %v789_v31, %v790_v30  ;;  %v963_v30 = vld [vmem:[%s7719_s5 + $0x10] sm:$0xff]  ;;  %v964_v31 = vld [vmem:[%s7719_s5 + $0x18] sm:$0xff] }
 0x2d9   :  { %v792_v33 = vmax.f32 %v791_v32, 0.0  ;;  %v6129_v32 = vpack.c.bf16 %v4887_v29, %v4886_v28 }
 0x2db   :  { %v795_v34 = vadd.f32 1e-05, %v792_v33  ;;  %v6138_v33 = vpack.c.bf16 %v964_v31, %v963_v30 }
 0x2dd   :  { %6432 = vrsqrt.f32 %v795_v34  ;;  %v4888_v34 = vld [vmem:[%s7719_s5 + $0x58] sm:$0xff] }
 0x2e7   :  { %v6433_v39 = vpop.eup %6432 }
 0x2e8   :  { %v797_v40 = vmul.f32 %v6433_v39, %v4877_v37  ;;  %v966_v37 = vld [vmem:[%s7719_s5 + $0x28] sm:$0xff]  ;;  %v6132_v39 = vpack.c.bf16 %v4889_v35, %v4888_v34 }
 0x2ea   :  { %v806_v42 = vrot.slane %v797_v40, %v6774_v38  ;;  %v800_v43 = vmul.f32 %v797_v40, %v779_v27  ;;  %v6135_v27 = vpack.c.bf16 %v962_v22, %v961_v21 }
 0x2ec   :  { %813 = vrot.lane.b32.xlu1 %v806_v42, %s6482_s27  ;;  %807 = vrot.lane.b32.xlu0 %v806_v42, %s6483_s28  ;;  %v801_v44 = vsub.f32 %v4878_v41, %v800_v43  ;;  %v4890_v41 = vld [vmem:[%s7719_s5 + $0x68] sm:$0xff]  ;;  %v4896_v43 = vld [vmem:[%s7719_s5 + $0x70] sm:$0xff] }
 0x2ee   :  { %v839_v45 = vrot.slane %v801_v44, %v6774_v38 }
 0x2f0   :  { %810 = vrot.lane.b32.xlu0 %v806_v42, %s6484_s30  ;;  %840 = vrot.lane.b32.xlu1 %v839_v45, %s6483_s28 }
 0x2f4   :  { %816 = vrot.lane.b32.xlu0 %v806_v42, %s6485_s29  ;;  %843 = vrot.lane.b32.xlu1 %v839_v45, %s6484_s30 }
 0x2f8   :  { %819 = vrot.lane.b32.xlu0 %v806_v42, %s6486_s0  ;;  %846 = vrot.lane.b32.xlu1 %v839_v45, %s6482_s27 }
 0x2fc   :  { %822 = vrot.lane.b32.xlu0 %v806_v42, %s6487_s19  ;;  %849 = vrot.lane.b32.xlu1 %v839_v45, %s6485_s29  ;;  %v967_v42 = vld [vmem:[%s7719_s5 + $0x30] sm:$0xff] }
 0x300   :  { %852 = vrot.lane.b32.xlu0 %v839_v45, %s6486_s0  ;;  %855 = vrot.lane.b32.xlu1 %v839_v45, %s6487_s19 }
 0x35e   :  { %v814_v48 = vpop.permute.xlu1 %813  ;;  %v808_v49 = vpop.permute.xlu0 %807 }
 0x35f   :  { %v825_v54 = vsel %vm768_vm4, %v797_v40, %v808_v49  ;;  %v6141_v40 = vpack.c.bf16 %v966_v37, %v965_v36 }
 0x362   :  { %v811_v50 = vpop.permute.xlu0 %810  ;;  %v841_v51 = vpop.permute.xlu1 %840 }
 0x363   :  { %v827_v55 = vsel %vm826_vm6, %v825_v54, %v811_v50  ;;  %v858_v63 = vsel %vm768_vm4, %v801_v44, %v841_v51  ;;  %v4897_v44 = vld [vmem:[%s7719_s5 + $0x78] sm:$0xff]  ;;  %v4898_v50 = vld [vmem:[%s7719_s5 + $0x80] sm:$0xff]  ;;  %v4899_v51 = vld [vmem:[%s7719_s5 + $0x88] sm:$0xff] }
 0x364   :  { %v829_v58 = vsel %vm828_vm7, %v827_v55, %v814_v48  ;;  %v6148_v45 = vpack.c.bf16 %v4897_v44, %v4896_v43  ;;  %v4893_v54 = vld [vmem:[%s7718_s4 + $0x10] sm:$0x3f]  ;;  %v6151_v55 = vpack.c.bf16 %v4899_v51, %v4898_v50  ;;  %v4914_v44 = vld [vmem:[%s7730_s16 + $0x4] sm:$0x1] }
 0x366   :  { %v817_v52 = vpop.permute.xlu0 %816  ;;  %v844_v53 = vpop.permute.xlu1 %843 }
 0x367   :  { %v830_v59 = vsel %vm65_vm0, %v829_v58, %v817_v52  ;;  %v859_v1 = vsel %vm826_vm6, %v858_v63, %v844_v53 }
 0x36a   :  { %v820_v56 = vpop.permute.xlu0 %819  ;;  %v847_v57 = vpop.permute.xlu1 %846 }
 0x36b   :  { %v832_v60 = vsel %vm831_vm8, %v830_v59, %v820_v56  ;;  %v860_v2 = vsel %vm828_vm7, %v859_v1, %v847_v57  ;;  %v4900_v56 = vld [vmem:[%s7719_s5 + $0x90] sm:$0xff]  ;;  %v4901_v57 = vld [vmem:[%s7719_s5 + $0x98] sm:$0xff]  ;;  %v4902_v59 = vld [vmem:[%s7719_s5 + $0xa0] sm:$0xff] }
 0x36c   :  { %v6154_v58 = vpack.c.bf16 %v4901_v57, %v4900_v56  ;;  %v1665_v57 = vld [vmem:[%s7721_s7 + $0x10] sm:$0xff] }
 0x36e   :  { %v823_v61 = vpop.permute.xlu0 %822  ;;  %v850_v62 = vpop.permute.xlu1 %849 }
 0x36f   :  { %v834_v0 = vsel %vm833_vm9, %v832_v60, %v823_v61  ;;  %v861_v6 = vsel %vm65_vm0, %v860_v2, %v850_v62  ;;  %v4906_v60 = vld [vmem:[%s7729_s15 + $0x40] sm:$0xff]  ;;  %v4907_v61 = vld [vmem:[%s7729_s15 + $0x48] sm:$0xff]  ;;  %v4908_v62 = vld [vmem:[%s7729_s15 + $0x50] sm:$0xff] }
 0x370   :  { %v867_v5 = vrot.slane %v834_v0, %v6774_v38  ;;  %v6157_v63 = vpack.c.bf16 %v4907_v61, %v4906_v60  ;;  %v4909_v0 = vld [vmem:[%s7729_s15 + $0x58] sm:$0xff]  ;;  %v1667_v60 = vld [vmem:[%s7721_s7 + $0x20] sm:$0xff]  ;;  %v1668_v61 = vld [vmem:[%s7721_s7 + $0x28] sm:$0xff] }
 0x371   :  { %v6160_v1 = vpack.c.bf16 %v4909_v0, %v4908_v62  ;;  %v6190_v62 = vpack.c.bf16 %v1668_v61, %v1667_v60  ;;  %v4945_v60 = vld [vmem:[%s7722_s8 + $0x28] sm:$0xff] }
 0x372   :  { %v853_v7 = vpop.permute.xlu0 %852  ;;  %v856_v8 = vpop.permute.xlu1 %855  ;;  %v868_v11 = vmul.f32 %v867_v5, %v6748_v3  ;;  %v869_v12 = vmul.f32 %v867_v5, %v6750_v4  ;;  %v4884_v3 = vld [vmem:[%s7719_s5 + $0x38] sm:$0xff]  ;;  %s6498_s5 = smov 52  }
 0x373   :  { %v862_v9 = vsel %vm831_vm8, %v861_v6, %v853_v7  ;;  %v6126_v26 = vpack.c.bf16 %v4885_v20, %v4884_v3 }
 0x374   :  { %v863_v10 = vsel %vm833_vm9, %v862_v9, %v856_v8 }
 0x375   :  { %v873_v13 = vrot.slane %v863_v10, %v6774_v38 }
 0x377   :  { %v874_v14 = vadd.f32 %v873_v13, %v868_v11  ;;  %v875_v15 = vadd.f32 %v873_v13, %v869_v12  ;;  %v4910_v11 = vld [vmem:[%s7729_s15 + $0x60] sm:$0xff]  ;;  %v4911_v12 = vld [vmem:[%s7729_s15 + $0x68] sm:$0xff] }
 0x378   :  { %v6163_v13 = vpack.c.bf16 %v4911_v12, %v4910_v11 }
 0x379   :  { %vm876_vm11 = vcmp.gt.f32.partialorder %v874_v14, 0.0  ;;  %vm877_vm12 = vcmp.gt.f32.partialorder %v875_v15, 0.0  ;;  %v878_v16 = vmul.f32 0.01, %v874_v14  ;;  %v879_v17 = vmul.f32 0.01, %v875_v15 }
 0x37b   :  { %v880_v4 = vsel %vm876_vm11, %v874_v14, %v878_v16  ;;  %v881_v19 = vsel %vm877_vm12, %v875_v15, %v879_v17  ;;  %v4905_v15 = vld [vmem:[%s7730_s16 + $0x3] ss:$0 sm:$0xff]  ;;  %vm1517_vm11 = vcmask 128000  }
 0x37c   :  { %v6118_v23 = vpack.c.bf16 %v881_v19, %v880_v4 }
 0x37e   :  { %6120 = vmatpush3.bf16.msk.msra.mxu0 %vm6816_vm14, %v6118_v23  ;;  %6124 = vmatpush3.bf16.msk.msra.mxu1 %vm6816_vm14, %v6118_v23 }
 0x37f   :  { %6125 = vmatprep.subr.bf16.mxu1 %v6488_v46  ;;  %6134 = vmatprep.subr.bf16.mxu0 %v6488_v46 }
 0x381   :  { %5548 = vmatmul.mubr.msk.f32.vlgmr.msra.gmra.mrb[4].mxu0 %vm883_vm15, %v882_v24  ;;  %5555 = vmatmul.mubr.msk.f32.vlgmr.msra.gmra.mrb[8].mxu1 %vm883_vm15, %v4881_v25 }
 0x382   :  { %6127 = vmatpush3.bf16.msra.mxu1 %v6126_v26  ;;  %6136 = vmatpush3.bf16.msra.mxu0 %v6135_v27 }
 0x383   :  { %6128 = vmatprep.subr.bf16.mxu1 %v6488_v46  ;;  %6137 = vmatprep.subr.bf16.mxu0 %v6488_v46 }
 0x384   :  { %5571 = vmatprep.mubr.msk.f32.mxu1 %vm6489_vm5, %v6490_v47  ;;  %5588 = vmatprep.mubr.msk.f32.mxu0 %vm6489_vm5, %v6490_v47 }
 0x386   :  { %6130 = vmatpush3.bf16.msra.mxu1 %v6129_v32  ;;  %6139 = vmatpush3.bf16.msra.mxu0 %v6138_v33 }
 0x387   :  { %6131 = vmatprep.subr.bf16.mxu1 %v6488_v46  ;;  %6140 = vmatprep.subr.bf16.mxu0 %v6488_v46 }
 0x38a   :  { %6133 = vmatpush3.bf16.msra.mxu1 %v6132_v39  ;;  %6142 = vmatpush3.bf16.msra.mxu0 %v6141_v40 }
 0x38b   :  { %5569 = vmatprep.subr.mxu1 %v6490_v47  ;;  %5586 = vmatprep.subr.mxu0 %v6490_v47 }
 0x38e   :  { %5570 = vmatpush3.msra.mxu1 %v4890_v41  ;;  %5587 = vmatpush3.msra.mxu0 %v967_v42 }
 0x38f   :  { %6143 = vmatprep.subr.bf16.mxu1 %v6488_v46  ;;  %6147 = vmatprep.subr.bf16.mxu0 %v6488_v46 }
 0x454   :  { %v957_v48 = vpop.f32.mrb[4].mxu0  ;;  %v1039_v49 = vpop.f32.mrb[8].mxu1 }
 0x455   :  { %v5556_v52 = vpop.f32.mrb[9].mxu1  ;;  %5572 = vmatmul.mubr.msk.f32.vlgmr.msra.gmra.mrb[10].mxu1 %vm603_vm2, %v1039_v49  ;;  %5589 = vmatmul.mubr.msk.f32.vlgmr.msra.gmra.mrb[6].mxu0 %vm603_vm2, %v957_v48  ;;  %v5549_v53 = vpop.f32.mrb[5].mxu0  ;;  %v4915_v49 = vld [vmem:[%s7730_s16 + $0x5] sm:$0x1] }
 0x456   :  { %6146 = vmatpush3.bf16.msk.msra.mxu1 %vm6816_vm14, %v6118_v23  ;;  %5595 = vmatprep.mubr.msk.f32.mxu1 %vm6489_vm5, %v6490_v47 }
 0x457   :  { %6149 = vmatpush3.bf16.msra.mxu0 %v6148_v45  ;;  %5612 = vmatprep.mubr.msk.f32.mxu0 %vm6489_vm5, %v6490_v47 }
 0x458   :  { %6150 = vmatprep.subr.bf16.mxu0 %v6488_v46  ;;  %6156 = vmatprep.subr.bf16.mxu1 %v6488_v46 }
 0x459   :  { %5596 = vmatmul.mubr.msk.f32.vlgmr.msra.gmra.mrb[12].mxu1 %vm883_vm15, %v4893_v54  ;;  %v1663_v54 = vld [vmem:[%s7721_s7] sm:$0xff] }
 0x45a   :  { %5627 = vmatprep.mubr.msk.f32.mxu1 %vm6489_vm5, %v6490_v47  ;;  %6158 = vmatpush3.bf16.msra.mxu1 %v6157_v63 }
 0x45b   :  { %6152 = vmatpush3.bf16.msra.mxu0 %v6151_v55  ;;  %6159 = vmatprep.subr.bf16.mxu1 %v6488_v46  ;;  %v1664_v55 = vld [vmem:[%s7721_s7 + $0x8] sm:$0xff] }
 0x45c   :  { %6153 = vmatprep.subr.bf16.mxu0 %v6488_v46  ;;  %v6184_v56 = vpack.c.bf16 %v1664_v55, %v1663_v54 }
 0x45e   :  { %6161 = vmatpush3.bf16.msra.mxu1 %v6160_v1 }
 0x45f   :  { %6155 = vmatpush3.bf16.msra.mxu0 %v6154_v58  ;;  %6162 = vmatprep.subr.bf16.mxu1 %v6488_v46  ;;  %v1666_v58 = vld [vmem:[%s7721_s7 + $0x18] sm:$0xff] }
 0x460   :  { %5610 = vmatprep.subr.mxu0 %v6490_v47 }
 0x462   :  { %6164 = vmatpush3.bf16.msra.mxu1 %v6163_v13 }
 0x463   :  { %5611 = vmatpush3.msra.mxu0 %v4902_v59  ;;  %6165 = vmatprep.subr.bf16.mxu1 %v6488_v46  ;;  %v6187_v59 = vpack.c.bf16 %v1666_v58, %v1665_v57 }
 0x464   :  { %5645 = vmatprep.subr.mxu0 %v6490_v47 }
 0x528   :  { %v1120_v2 = vpop.f32.mrb[10].mxu1  ;;  %v1193_v5 = vpop.f32.mrb[6].mxu0 }
 0x529   :  { %v1194_v6 = vadd.f32 %v1193_v5, %v1120_v2  ;;  %v5573_v7 = vpop.f32.mrb[11].mxu1  ;;  %v5590_v8 = vpop.f32.mrb[7].mxu0 }
 0x52c   :  { %v1268_v9 = vpop.f32.mrb[12].mxu1 }
 0x52d   :  { %v5597_v10 = vpop.f32.mrb[13].mxu1  ;;  %5613 = vmatmul.mubr.msk.f32.vlgmr.msra.gmra.mrb[8].mxu0 %vm603_vm2, %v1268_v9 }
 0x52e   :  { %5647 = vmatprep.mubr.msk.f32.mxu0 %vm6489_vm5, %v6490_v47 }
 0x600   :  { %v1349_v14 = vpop.f32.mrb[8].mxu0 }
 0x601   :  { %v1353_v16 = vadd.f32 %v1349_v14, %v1194_v6  ;;  %v5614_v17 = vpop.f32.mrb[9].mxu0  ;;  %v1585_v14 = vld [vmem:[%s7720_s6] sm:$0x3] }
 0x602   :  { %v4922_v17 = vld [vmem:[%s7721_s7 + $0x38] sm:$0xff] }
 0x603   :  { %v6955_v3 = vadd.f32 %v4905_v15, %v1353_v16  ;;  %v4921_v16 = vld [vmem:[%s7721_s7 + $0x30] sm:$0xff] }
 0x605   :  { %5628 = vmatmul.mubr.msk.f32.vlgmr.msra.gmra.mrb[14].mxu1 %vm833_vm9, %v6955_v3  ;;  %v1443_v4 = vmul.f32 %v6955_v3, %v6955_v3 }
 0x606   :  { %6167 = vmatpush3.bf16.msra.mxu1 %v6157_v63  ;;  %5642 = vmatprep.mubr.msk.f32.mxu1 %vm6489_vm5, %v6490_v47 }
 0x607   :  { %6168 = vmatprep.subr.bf16.mxu1 %v6488_v46 }
 0x60a   :  { %6170 = vmatpush3.bf16.msra.mxu1 %v6160_v1 }
 0x60b   :  { %6171 = vmatprep.subr.bf16.mxu1 %v6488_v46 }
 0x60e   :  { %6173 = vmatpush3.bf16.msra.mxu1 %v6163_v13 }
 0x60f   :  { %6183 = vmatprep.subr.bf16.mxu1 %v6488_v46 }
 0x611   :  { %5643 = vmatmul.mubr.msk.f32.vlgmr.msra.gmra.mrb[16].mxu1 %vm833_vm9, %v1443_v4  ;;  %v6175_v4 = vpack.c.bf16 %v4922_v17, %v4921_v16 }
 0x612   :  { %5682 = vmatprep.mubr.msk.f32.mxu1 %vm6489_vm5, %v6490_v47  ;;  %6185 = vmatpush3.bf16.msra.mxu1 %v6184_v56  ;;  %v4940_v56 = vld [vmem:[%s7730_s16 + $0x6] ss:$0 sm:$0xff] }
 0x613   :  { %6186 = vmatprep.subr.bf16.mxu1 %v6488_v46 }
 0x616   :  { %6188 = vmatpush3.bf16.msra.mxu1 %v6187_v59  ;;  %v4944_v59 = vld [vmem:[%s7722_s8 + $0x20] sm:$0xff] }
 0x617   :  { %6189 = vmatprep.subr.bf16.mxu1 %v6488_v46 }
 0x61a   :  { %6191 = vmatpush3.bf16.msra.mxu1 %v6190_v62 }
 0x61b   :  { %6192 = vmatprep.subr.bf16.mxu1 %v6488_v46 }
 0x6d8   :  { %v1439_v19 = vpop.f32.mrb[14].mxu1 }
 0x6d9   :  { %v1518_v20 = vsel %vm1517_vm11, %v1439_v19, 0.0  ;;  %v5629_v21 = vpop.f32.mrb[15].mxu1  ;;  %v4923_v19 = vld [vmem:[%s7721_s7 + $0x40] sm:$0xff] }
 0x6da   :  { %v1519_v22 = vrot.slane %v1518_v20, 4 }
 0x6dc   :  { %v1520_v23 = vadd.f32 %v1519_v22, %v1518_v20  ;;  %v4924_v20 = vld [vmem:[%s7721_s7 + $0x48] sm:$0xff]  ;;  %v4925_v22 = vld [vmem:[%s7721_s7 + $0x50] sm:$0xff] }
 0x6dd   :  { %v6178_v21 = vpack.c.bf16 %v4924_v20, %v4923_v19  ;;  %v2235_v20 = vld [vmem:[%s7742_s24] sm:$0x3] }
 0x6de   :  { %v1521_v24 = vrot.slane %v1520_v23, 2 }
 0x6e0   :  { %v1522_v25 = vadd.f32 %v1521_v24, %v1520_v23  ;;  %v4926_v23 = vld [vmem:[%s7721_s7 + $0x58] sm:$0xff] }
 0x6e1   :  { %v6181_v24 = vpack.c.bf16 %v4926_v23, %v4925_v22  ;;  %v4955_v22 = vld [vmem:[%s7724_s10 + $0x18] sm:$0xff] }
 0x6e2   :  { %v1523_v29 = vrot.slane %v1522_v25, 1 }
 0x6e4   :  { %v1513_v26 = vpop.f32.mrb[16].mxu1  ;;  %v1524_v32 = vadd.f32 %v1523_v29, %v1522_v25  ;;  %v4932_v25 = vld [vmem:[%s7721_s7 + $0x60] sm:$0xff] }
 0x6e5   :  { %v1526_v27 = vsel %vm1517_vm11, %v1513_v26, 0.0  ;;  %v5644_v28 = vpop.f32.mrb[17].mxu1  ;;  %v4933_v26 = vld [vmem:[%s7721_s7 + $0x68] sm:$0xff] }
 0x6e6   :  { %v1527_v30 = vrot.slane %v1526_v27, 4  ;;  %v1525_v35 = vmul.f32 0.055555556, %v1524_v32  ;;  %v4929_v32 = vld [vmem:[%s7720_s6 + $0x4] sm:$0x3] }
 0x6e8   :  { %v1528_v31 = vadd.f32 %v1527_v30, %v1526_v27  ;;  %v1534_v39 = vmul.f32 %v1525_v35, %v1525_v35  ;;  %v6193_v27 = vpack.c.bf16 %v4933_v26, %v4932_v25 }
 0x6ea   :  { %v1529_v33 = vrot.slane %v1528_v31, 2 }
 0x6ec   :  { %v1530_v34 = vadd.f32 %v1529_v33, %v1528_v31  ;;  %v4934_v33 = vld [vmem:[%s7721_s7 + $0x70] sm:$0xff] }
 0x6ee   :  { %v1531_v36 = vrot.slane %v1530_v34, 1 }
 0x6f0   :  { %v1532_v37 = vadd.f32 %v1531_v36, %v1530_v34  ;;  %v4935_v34 = vld [vmem:[%s7721_s7 + $0x78] sm:$0xff]  ;;  %v4936_v36 = vld [vmem:[%s7721_s7 + $0x80] sm:$0xff] }
 0x6f2   :  { %v1533_v40 = vmul.f32 0.055555556, %v1532_v37  ;;  %v4937_v37 = vld [vmem:[%s7721_s7 + $0x88] sm:$0xff] }
 0x6f4   :  { %v1535_v41 = vsub.f32 %v1533_v40, %v1534_v39  ;;  %v6199_v39 = vpack.c.bf16 %v4937_v37, %v4936_v36  ;;  %v4959_v37 = vld [vmem:[%s7723_s9 + $0x8] sm:$0x3f] }
 0x6f6   :  { %v1536_v42 = vmax.f32 %v1535_v41, 0.0 }
 0x6f8   :  { %v1539_v43 = vadd.f32 1e-05, %v1536_v42 }
 0x6fa   :  { %6434 = vrsqrt.f32 %v1539_v43 }
 0x704   :  { %v6435_v45 = vpop.eup %6434 }
 0x705   :  { %v1541_v48 = vmul.f32 %v6435_v45, %v4914_v44 }
 0x707   :  { %v1550_v50 = vrot.slane %v1541_v48, %v6774_v38  ;;  %v1544_v51 = vmul.f32 %v1541_v48, %v1525_v35  ;;  %v6196_v35 = vpack.c.bf16 %v4935_v34, %v4934_v33  ;;  %v4957_v33 = vld [vmem:[%s7730_s16 + $0xa] ss:$0 sm:$0xff]  ;;  %v4952_v34 = vld [vmem:[%s7730_s16 + $0x9] ss:$0 sm:$0xff] }
 0x709   :  { %1554 = vrot.lane.b32.xlu1 %v1550_v50, %s6485_s29  ;;  %1551 = vrot.lane.b32.xlu0 %v1550_v50, %s6484_s30  ;;  %v1545_v52 = vsub.f32 %v4915_v49, %v1544_v51  ;;  %v2065_v49 = vld [vmem:[%s7722_s8] sm:$0xff]  ;;  %v2066_v50 = vld [vmem:[%s7722_s8 + $0x8] sm:$0xff] }
 0x70a   :  { %v6202_v51 = vpack.c.bf16 %v2066_v50, %v2065_v49  ;;  %v4980_v49 = vld [vmem:[%s7726_s12 + $0x30] sm:$0xff]  ;;  %v4982_v50 = vld [vmem:[%s7726_s12 + $0x40] sm:$0xff] }
 0x70b   :  { %v1563_v53 = vrot.slane %v1545_v52, %v6774_v38 }
 0x70d   :  { %1567 = vrot.lane.b32.xlu1 %v1563_v53, %s6485_s29  ;;  %1564 = vrot.lane.b32.xlu0 %v1563_v53, %s6484_s30  ;;  %v2068_v53 = vld [vmem:[%s7722_s8 + $0x18] sm:$0xff] }
 0x77b   :  { %v1555_v63 = vpop.permute.xlu1 %1554  ;;  %v1552_v0 = vpop.permute.xlu0 %1551 }
 0x77c   :  { %v1557_v1 = vsel %vm826_vm6, %v1541_v48, %v1552_v0  ;;  %v4946_v0 = vld [vmem:[%s7722_s8 + $0x30] sm:$0xff] }
 0x77d   :  { %v1558_v2 = vsel %vm65_vm0, %v1557_v1, %v1555_v63  ;;  %v6208_v63 = vpack.c.bf16 %v4945_v60, %v4944_v59  ;;  %v4947_v1 = vld [vmem:[%s7722_s8 + $0x38] sm:$0xff]  ;;  %v4990_v60 = vld [vmem:[%s7725_s11 + $0x20] sm:$0xff] }
 0x77e   :  { %v1575_v5 = vrot.slane %v1558_v2, %v6774_v38  ;;  %v4976_v59 = vld [vmem:[%s7725_s11 + $0x18] sm:$0x3f] }
 0x77f   :  { %v1568_v6 = vpop.permute.xlu1 %1567  ;;  %v1565_v7 = vpop.permute.xlu0 %1564 }
 0x780   :  { %v1570_v8 = vsel %vm826_vm6, %v1545_v52, %v1565_v7  ;;  %v1576_v10 = vmul.f32 %v1575_v5, %v6955_v3  ;;  %v4918_v3 = vld [vmem:[%s7720_s6 + $0x2] sm:$0x3]  ;;  %v2067_v52 = vld [vmem:[%s7722_s8 + $0x10] sm:$0xff]  ;;  %v6211_v5 = vpack.c.bf16 %v4947_v1, %v4946_v0  ;;  %v2258_v7 = vld [vmem:[%s7724_s10 + $0x8] sm:$0xff]  ;;  %s6497_s6 = smov 44  }
 0x781   :  { %v1571_v9 = vsel %vm65_vm0, %v1570_v8, %v1568_v6  ;;  %v6205_v54 = vpack.c.bf16 %v2068_v53, %v2067_v52  ;;  %v2257_v6 = vld [vmem:[%s7724_s10] sm:$0xff]  ;;  %v4983_v52 = vld [vmem:[%s7726_s12 + $0x48] sm:$0xff] }
 0x782   :  { %v1580_v11 = vrot.slane %v1571_v9, %v6774_v38  ;;  %v6214_v8 = vpack.c.bf16 %v2258_v7, %v2257_v6  ;;  %v6226_v53 = vpack.c.bf16 %v4983_v52, %v4982_v50  ;;  %v2825_v1 = vld [vmem:[%s7726_s12] sm:$0xff]  ;;  %v5006_v7 = vld [vmem:[%s7729_s15 + $0x88] sm:$0xff] }
 0x783   :  { %v5005_v6 = vld [vmem:[%s7729_s15 + $0x80] sm:$0xff] }
 0x784   :  { %v1581_v12 = vadd.f32 %v1580_v11, %v1576_v10  ;;  %v4942_v11 = vld [vmem:[%s7730_s16 + $0x7] ss:$0 sm:$0xff] }
 0x786   :  { %vm1582_vm12 = vcmp.gt.f32.partialorder %v1581_v12, 0.0  ;;  %v1583_v13 = vmul.f32 0.01, %v1581_v12 }
 0x788   :  { %v1584_v15 = vsel %vm1582_vm12, %v1581_v12, %v1583_v13  ;;  %v4949_v12 = vld [vmem:[%s7730_s16 + $0x8] ss:$0 sm:$0xff]  ;;  %vm2428_vm12 = vcmask 1041408  }
 0x789   :  { %5646 = vmatpush3.msk.msra.mxu0 %vm887_vm10, %v1584_v15 }
 0x78a   :  { %5648 = vmatmul.mubr.msk.f32.vlgmr.msra.gmra.mrb[10].mxu0 %vm1586_vm13, %v1585_v14  ;;  %5650 = vmatprep.subr.mxu0 %v6490_v47 }
 0x78b   :  { %5651 = vmatpush3.msk.msra.mxu0 %vm887_vm10, %v1584_v15  ;;  %5652 = vmatprep.mubr.msk.f32.mxu0 %vm6489_vm5, %v6490_v47 }
 0x78c   :  { %6174 = vmatprep.subr.bf16.mxu0 %v6488_v46 }
 0x78e   :  { %5653 = vmatmul.mubr.msk.f32.vlgmr.msra.gmra.mrb[12].mxu0 %vm1586_vm13, %v4918_v3 }
 0x78f   :  { %6176 = vmatpush3.bf16.msra.mxu0 %v6175_v4  ;;  %5667 = vmatprep.mubr.msk.f32.mxu0 %vm6489_vm5, %v6490_v47 }
 0x790   :  { %6177 = vmatprep.subr.bf16.mxu0 %v6488_v46 }
 0x793   :  { %6179 = vmatpush3.bf16.msra.mxu0 %v6178_v21  ;;  %v4954_v21 = vld [vmem:[%s7724_s10 + $0x10] sm:$0xff] }
 0x794   :  { %6180 = vmatprep.subr.bf16.mxu0 %v6488_v46  ;;  %v6217_v26 = vpack.c.bf16 %v4955_v22, %v4954_v21  ;;  %v2829_v21 = vld [vmem:[%s7726_s12 + $0x20] sm:$0xff]  ;;  %v2830_v22 = vld [vmem:[%s7726_s12 + $0x28] sm:$0xff] }
 0x797   :  { %6182 = vmatpush3.bf16.msra.mxu0 %v6181_v24 }
 0x798   :  { %5685 = vmatprep.subr.mxu0 %v6490_v47 }
 0x85d   :  { %v1659_v28 = vpop.f32.mrb[10].mxu0 }
 0x85e   :  { %v5649_v29 = vpop.f32.mrb[11].mxu0  ;;  %5683 = vmatmul.mubr.msk.f32.vlgmr.msra.gmra.mrb[18].mxu1 %vm833_vm9, %v1659_v28  ;;  %v4964_v28 = vld [vmem:[%s7724_s10 + $0x20] sm:$0xff] }
 0x85f   :  { %6194 = vmatpush3.bf16.msra.mxu1 %v6193_v27  ;;  %5702 = vmatprep.mubr.msk.f32.mxu1 %vm6489_vm5, %v6490_v47  ;;  %v4965_v29 = vld [vmem:[%s7724_s10 + $0x28] sm:$0xff] }
 0x860   :  { %6195 = vmatprep.subr.bf16.mxu1 %v6488_v46 }
 0x861   :  { %v1740_v30 = vpop.f32.mrb[12].mxu0 }
 0x862   :  { %v5654_v31 = vpop.f32.mrb[13].mxu0  ;;  %5668 = vmatmul.mubr.msk.f32.vlgmr.msra.gmra.mrb[14].mxu0 %vm833_vm9, %v1740_v30  ;;  %v6220_v30 = vpack.c.bf16 %v4965_v29, %v4964_v28  ;;  %v4996_v28 = vld [vmem:[%s7726_s12 + $0x68] sm:$0xff] }
 0x863   :  { %5686 = vmatpush3.msk.msra.mxu0 %vm887_vm10, %v1584_v15  ;;  %5687 = vmatprep.mubr.msk.f32.mxu0 %vm6489_vm5, %v6490_v47 }
 0x864   :  { %6201 = vmatprep.subr.bf16.mxu0 %v6488_v46  ;;  %6197 = vmatpush3.bf16.msra.mxu1 %v6196_v35 }
 0x865   :  { %6198 = vmatprep.subr.bf16.mxu1 %v6488_v46 }
 0x866   :  { %5688 = vmatmul.mubr.msk.f32.vlgmr.msra.gmra.mrb[16].mxu0 %vm1586_vm13, %v4929_v32 }
 0x867   :  { %5713 = vmatprep.mubr.msk.f32.mxu0 %vm6489_vm5, %v6490_v47  ;;  %6203 = vmatpush3.bf16.msra.mxu0 %v6202_v51 }
 0x868   :  { %6200 = vmatpush3.bf16.msra.mxu1 %v6199_v39  ;;  %6204 = vmatprep.subr.bf16.mxu0 %v6488_v46 }
 0x869   :  { %6213 = vmatprep.subr.bf16.mxu1 %v6488_v46 }
 0x86b   :  { %6206 = vmatpush3.bf16.msra.mxu0 %v6205_v54 }
 0x86c   :  { %6207 = vmatprep.subr.bf16.mxu0 %v6488_v46 }
 0x931   :  { %v1893_v40 = vpop.f32.mrb[18].mxu1 }
 0x932   :  { %v5684_v41 = vpop.f32.mrb[19].mxu1 }
 0x935   :  { %v1820_v42 = vpop.f32.mrb[14].mxu0 }
 0x936   :  { %v1894_v43 = vadd.f32 %v1893_v40, %v1820_v42  ;;  %v5669_v44 = vpop.f32.mrb[15].mxu0  ;;  %v4967_v42 = vld [vmem:[%s7730_s16 + $0xb] ss:$0 sm:$0xff] }
 0x939   :  { %v1968_v45 = vpop.f32.mrb[16].mxu0 }
 0x93a   :  { %v5689_v48 = vpop.f32.mrb[17].mxu0  ;;  %5703 = vmatmul.mubr.msk.f32.vlgmr.msra.gmra.mrb[20].mxu1 %vm833_vm9, %v1968_v45  ;;  %v4969_v45 = vld [vmem:[%s7723_s9 + $0x10] sm:$0x3f] }
 0x93b   :  { %5731 = vmatprep.mubr.msk.f32.mxu1 %vm6489_vm5, %v6490_v47  ;;  %6215 = vmatpush3.bf16.msra.mxu1 %v6214_v8  ;;  %v2739_v48 = vld [vmem:[%s7725_s11] sm:$0xff]  ;;  %v5007_v8 = vld [vmem:[%s7729_s15 + $0x90] sm:$0xff] }
 0x93c   :  { %6216 = vmatprep.subr.bf16.mxu1 %v6488_v46 }
 0xa0d   :  { %v2048_v55 = vpop.f32.mrb[20].mxu1 }
 0xa0e   :  { %v2052_v57 = vadd.f32 %v2048_v55, %v1894_v43  ;;  %v5704_v58 = vpop.f32.mrb[21].mxu1  ;;  %v2340_v43 = vld [vmem:[%s7723_s9] sm:$0x3f]  ;;  %s6495_s9 = smov 36  }
 0xa0f   :  { %v4975_v58 = vld [vmem:[%s7725_s11 + $0x10] sm:$0xff] }
 0xa10   :  { %v2061_v61 = vadd.f32 %v4940_v56, %v2052_v57  ;;  %v2740_v57 = vld [vmem:[%s7725_s11 + $0x8] sm:$0x3f] }
 0xa12   :  { %vm2062_vm11 = vcmp.gt.f32.partialorder %v2061_v61, 0.0  ;;  %v2063_v62 = vmul.f32 0.01, %v2061_v61 }
 0xa14   :  { %v2064_v2 = vsel %vm2062_vm11, %v2061_v61, %v2063_v62  ;;  %vm2424_vm11 = vcmask 15360   ;;  %v4991_v61 = vld [vmem:[%s7725_s11 + $0x28] sm:$0x3f]  ;;  %v4984_v62 = vld [vmem:[%s7726_s12 + $0x50] sm:$0xff]  ;;  %s6499_s11 = smov 60  }
 0xa15   :  { %5714 = vmatmul.mubr.msk.f32.vlgmr.msra.gmra.mrb[18].mxu0 %vm65_vm0, %v2064_v2 }
 0xa16   :  { %6209 = vmatpush3.bf16.msra.mxu0 %v6208_v63  ;;  %5724 = vmatprep.mubr.msk.f32.mxu0 %vm6489_vm5, %v6490_v47  ;;  %v4985_v63 = vld [vmem:[%s7726_s12 + $0x58] sm:$0xff] }
 0xa17   :  { %6210 = vmatprep.subr.bf16.mxu0 %v6488_v46  ;;  %v6230_v0 = vpack.c.bf16 %v4985_v63, %v4984_v62 }
 0xa1a   :  { %6212 = vmatpush3.bf16.msra.mxu0 %v6211_v5 }
 0xa1b   :  { %5741 = vmatprep.subr.mxu0 %v6490_v47 }
 0xa1d   :  { %5725 = vmatmul.mubr.msk.f32.vlgmr.msra.gmra.mrb[20].mxu0 %vm65_vm0, %v2064_v2  ;;  %v2826_v2 = vld [vmem:[%s7726_s12 + $0x8] sm:$0xff] }
 0xa1e   :  { %5743 = vmatprep.mubr.msk.f32.mxu0 %vm6489_vm5, %v6490_v47  ;;  %v6234_v5 = vpack.c.bf16 %v2826_v2, %v2825_v1 }
 0xae8   :  { %v2146_v9 = vpop.f32.mrb[18].mxu0 }
 0xae9   :  { %v5715_v10 = vpop.f32.mrb[19].mxu0  ;;  %v2147_v13 = vadd.f32 %v4942_v11, %v2146_v9  ;;  %v6258_v9 = vpack.c.bf16 %v5006_v7, %v5005_v6 }
 0xaea   :  { %v5008_v10 = vld [vmem:[%s7729_s15 + $0x98] sm:$0xff] }
 0xaeb   :  { %v2239_v17 = vmul.f32 %v2147_v13, %v2147_v13  ;;  %v6262_v11 = vpack.c.bf16 %v5008_v10, %v5007_v8 }
 0xaf0   :  { %v2229_v14 = vpop.f32.mrb[20].mxu0 }
 0xaf1   :  { %v2230_v15 = vadd.f32 %v4949_v12, %v2229_v14  ;;  %v5726_v16 = vpop.f32.mrb[21].mxu0  ;;  %v5009_v12 = vld [vmem:[%s7729_s15 + $0xa0] sm:$0xff] }
 0xaf3   :  { %v2233_v3 = vmul.f32 1.442695, %v2230_v15  ;;  %v2238_v4 = vadd.f32 1.0, %v2230_v15 }
 0xaf5   :  { %6436 = vpow2.f32 %v2233_v3  ;;  %v2240_v19 = vsub.f32 %v2238_v4, %v2239_v17  ;;  %v2827_v17 = vld [vmem:[%s7726_s12 + $0x10] sm:$0xff]  ;;  %v2828_v3 = vld [vmem:[%s7726_s12 + $0x18] sm:$0xff] }
 0xaff   :  { %v6437_v23 = vpop.eup %6436 }
 0xb00   :  { %v2236_v24 = vmul.f32 %v6437_v23, %v2235_v20  ;;  %v7143_v25 = vsub.f32 %v2240_v19, %v6437_v23  ;;  %v6238_v20 = vpack.c.bf16 %v2828_v3, %v2827_v17 }
 0xb02   :  { %v2237_v27 = vadd.f32 %v2236_v24, %v2147_v13  ;;  %v5010_v13 = vld [vmem:[%s7729_s15 + $0xa8] sm:$0xff]  ;;  %v6242_v24 = vpack.c.bf16 %v2830_v22, %v2829_v21 }
 0xb03   :  { %v6266_v14 = vpack.c.bf16 %v5010_v13, %v5009_v12 }
 0xb04   :  { %5732 = vmatmul.mubr.msk.f32.vlgmr.msra.gmra.mrb[22].mxu1 %vm826_vm6, %v2237_v27 }
 0xb05   :  { %6218 = vmatpush3.bf16.msra.mxu1 %v6217_v26  ;;  %5738 = vmatprep.mubr.msk.f32.mxu1 %vm6489_vm5, %v6490_v47 }
 0xb06   :  { %6219 = vmatprep.subr.bf16.mxu1 %v6488_v46 }
 0xb08   :  { %5739 = vmatmul.mubr.msk.f32.vlgmr.msra.gmra.mrb[24].mxu1 %vm826_vm6, %v2237_v27 }
 0xb09   :  { %6221 = vmatpush3.bf16.msra.mxu1 %v6220_v30  ;;  %5755 = vmatprep.mubr.msk.f32.mxu1 %vm6489_vm5, %v6490_v47  ;;  %v4997_v30 = vld [vmem:[%s7726_s12 + $0x70] sm:$0xff] }
 0xb0c   :  { %5756 = vmatmul.mubr.msk.f32.vlgmr.msra.gmra.mrb[26].mxu1 %vm826_vm6, %v2237_v27  ;;  %v4995_v27 = vld [vmem:[%s7726_s12 + $0x60] sm:$0xff] }
 0xb0d   :  { %5765 = vmatprep.mubr.msk.f32.mxu1 %vm1586_vm13, %v2739_v48  ;;  %v6246_v29 = vpack.c.bf16 %v4996_v28, %v4995_v27 }
 0xbd7   :  { %v2336_v31 = vpop.f32.mrb[22].mxu1 }
 0xbd8   :  { %v5733_v32 = vpop.f32.mrb[23].mxu1  ;;  %v2337_v39 = vadd.f32 %v4952_v34, %v2336_v31  ;;  %v4998_v31 = vld [vmem:[%s7726_s12 + $0x78] sm:$0xff]  ;;  %v5000_v34 = vld [vmem:[%s7726_s12 + $0x88] sm:$0xff] }
 0xbd9   :  { %v6250_v32 = vpack.c.bf16 %v4998_v31, %v4997_v30 }
 0xbdb   :  { %v2418_v35 = vpop.f32.mrb[24].mxu1 }
 0xbdc   :  { %v2419_v46 = vadd.f32 %v4957_v33, %v2418_v35  ;;  %v5740_v36 = vpop.f32.mrb[25].mxu1  ;;  %v4999_v33 = vld [vmem:[%s7726_s12 + $0x80] sm:$0xff] }
 0xbdd   :  { %v6254_v35 = vpack.c.bf16 %v5000_v34, %v4999_v33  ;;  %v5004_v36 = vld [vmem:[%s7730_s16 + $0xc] ss:$0 sm:$0xff] }
 0xbde   :  { %5742 = vmatpush3.msk.msra.mxu0 %vm2428_vm12, %v2419_v46  ;;  %v5011_v46 = vld [vmem:[%s7729_s15 + $0xb0] sm:$0xff] }
 0xbdf   :  { %5744 = vmatmul.mubr.msk.f32.vlgmr.msra.gmra.mrb[22].mxu0 %vm2424_vm11, %v4959_v37  ;;  %5746 = vmatprep.subr.mxu0 %v6490_v47  ;;  %v2655_v40 = vpop.f32.mrb[26].mxu1 }
 0xbe0   :  { %5747 = vmatpush3.msk.msra.mxu0 %vm2428_vm12, %v2337_v39  ;;  %v5757_v41 = vpop.f32.mrb[27].mxu1  ;;  %5748 = vmatprep.mubr.msk.f32.mxu0 %vm6489_vm5, %v6490_v47  ;;  %v2656_v44 = vadd.f32 %v4967_v42, %v2655_v40 }
 0xbe1   :  { %5758 = vmatprep.subr.mxu0 %v6490_v47 }
 0xbe7   :  { %5749 = vmatmul.mubr.msk.f32.vlgmr.msra.gmra.mrb[22].mxu0 %vm2424_vm11, %v2340_v43 }
 0xbe8   :  { %5759 = vmatpush3.msk.msra.mxu0 %vm2428_vm12, %v2656_v44  ;;  %5760 = vmatprep.mubr.msk.f32.mxu0 %vm6489_vm5, %v6490_v47  ;;  %v4981_v47 = vld [vmem:[%s7726_s12 + $0x38] sm:$0xff]  ;;  %vm2255_vm5 = vcmask 0   ;;  %s6496_s12 = smov 20  }
 0xbe9   :  { %v6222_v51 = vpack.c.bf16 %v4981_v47, %v4980_v49 }
 0xbeb   :  { %6223 = vmatprep.subr.bf16.mxu0 %v6222_v51 }
 0xbef   :  { %5761 = vmatmul.mubr.msk.f32.vlgmr.msra.gmra.mrb[22].mxu0 %vm2424_vm11, %v4969_v45 }
 0xbf0   :  { %6225 = vmatpush3.bf16.msra.mxu0 %v6222_v51 }
 0xbf1   :  { %6227 = vmatprep.subr.bf16.mxu0 %v6226_v53 }
 0xbf4   :  { %6229 = vmatpush3.bf16.msra.mxu0 %v6226_v53 }
 0xbf5   :  { %6231 = vmatprep.subr.bf16.mxu0 %v6230_v0 }
 0xbf8   :  { %6233 = vmatpush3.bf16.msra.mxu0 %v6230_v0 }
 0xbf9   :  { %6235 = vmatprep.subr.bf16.mxu0 %v6234_v5 }
 0xcc2   :  { %v2733_v54 = vpop.f32.mrb[22].mxu0 }
 0xcc3   :  { %v2738_v55 = vmax.f32 %v2733_v54, 0.0  ;;  %v5762_v56 = vpop.f32.mrb[23].mxu0 }
 0xcc5   :  { %5763 = vmatprep.subr.msk.mxu1 %vm887_vm10, %v2738_v55 }
 0xcc6   :  { %5764 = vmatpush3.msk.msra.mxu1 %vm887_vm10, %v2738_v55 }
 0xcc7   :  { %5766 = vmatmul.mubr.msk.f32.vlgmr.msra.gmra.mrb[28].mxu1 %vm1586_vm13, %v2740_v57  ;;  %5768 = vmatprep.subr.msk.mxu1 %vm887_vm10, %v2738_v55 }
 0xcc8   :  { %5769 = vmatpush3.msk.msra.mxu1 %vm887_vm10, %v2738_v55  ;;  %5770 = vmatprep.mubr.msk.f32.mxu1 %vm1586_vm13, %v4975_v58 }
 0xcc9   :  { %5803 = vmatprep.subr.msk.mxu1 %vm887_vm10, %v2738_v55 }
 0xccb   :  { %5771 = vmatmul.mubr.msk.f32.vlgmr.msra.gmra.mrb[30].mxu1 %vm1586_vm13, %v4976_v59 }
 0xccc   :  { %5804 = vmatpush3.msk.msra.mxu1 %vm887_vm10, %v2738_v55  ;;  %5805 = vmatprep.mubr.msk.f32.mxu1 %vm1586_vm13, %v4990_v60  ;;  %vm4600_vm10 = vcmask 31744  }
 0xccd   :  { %6259 = vmatprep.subr.bf16.mxu1 %v6258_v9 }
 0xccf   :  { %5806 = vmatmul.mubr.msk.f32.vlgmr.msra.gmra.mrb[32].mxu1 %vm1586_vm13, %v4991_v61 }
 0xcd0   :  { %6261 = vmatpush3.bf16.msra.mxu1 %v6258_v9 }
 0xcd1   :  { %6263 = vmatprep.subr.bf16.mxu1 %v6262_v11 }
 0xcd4   :  { %6265 = vmatpush3.bf16.msra.mxu1 %v6262_v11 }
 0xcd5   :  { %6267 = vmatprep.subr.bf16.mxu1 %v6266_v14 }
 0xcd8   :  { %6269 = vmatpush3.bf16.msra.mxu1 %v6266_v14 }
 0xcd9   :  { %5835 = vmatprep.subr.mxu1 %v5011_v46 }
 0xcdc   :  { %5836 = vmatpush3.msra.mxu1 %v5011_v46 }
 0xcdd   :  { %6271 = vmatprep.subr.bf16.mxu1 %v6258_v9 }
 0xd9a   :  { %v5767_v15 = vpop.f32.mrb[28].mxu1 }
 0xd9b   :  { %v2816_v16 = vpop.f32.mrb[29].mxu1 }
 0xd9e   :  { %v5772_v4 = vpop.f32.mrb[30].mxu1 }
 0xd9f   :  { %v2906_v19 = vpop.f32.mrb[31].mxu1 }
 0xda0   :  { %5785 = vmatprep.mubr.msk.f32.mxu0 %vm833_vm9, %v2906_v19  ;;  %v3544_v19 = vld [vmem:[%s7727_s13] sm:$0xff] }
 0xda1   :  { %5786 = vmatmul.mubr.msk.f32.vlgmr.msra.gmra.mrb[24].mxu0 %vm833_vm9, %v5772_v4  ;;  %v5023_v4 = vld [vmem:[%s7727_s13 + $0x20] sm:$0xff] }
 0xda2   :  { %6237 = vmatpush3.bf16.msra.mxu0 %v6234_v5  ;;  %5800 = vmatprep.mubr.msk.f32.mxu0 %vm833_vm9, %v2816_v16  ;;  %v5807_v23 = vpop.f32.mrb[32].mxu1 }
 0xda3   :  { %6239 = vmatprep.subr.bf16.mxu0 %v6238_v20  ;;  %v3159_v26 = vpop.f32.mrb[33].mxu1 }
 0xda6   :  { %6241 = vmatpush3.bf16.msra.mxu0 %v6238_v20 }
 0xda7   :  { %6243 = vmatprep.subr.bf16.mxu0 %v6242_v24 }
 0xdaa   :  { %6245 = vmatpush3.bf16.msra.mxu0 %v6242_v24 }
 0xdab   :  { %6247 = vmatprep.subr.bf16.mxu0 %v6246_v29 }
 0xdad   :  { %5801 = vmatmul.mubr.msk.f32.vlgmr.msra.gmra.mrb[24].mxu0 %vm833_vm9, %v5767_v15 }
 0xdae   :  { %6249 = vmatpush3.bf16.msra.mxu0 %v6246_v29  ;;  %5820 = vmatprep.mubr.msk.f32.mxu0 %vm833_vm9, %v3159_v26 }
 0xdaf   :  { %6251 = vmatprep.subr.bf16.mxu0 %v6250_v32 }
 0xdb2   :  { %6253 = vmatpush3.bf16.msra.mxu0 %v6250_v32 }
 0xdb3   :  { %6255 = vmatprep.subr.bf16.mxu0 %v6254_v35 }
 0xdb6   :  { %6257 = vmatpush3.bf16.msra.mxu0 %v6254_v35 }
 0xdb9   :  { %5821 = vmatmul.mubr.msk.f32.vlgmr.msra.gmra.mrb[24].mxu0 %vm833_vm9, %v5807_v23 }
 0xdba   :  { %5871 = vmatprep.mubr.msk.f32.mxu0 %vm883_vm15, %v5023_v4 }
 0xe8c   :  { %v5822_v37 = vpop.f32.mrb[24].mxu0 }
 0xe8d   :  { %v3247_v39 = vpop.f32.mrb[25].mxu0  ;;  %v7305_v41 = vadd.f32 %v5822_v37, %v5004_v36 }
 0xe8e   :  { %v7303_v40 = vadd.f32 %v5004_v36, %v3247_v39 }
 0xe8f   :  { %v3358_v43 = vmul.f32 %v7305_v41, %v7305_v41 }
 0xe90   :  { %v3357_v42 = vmul.f32 %v7303_v40, %v7303_v40  ;;  %5837 = vmatprep.mubr.msk.f32.mxu1 %vm603_vm2, %v7303_v40 }
 0xe91   :  { %5838 = vmatmul.mubr.msk.f32.vlgmr.msra.gmra.mrb[34].mxu1 %vm603_vm2, %v7305_v41 }
 0xe92   :  { %6273 = vmatpush3.bf16.msra.mxu1 %v6258_v9  ;;  %5854 = vmatprep.mubr.msk.f32.mxu1 %vm603_vm2, %v3357_v42 }
 0xe93   :  { %6275 = vmatprep.subr.bf16.mxu1 %v6262_v11 }
 0xe96   :  { %6277 = vmatpush3.bf16.msra.mxu1 %v6262_v11  ;;  %v5016_v11 = vld [vmem:[%s7730_s16 + $0xd] sm:$0x1] }
 0xe97   :  { %6279 = vmatprep.subr.bf16.mxu1 %v6266_v14 }
 0xe9a   :  { %6281 = vmatpush3.bf16.msra.mxu1 %v6266_v14  ;;  %v5017_v14 = vld [vmem:[%s7730_s16 + $0xe] sm:$0x1] }
 0xe9b   :  { %5852 = vmatprep.subr.mxu1 %v5011_v46 }
 0xe9e   :  { %5853 = vmatpush3.msra.mxu1 %v5011_v46 }
 0xe9f   :  { %5855 = vmatmul.mubr.msk.f32.vlgmr.msra.gmra.mrb[36].mxu1 %vm603_vm2, %v3358_v43 }
 0xea0   :  { %5861 = vmatprep.mubr.msk.f32.mxu1 %vm883_vm15, %v3544_v19 }
 0xf64   :  { %v5839_v44 = vpop.f32.mrb[34].mxu1 }
 0xf65   :  { %v3441_v45 = vsel %vm770_vm3, %v5839_v44, 0.0  ;;  %v3348_v48 = vpop.f32.mrb[35].mxu1 }
 0xf66   :  { %v3440_v49 = vsel %vm768_vm4, %v3348_v48, 0.0 }
 0xf67   :  { %v3442_v47 = vadd.f32 %v3441_v45, %v3440_v49 }
 0xf69   :  { %v3443_v50 = vrot.slane %v3442_v47, 4 }
 0xf6b   :  { %v3444_v51 = vadd.f32 %v3443_v50, %v3442_v47 }
 0xf6d   :  { %v3445_v52 = vrot.slane %v3444_v51, 2 }
 0xf6f   :  { %v3446_v54 = vadd.f32 %v3445_v52, %v3444_v51 }
 0xf71   :  { %v3447_v59 = vrot.slane %v3446_v54, 1 }
 0xf72   :  { %v5856_v53 = vpop.f32.mrb[36].mxu1 }
 0xf73   :  { %v3451_v55 = vsel %vm770_vm3, %v5856_v53, 0.0  ;;  %v3431_v56 = vpop.f32.mrb[37].mxu1  ;;  %v3448_v62 = vadd.f32 %v3447_v59, %v3446_v54  ;;  %vm2242_vm3 = vcmask 123904   ;;  %v5032_v54 = vld [vmem:[%s7728_s14 + $0x38] sm:$0xff] }
 0xf74   :  { %v3450_v57 = vsel %vm768_vm4, %v3431_v56, 0.0  ;;  %v2243_v20 = vsel %vm2242_vm3, %v7143_v25, 0.0 }
 0xf75   :  { %v3452_v58 = vadd.f32 %v3451_v55, %v3450_v57  ;;  %v3449_v1 = vmul.f32 0.010204081, %v3448_v62  ;;  %v5033_v55 = vld [vmem:[%s7728_s14 + $0x40] sm:$0xff]  ;;  %v5035_v62 = vld [vmem:[%s7728_s14 + $0x50] sm:$0xff] }
 0xf76   :  { %v6294_v59 = vpack.c.bf16 %v5033_v55, %v5032_v54  ;;  %v3654_v55 = vld [vmem:[%s7728_s14 + $0x30] sm:$0xff] }
 0xf77   :  { %v3453_v60 = vrot.slane %v3452_v58, 4  ;;  %v3460_v6 = vmul.f32 %v3449_v1, %v3449_v1 }
 0xf79   :  { %v3454_v61 = vadd.f32 %v3453_v60, %v3452_v58  ;;  %v5025_v60 = vld [vmem:[%s7727_s13 + $0x30] sm:$0xff] }
 0xf7b   :  { %v3455_v63 = vrot.slane %v3454_v61, 2 }
 0xf7d   :  { %v3456_v0 = vadd.f32 %v3455_v63, %v3454_v61  ;;  %v5034_v61 = vld [vmem:[%s7728_s14 + $0x48] sm:$0xff]  ;;  %v3546_v63 = vld [vmem:[%s7727_s13 + $0x10] sm:$0xff] }
 0xf7f   :  { %v3457_v2 = vrot.slane %v3456_v0, 1 }
 0xf81   :  { %v3458_v5 = vadd.f32 %v3457_v2, %v3456_v0  ;;  %v5026_v0 = vld [vmem:[%s7727_s13 + $0x38] sm:$0xff]  ;;  %v6298_v2 = vpack.c.bf16 %v5035_v62, %v5034_v61  ;;  %v5060_v62 = vld [vmem:[%s7728_s14 + $0x90] sm:$0xff] }
 0xf83   :  { %v3459_v7 = vmul.f32 0.010204081, %v3458_v5  ;;  %v5036_v5 = vld [vmem:[%s7728_s14 + $0x58] sm:$0xff] }
 0xf85   :  { %v3461_v8 = vsub.f32 %v3459_v7, %v3460_v6  ;;  %v5037_v6 = vld [vmem:[%s7728_s14 + $0x60] sm:$0xff] }
 0xf86   :  { %v5047_v7 = vld [vmem:[%s7727_s13 + $0x40] sm:$0xff] }
 0xf87   :  { %v3462_v9 = vmax.f32 %v3461_v8, 0.0  ;;  %v6302_v8 = vpack.c.bf16 %v5037_v6, %v5036_v5 }
 0xf89   :  { %v3465_v10 = vadd.f32 1e-05, %v3462_v9  ;;  %v5048_v9 = vld [vmem:[%s7727_s13 + $0x48] sm:$0xff] }
 0xf8b   :  { %6438 = vrsqrt.f32 %v3465_v10  ;;  %v5049_v10 = vld [vmem:[%s7727_s13 + $0x50] sm:$0xff] }
 0xf95   :  { %v6439_v12 = vpop.eup %6438 }
 0xf96   :  { %v3467_v13 = vmul.f32 %v6439_v12, %v5016_v11  ;;  %v5050_v11 = vld [vmem:[%s7727_s13 + $0x58] sm:$0xff]  ;;  %v5067_v12 = vld [vmem:[%s7727_s13 + $0x60] sm:$0xff] }
 0xf98   :  { %v3476_v15 = vrot.slane %v3467_v13, %v6774_v38  ;;  %v3470_v16 = vmul.f32 %v3467_v13, %v3449_v1  ;;  %v3547_v1 = vld [vmem:[%s7727_s13 + $0x18] sm:$0xff] }
 0xf9a   :  { %3480 = vrot.lane.b32.xlu1 %v3476_v15, %s6484_s30  ;;  %3477 = vrot.lane.b32.xlu0 %v3476_v15, %s6483_s28  ;;  %v3471_v17 = vsub.f32 %v5017_v14, %v3470_v16  ;;  %v5070_v14 = vld [vmem:[%s7727_s13 + $0x78] sm:$0xff] }
 0xf9c   :  { %v3505_v3 = vrot.slane %v3471_v17, %v6774_v38 }
 0xf9e   :  { %3483 = vrot.lane.b32.xlu0 %v3476_v15, %s6482_s27  ;;  %3506 = vrot.lane.b32.xlu1 %v3505_v3, %s6483_s28 }
 0xfa2   :  { %3486 = vrot.lane.b32.xlu0 %v3476_v15, %s6485_s29  ;;  %3509 = vrot.lane.b32.xlu1 %v3505_v3, %s6484_s30 }
 0xfa6   :  { %3489 = vrot.lane.b32.xlu0 %v3476_v15, %s6486_s0  ;;  %3512 = vrot.lane.b32.xlu1 %v3505_v3, %s6482_s27 }
 0xfaa   :  { %3492 = vrot.lane.b32.xlu0 %v3476_v15, %s6487_s19  ;;  %3515 = vrot.lane.b32.xlu1 %v3505_v3, %s6485_s29 }
 0xfae   :  { %3518 = vrot.lane.b32.xlu0 %v3505_v3, %s6486_s0  ;;  %3521 = vrot.lane.b32.xlu1 %v3505_v3, %s6487_s19 }
 0xfcd   :  { %2244 = vadd.xlane.f32.xlu0 %v2243_v20 }
0x100c   :  { %v3481_v21 = vpop.permute.xlu1 %3480  ;;  %v3478_v22 = vpop.permute.xlu0 %3477 }
0x100d   :  { %v3495_v28 = vsel %vm768_vm4, %v3467_v13, %v3478_v22  ;;  %v5069_v13 = vld [vmem:[%s7727_s13 + $0x70] sm:$0xff]  ;;  %v3648_v22 = vld [vmem:[%s7728_s14] sm:$0xff] }
0x100e   :  { %v3496_v31 = vsel %vm826_vm6, %v3495_v28, %v3481_v21  ;;  %v5038_v21 = vld [vmem:[%s7728_s14 + $0x68] sm:$0xff]  ;;  %v5089_v28 = vld [vmem:[%s7729_s15 + $0xc0] sm:$0xff] }
0x1010   :  { %v3484_v23 = vpop.permute.xlu0 %3483  ;;  %v3507_v24 = vpop.permute.xlu1 %3506 }
0x1011   :  { %v3497_v32 = vsel %vm828_vm7, %v3496_v31, %v3484_v23  ;;  %v3524_v46 = vsel %vm768_vm4, %v3471_v17, %v3507_v24  ;;  %v3649_v23 = vld [vmem:[%s7728_s14 + $0x8] sm:$0xff] }
0x1012   :  { %v6306_v24 = vpack.c.bf16 %v3649_v23, %v3648_v22 }
0x1014   :  { %v3487_v26 = vpop.permute.xlu0 %3486  ;;  %v3510_v27 = vpop.permute.xlu1 %3509 }
0x1015   :  { %v3498_v33 = vsel %vm65_vm0, %v3497_v32, %v3487_v26  ;;  %v3525_v37 = vsel %vm826_vm6, %v3524_v46, %v3510_v27  ;;  %v5092_v32 = vld [vmem:[%s7729_s15 + $0xd8] sm:$0xff]  ;;  %v3650_v46 = vld [vmem:[%s7728_s14 + $0x10] sm:$0xff] }
0x1018   :  { %v3490_v29 = vpop.permute.xlu0 %3489  ;;  %v3513_v30 = vpop.permute.xlu1 %3512 }
0x1019   :  { %v3499_v34 = vsel %vm831_vm8, %v3498_v33, %v3490_v29  ;;  %v3526_v39 = vsel %vm828_vm7, %v3525_v37, %v3513_v30  ;;  %v5090_v29 = vld [vmem:[%s7729_s15 + $0xc8] sm:$0xff]  ;;  %v5091_v30 = vld [vmem:[%s7729_s15 + $0xd0] sm:$0xff] }
0x101a   :  { %v7474_v31 = vpack.c.bf16 %v5090_v29, %v5089_v28  ;;  %v7479_v33 = vpack.c.bf16 %v5092_v32, %v5091_v30 }
0x101c   :  { %v3493_v25 = vpop.permute.xlu0 %3492  ;;  %v3516_v35 = vpop.permute.xlu1 %3515 }
0x101d   :  { %v3500_v36 = vsel %vm833_vm9, %v3499_v34, %v3493_v25  ;;  %v3527_v43 = vsel %vm65_vm0, %v3526_v39, %v3516_v35  ;;  %v5093_v34 = vld [vmem:[%s7729_s15 + $0xe0] sm:$0xff]  ;;  %v5094_v25 = vld [vmem:[%s7729_s15 + $0xe8] sm:$0xff] }
0x101e   :  { %v3533_v42 = vrot.slane %v3500_v36, %v6774_v38  ;;  %v7490_v35 = vpack.c.bf16 %v5094_v25, %v5093_v34  ;;  %v3651_v36 = vld [vmem:[%s7728_s14 + $0x18] sm:$0xff] }
0x1020   :  { %v3519_v44 = vpop.permute.xlu0 %3518  ;;  %v3522_v45 = vpop.permute.xlu1 %3521  ;;  %v3534_v47 = vmul.f32 %v3533_v42, %v7303_v40  ;;  %v3535_v50 = vmul.f32 %v3533_v42, %v7305_v41  ;;  %v5024_v40 = vld [vmem:[%s7727_s13 + $0x28] sm:$0xff] }
0x1021   :  { %v3528_v48 = vsel %vm831_vm8, %v3527_v43, %v3519_v44  ;;  %v3545_v41 = vld [vmem:[%s7727_s13 + $0x8] sm:$0xff]  ;;  %v6310_v43 = vpack.c.bf16 %v3651_v36, %v3650_v46  ;;  %s6492_s13 = smov 4  }
0x1022   :  { %v3529_v49 = vsel %vm833_vm9, %v3528_v48, %v3522_v45  ;;  %v3652_v45 = vld [vmem:[%s7728_s14 + $0x20] sm:$0xff]  ;;  %v3653_v48 = vld [vmem:[%s7728_s14 + $0x28] sm:$0xff] }
0x1023   :  { %v3539_v51 = vrot.slane %v3529_v49, %v6774_v38 }
0x1025   :  { %v3540_v52 = vadd.f32 %v3539_v51, %v3534_v47  ;;  %v3541_v53 = vadd.f32 %v3539_v51, %v3535_v50  ;;  %v6314_v50 = vpack.c.bf16 %v3653_v48, %v3652_v45 }
0x1027   :  { %v3542_v56 = vmax.f32 %v3540_v52, 0.0  ;;  %v3543_v57 = vmax.f32 %v3541_v53, 0.0 }
0x1029   :  { %v6282_v58 = vpack.c.bf16 %v3543_v57, %v3542_v56  ;;  %v5056_v56 = vld [vmem:[%s7728_s14 + $0x70] sm:$0xff]  ;;  %v5057_v57 = vld [vmem:[%s7728_s14 + $0x78] sm:$0xff] }
0x102b   :  { %6284 = vmatprep.subr.msk.bf16.mxu1 %vm6816_vm14, %v6282_v58  ;;  %6290 = vmatprep.subr.msk.bf16.mxu0 %vm6816_vm14, %v6282_v58 }
0x102c   :  { %6287 = vmatpush3.bf16.msk.msra.mxu1 %vm6816_vm14, %v6282_v58  ;;  %6293 = vmatpush3.bf16.msk.msra.mxu0 %vm6816_vm14, %v6282_v58 }
0x102d   :  { %6320 = vmatprep.subr.msk.bf16.mxu0 %vm6816_vm14, %v6282_v58  ;;  %6295 = vmatprep.subr.bf16.mxu1 %v6294_v59 }
0x102f   :  { %5872 = vmatmul.mubr.msk.f32.vlgmr.msra.gmra.mrb[26].mxu0 %vm883_vm15, %v5024_v40  ;;  %5862 = vmatmul.mubr.msk.f32.vlgmr.msra.gmra.mrb[38].mxu1 %vm883_vm15, %v3545_v41  ;;  %v6324_v41 = vpack.c.bf16 %v5057_v57, %v5056_v56 }
0x1030   :  { %6323 = vmatpush3.bf16.msk.msra.mxu0 %vm6816_vm14, %v6282_v58  ;;  %5874 = vmatprep.mubr.msk.f32.mxu0 %vm883_vm15, %v5025_v60 }
0x1031   :  { %6338 = vmatprep.subr.msk.bf16.mxu0 %vm6816_vm14, %v6282_v58  ;;  %5864 = vmatprep.mubr.msk.f32.mxu1 %vm883_vm15, %v3546_v63  ;;  %v5061_v63 = vld [vmem:[%s7728_s14 + $0x98] sm:$0xff] }
0x1032   :  { %6297 = vmatpush3.bf16.msra.mxu1 %v6294_v59  ;;  %v5059_v59 = vld [vmem:[%s7728_s14 + $0x88] sm:$0xff] }
0x1033   :  { %5875 = vmatmul.mubr.msk.f32.gmra.mrb[28].mxu0 %vm883_vm15, %v5026_v0  ;;  %5865 = vmatmul.mubr.msk.f32.gmra.mrb[40].mxu1 %vm883_vm15, %v3547_v1 }
0x1034   :  { %5921 = vmatprep.mubr.msk.f32.mxu0 %vm883_vm15, %v5047_v7  ;;  %6299 = vmatprep.subr.bf16.mxu1 %v6298_v2  ;;  %v5062_v7 = vld [vmem:[%s7728_s14 + $0xa0] sm:$0xff] }
0x1036   :  { %6301 = vmatpush3.bf16.msra.mxu1 %v6298_v2  ;;  %v6332_v2 = vpack.c.bf16 %v5061_v63, %v5060_v62 }
0x1037   :  { %5922 = vmatmul.mubr.msk.f32.vlgmr.msra.gmra.mrb[30].mxu0 %vm883_vm15, %v5048_v9  ;;  %6303 = vmatprep.subr.bf16.mxu1 %v6302_v8  ;;  %v5077_v9 = vld [vmem:[%s7728_s14 + $0xb0] sm:$0xff] }
0x1038   :  { %6341 = vmatpush3.bf16.msk.msra.mxu0 %vm6816_vm14, %v6282_v58  ;;  %5924 = vmatprep.mubr.msk.f32.mxu0 %vm883_vm15, %v5049_v10  ;;  %v5058_v58 = vld [vmem:[%s7728_s14 + $0x80] sm:$0xff]  ;;  %v5078_v10 = vld [vmem:[%s7728_s14 + $0xb8] sm:$0xff] }
0x1039   :  { %6355 = vmatprep.subr.bf16.mxu0 %v7474_v31  ;;  %v6328_v61 = vpack.c.bf16 %v5059_v59, %v5058_v58 }
0x103a   :  { %6305 = vmatpush3.bf16.msra.mxu1 %v6302_v8  ;;  %v5076_v8 = vld [vmem:[%s7728_s14 + $0xa8] sm:$0xff] }
0x103b   :  { %5925 = vmatmul.mubr.msk.f32.gmra.mrb[32].mxu0 %vm883_vm15, %v5050_v11  ;;  %5889 = vmatprep.subr.mxu1 %v5038_v21  ;;  %v5079_v11 = vld [vmem:[%s7728_s14 + $0xc0] sm:$0xff] }
0x103c   :  { %5951 = vmatprep.mubr.msk.f32.mxu0 %vm883_vm15, %v5067_v12  ;;  %v6342_v12 = vpack.c.bf16 %v5077_v9, %v5076_v8 }
0x103e   :  { %5890 = vmatpush3.msra.mxu1 %v5038_v21 }
0x103f   :  { %5952 = vmatmul.mubr.msk.f32.vlgmr.msra.gmra.mrb[34].mxu0 %vm883_vm15, %v5068_v18  ;;  %6307 = vmatprep.subr.bf16.mxu1 %v6306_v24  ;;  %v6346_v18 = vpack.c.bf16 %v5079_v11, %v5078_v10  ;;  %v5105_v11 = vld [vmem:[%s7730_s16 + $0x10] sm:$0x1] }
0x1040   :  { %5954 = vmatprep.mubr.msk.f32.mxu0 %vm883_vm15, %v5069_v13  ;;  %6357 = vmatpush3.bf16.msra.mxu0 %v7474_v31  ;;  %v5080_v13 = vld [vmem:[%s7728_s14 + $0xc8] sm:$0xff] }
0x1041   :  { %6359 = vmatprep.subr.bf16.mxu0 %v7479_v33 }
0x1043   :  { %5955 = vmatmul.mubr.msk.f32.gmra.mrb[36].mxu0 %vm883_vm15, %v5070_v14  ;;  %v5081_v14 = vld [vmem:[%s7728_s14 + $0xd0] sm:$0xff] }
0x1044   :  { %6361 = vmatpush3.bf16.msra.mxu0 %v7479_v33 }
0x1045   :  { %6363 = vmatprep.subr.bf16.mxu0 %v7490_v35 }
0x1048   :  { %6365 = vmatpush3.bf16.msra.mxu0 %v7490_v35 }
0x105a   :  { %v2245_v15 = vpop.xlane.xlu0 %2244 }
0x105b   :  { %v2246_v16 = vrot.slane %v2245_v15, 4 }
0x105d   :  { %v2247_v17 = vadd.f32 %v2246_v16, %v2245_v15  ;;  %v6350_v15 = vpack.c.bf16 %v5081_v14, %v5080_v13  ;;  %v5082_v16 = vld [vmem:[%s7728_s14 + $0xd8] sm:$0xff]  ;;  %v5106_v13 = vld [vmem:[%s7730_s16 + $0x11] sm:$0x1] }
0x105f   :  { %v2248_v3 = vrot.slane %v2247_v17, 2 }
0x1061   :  { %v2249_v4 = vadd.f32 %v2248_v3, %v2247_v17  ;;  %v5095_v17 = vld [vmem:[%s7729_s15 + $0xf0] sm:$0xff]  ;;  %v5096_v3 = vld [vmem:[%s7729_s15 + $0xf8] sm:$0xff] }
0x1063   :  { %v2250_v19 = vrot.slane %v2249_v4, 1 }
0x1065   :  { %v2251_v20 = vadd.f32 %v2250_v19, %v2249_v4  ;;  %v6366_v4 = vpack.c.bf16 %v5096_v3, %v5095_v17  ;;  %v5088_v19 = vld [vmem:[%s7730_s16 + $0xf] ss:$0 sm:$0xff]  ;;  %s6494_s16 = smov 12  }
0x1067   :  { %6410 = vpush %v2251_v20  ;;  %6367 = vmatprep.subr.bf16.mxu0 %v6366_v4 }
0x1068   :  { %6369 = vmatpush3.bf16.msra.mxu0 %v6366_v4 }
0x1069   :  { %6371 = vmatprep.subr.bf16.mxu0 %v7474_v31 }
0x1098   :  { %s6411_s4 = spop %6410 }
0x1099   :  { %v2253_v26 = vstv %s6411_s4  ;;  %s6493_s4 = smov 28  }
0x109a   :  { %v2254_v27 = vmul.f32 -0.5, %v2253_v26 }
0x109c   :  { %2256 = vst.msk [vmem:[#allocation2] sm:$0x1] %vm2255_vm5, %v2254_v27 }
0x1102   :  { %v5873_v37 = vpop.f32.mrb[26].mxu0  ;;  %v5863_v39 = vpop.f32.mrb[38].mxu1 }
0x1103   :  { %v3738_v42 = vpop.f32.mrb[27].mxu0  ;;  %v3629_v44 = vpop.f32.mrb[39].mxu1 }
0x1104   :  { %5891 = vmatprep.mubr.msk.f32.mxu1 %vm603_vm2, %v3738_v42 }
0x1105   :  { %5892 = vmatmul.mubr.msk.f32.vlgmr.msra.gmra.mrb[42].mxu1 %vm603_vm2, %v5873_v37 }
0x1106   :  { %6309 = vmatpush3.bf16.msra.mxu1 %v6306_v24  ;;  %v5876_v49 = vpop.f32.mrb[28].mxu0  ;;  %v5866_v47 = vpop.f32.mrb[40].mxu1 }
0x1107   :  { %6311 = vmatprep.subr.bf16.mxu1 %v6310_v43  ;;  %v3748_v51 = vpop.f32.mrb[29].mxu0  ;;  %v3639_v52 = vpop.f32.mrb[41].mxu1 }
0x1108   :  { %5894 = vmatprep.mubr.msk.f32.mxu1 %vm603_vm2, %v3748_v51 }
0x1109   :  { %5895 = vmatmul.mubr.msk.f32.gmra.mrb[44].mxu1 %vm603_vm2, %v5876_v49 }
0x110a   :  { %6313 = vmatpush3.bf16.msra.mxu1 %v6310_v43  ;;  %5911 = vmatprep.mubr.msk.f32.mxu1 %vm603_vm2, %v3629_v44  ;;  %v5923_v53 = vpop.f32.mrb[30].mxu0 }
0x110b   :  { %6315 = vmatprep.subr.bf16.mxu1 %v6314_v50  ;;  %v4042_v54 = vpop.f32.mrb[31].mxu0 }
0x110e   :  { %6317 = vmatpush3.bf16.msra.mxu1 %v6314_v50  ;;  %v5926_v40 = vpop.f32.mrb[32].mxu0 }
0x110f   :  { %5909 = vmatprep.subr.mxu1 %v3654_v55  ;;  %v4052_v60 = vpop.f32.mrb[33].mxu0 }
0x1112   :  { %5910 = vmatpush3.msra.mxu1 %v3654_v55  ;;  %v5953_v0 = vpop.f32.mrb[34].mxu0 }
0x1113   :  { %6325 = vmatprep.subr.bf16.mxu1 %v6324_v41  ;;  %5912 = vmatmul.mubr.msk.f32.vlgmr.msra.gmra.mrb[42].mxu1 %vm603_vm2, %v5863_v39  ;;  %v4253_v1 = vpop.f32.mrb[35].mxu0 }
0x1114   :  { %6327 = vmatpush3.bf16.msra.mxu1 %v6324_v41  ;;  %5914 = vmatprep.mubr.msk.f32.mxu1 %vm603_vm2, %v3639_v52 }
0x1115   :  { %6329 = vmatprep.subr.bf16.mxu1 %v6328_v61 }
0x1116   :  { %v5956_v5 = vpop.f32.mrb[36].mxu0 }
0x1117   :  { %5915 = vmatmul.mubr.msk.f32.gmra.mrb[44].mxu1 %vm603_vm2, %v5866_v47  ;;  %v4263_v6 = vpop.f32.mrb[37].mxu0 }
0x1118   :  { %6331 = vmatpush3.bf16.msra.mxu1 %v6328_v61  ;;  %5941 = vmatprep.mubr.msk.f32.mxu1 %vm603_vm2, %v4042_v54 }
0x1119   :  { %6333 = vmatprep.subr.bf16.mxu1 %v6332_v2 }
0x111c   :  { %6335 = vmatpush3.bf16.msra.mxu1 %v6332_v2 }
0x111d   :  { %5939 = vmatprep.subr.mxu1 %v5062_v7 }
0x1120   :  { %5940 = vmatpush3.msra.mxu1 %v5062_v7 }
0x1121   :  { %6343 = vmatprep.subr.bf16.mxu1 %v6342_v12  ;;  %5942 = vmatmul.mubr.msk.f32.vlgmr.msra.gmra.mrb[42].mxu1 %vm603_vm2, %v5923_v53 }
0x1122   :  { %6345 = vmatpush3.bf16.msra.mxu1 %v6342_v12  ;;  %5944 = vmatprep.mubr.msk.f32.mxu1 %vm603_vm2, %v4052_v60 }
0x1123   :  { %6347 = vmatprep.subr.bf16.mxu1 %v6346_v18 }
0x1125   :  { %5945 = vmatmul.mubr.msk.f32.gmra.mrb[44].mxu1 %vm603_vm2, %v5926_v40 }
0x1126   :  { %6349 = vmatpush3.bf16.msra.mxu1 %v6346_v18  ;;  %5971 = vmatprep.mubr.msk.f32.mxu1 %vm603_vm2, %v4253_v1 }
0x1127   :  { %6351 = vmatprep.subr.bf16.mxu1 %v6350_v15 }
0x112a   :  { %6353 = vmatpush3.bf16.msra.mxu1 %v6350_v15 }
0x112b   :  { %5969 = vmatprep.subr.mxu1 %v5082_v16 }
0x112e   :  { %5970 = vmatpush3.msra.mxu1 %v5082_v16 }
0x112f   :  { %5972 = vmatmul.mubr.msk.f32.vlgmr.msra.gmra.mrb[42].mxu1 %vm603_vm2, %v5953_v0 }
0x1130   :  { %5974 = vmatprep.mubr.msk.f32.mxu1 %vm603_vm2, %v4263_v6 }
0x1133   :  { %5975 = vmatmul.mubr.msk.f32.gmra.mrb[44].mxu1 %vm603_vm2, %v5956_v5 }
0x1202   :  { %v5973_v20 = vpop.f32.mrb[42].mxu1 }
0x1203   :  { %v4358_v21 = vpop.f32.mrb[43].mxu1  ;;  %v7580_v23 = vadd.f32 %v5973_v20, %v5088_v19 }
0x1204   :  { %v7578_v22 = vadd.f32 %v5088_v19, %v4358_v21 }
0x1205   :  { %v4500_v30 = vmul.f32 %v7580_v23, %v7580_v23 }
0x1206   :  { %v5976_v24 = vpop.f32.mrb[44].mxu1  ;;  %5993 = vmatprep.mubr.msk.f32.mxu0 %vm248_vm1, %v7578_v22  ;;  %v4499_v29 = vmul.f32 %v7578_v22, %v7578_v22 }
0x1207   :  { %v4368_v26 = vpop.f32.mrb[45].mxu1  ;;  %5994 = vmatmul.mubr.msk.f32.vlgmr.msra.gmra.mrb[38].mxu0 %vm248_vm1, %v7580_v23  ;;  %v7589_v28 = vadd.f32 %v5976_v24, %v5088_v19 }
0x1208   :  { %v7586_v27 = vadd.f32 %v5088_v19, %v4368_v26  ;;  %6373 = vmatpush3.bf16.msra.mxu0 %v7474_v31 }
0x1209   :  { %6375 = vmatprep.subr.bf16.mxu0 %v7479_v33  ;;  %v4502_v32 = vmul.f32 %v7589_v28, %v7589_v28 }
0x120a   :  { %5996 = vmatprep.mubr.msk.f32.mxu0 %vm248_vm1, %v7586_v27  ;;  %v4501_v31 = vmul.f32 %v7586_v27, %v7586_v27 }
0x120b   :  { %5997 = vmatmul.mubr.msk.f32.gmra.mrb[40].mxu0 %vm248_vm1, %v7589_v28 }
0x120c   :  { %6377 = vmatpush3.bf16.msra.mxu0 %v7479_v33  ;;  %6015 = vmatprep.mubr.msk.f32.mxu0 %vm248_vm1, %v4499_v29 }
0x120d   :  { %6379 = vmatprep.subr.bf16.mxu0 %v7490_v35 }
0x1210   :  { %6381 = vmatpush3.bf16.msra.mxu0 %v7490_v35 }
0x1211   :  { %6383 = vmatprep.subr.bf16.mxu0 %v6366_v4 }
0x1214   :  { %6385 = vmatpush3.bf16.msra.mxu0 %v6366_v4 }
0x1217   :  { %6016 = vmatmul.mubr.msk.f32.vlgmr.msra.gmra.mrb[42].mxu0 %vm248_vm1, %v4500_v30 }
0x1218   :  { %6018 = vmatprep.mubr.msk.f32.mxu0 %vm248_vm1, %v4501_v31 }
0x121b   :  { %6019 = vmatmul.mubr.msk.f32.gmra.mrb[44].mxu0 %vm248_vm1, %v4502_v32 }
0x12da   :  { %v5995_v33 = vpop.f32.mrb[38].mxu0 }
0x12db   :  { %v4602_v34 = vsel %vm4600_vm10, %v5995_v33, 0.0  ;;  %v4480_v25 = vpop.f32.mrb[39].mxu0 }
0x12dc   :  { %v4601_v35 = vsel %vm4600_vm10, %v4480_v25, 0.0 }
0x12dd   :  { %v4603_v46 = vadd.f32 %v4602_v34, %v4601_v35 }
0x12de   :  { %v5998_v36 = vpop.f32.mrb[40].mxu0 }
0x12df   :  { %v4490_v37 = vpop.f32.mrb[41].mxu0  ;;  %v4606_v43 = vsel %vm4600_vm10, %v5998_v36, 0.0 }
0x12e0   :  { %v4604_v39 = vsel %vm4600_vm10, %v4490_v37, 0.0 }
0x12e1   :  { %v4605_v42 = vadd.f32 %v4604_v39, %v4603_v46 }
0x12e3   :  { %v4607_v44 = vadd.f32 %v4606_v43, %v4605_v42 }
0x12e5   :  { %v4608_v45 = vrot.slane %v4607_v44, 4 }
0x12e7   :  { %v4609_v48 = vadd.f32 %v4608_v45, %v4607_v44 }
0x12e9   :  { %v4610_v52 = vrot.slane %v4609_v48, 2 }
0x12ea   :  { %v6017_v49 = vpop.f32.mrb[42].mxu0 }
0x12eb   :  { %v4616_v47 = vsel %vm4600_vm10, %v6017_v49, 0.0  ;;  %v4581_v50 = vpop.f32.mrb[43].mxu0  ;;  %v4611_v57 = vadd.f32 %v4610_v52, %v4609_v48 }
0x12ec   :  { %v4615_v51 = vsel %vm4600_vm10, %v4581_v50, 0.0 }
0x12ed   :  { %v4617_v53 = vadd.f32 %v4616_v47, %v4615_v51  ;;  %v4612_v41 = vrot.slane %v4611_v57, 1 }
0x12ee   :  { %v6020_v54 = vpop.f32.mrb[44].mxu0 }
0x12ef   :  { %v4591_v55 = vpop.f32.mrb[45].mxu0  ;;  %v4620_v59 = vsel %vm4600_vm10, %v6020_v54, 0.0  ;;  %v4613_v62 = vadd.f32 %v4612_v41, %v4611_v57 }
0x12f0   :  { %v4618_v56 = vsel %vm4600_vm10, %v4591_v55, 0.0 }
0x12f1   :  { %v4619_v58 = vadd.f32 %v4618_v56, %v4617_v53  ;;  %v4614_v1 = vmul.f32 0.001953125, %v4613_v62 }
0x12f3   :  { %v4621_v40 = vadd.f32 %v4620_v59, %v4619_v58  ;;  %v4629_v6 = vmul.f32 %v4614_v1, %v4614_v1 }
0x12f5   :  { %v4622_v60 = vrot.slane %v4621_v40, 4 }
0x12f7   :  { %v4623_v61 = vadd.f32 %v4622_v60, %v4621_v40 }
0x12f9   :  { %v4624_v63 = vrot.slane %v4623_v61, 2 }
0x12fb   :  { %v4625_v0 = vadd.f32 %v4624_v63, %v4623_v61 }
0x12fd   :  { %v4626_v2 = vrot.slane %v4625_v0, 1 }
0x12ff   :  { %v4627_v5 = vadd.f32 %v4626_v2, %v4625_v0 }
0x1301   :  { %v4628_v7 = vmul.f32 0.001953125, %v4627_v5 }
0x1303   :  { %v4630_v8 = vsub.f32 %v4628_v7, %v4629_v6 }
0x1305   :  { %v4631_v9 = vmax.f32 %v4630_v8, 0.0 }
0x1307   :  { %v4634_v10 = vadd.f32 1e-05, %v4631_v9 }
0x1309   :  { %6440 = vrsqrt.f32 %v4634_v10 }
0x1313   :  { %v6441_v12 = vpop.eup %6440 }
0x1314   :  { %v7622_v18 = vmul.f32 %v6441_v12, %v5105_v11 }
0x1316   :  { %v4639_v14 = vmul.f32 %v7622_v18, %v4614_v1  ;;  %v4645_v15 = vrot.slane %v7622_v18, %v6774_v38 }
0x1318   :  { %v7630_v16 = vsub.f32 %v5106_v13, %v4639_v14  ;;  %4661 = vrot.lane.b32.xlu0 %v4645_v15, %s6482_s27  ;;  %4646 = vrot.lane.b32.xlu1 %v4645_v15, %s6492_s13 }
0x131a   :  { %v4717_v17 = vrot.slane %v7630_v16, %v6774_v38 }
0x131c   :  { %4649 = vrot.lane.b32.xlu1 %v4645_v15, %s6483_s28  ;;  %4736 = vrot.lane.b32.xlu0 %v4717_v17, %s6493_s4 }
0x1320   :  { %4652 = vrot.lane.b32.xlu1 %v4645_v15, %s6494_s16  ;;  %4739 = vrot.lane.b32.xlu0 %v4717_v17, %s6485_s29 }
0x1324   :  { %4655 = vrot.lane.b32.xlu1 %v4645_v15, %s6484_s30  ;;  %4742 = vrot.lane.b32.xlu0 %v4717_v17, %s6495_s9 }
0x1328   :  { %4658 = vrot.lane.b32.xlu1 %v4645_v15, %s6496_s12  ;;  %4745 = vrot.lane.b32.xlu0 %v4717_v17, %s6486_s0 }
0x132c   :  { %4664 = vrot.lane.b32.xlu1 %v4645_v15, %s6493_s4  ;;  %4748 = vrot.lane.b32.xlu0 %v4717_v17, %s6497_s6 }
0x1330   :  { %4667 = vrot.lane.b32.xlu1 %v4645_v15, %s6485_s29  ;;  %4751 = vrot.lane.b32.xlu0 %v4717_v17, %s6487_s19  ;;  %s6501_s29 = smov [#allocation2]  }
0x1334   :  { %4670 = vrot.lane.b32.xlu1 %v4645_v15, %s6495_s9  ;;  %4754 = vrot.lane.b32.xlu0 %v4717_v17, %s6498_s5 }
0x1338   :  { %4673 = vrot.lane.b32.xlu1 %v4645_v15, %s6486_s0  ;;  %4760 = vrot.lane.b32.xlu0 %v4717_v17, %s6499_s11  ;;  %s4830_s0 = sshll.u32 %s6501_s29, 4  ;;  %s4831_s0 = int_to_ptr.vmem [resolvable:$true] %s4830_s0 }
0x1339   :  { %s6458_s24 = scalar_lea.vmem %s4831_s0, 16  ;;  %p6463_p1 = scmp.lt.s32.totalorder %s4831_s0, %s4831_s0 }
0x133a   :  { %p6459_p0 = scmp.ne.s32.totalorder %s4831_s0, %s6458_s24 }
0x133c   :  { %4676 = vrot.lane.b32.xlu1 %v4645_v15, %s6497_s6 }
0x1340   :  { %4679 = vrot.lane.b32.xlu1 %v4645_v15, %s6487_s19  ;;  %s6462_s19 = scalar_lea.vmem %s4831_s0, 32 }
0x1341   :  { %p6464_p2 = scmp.lt.s32.totalorder %s6462_s19, %s6458_s24 }
0x1343   :  { %p6465_p3 = por %p6464_p2, %p6463_p1 }
0x1344   :  { %4682 = vrot.lane.b32.xlu1 %v4645_v15, %s6498_s5 }
0x1345   :  { %p6466_p4 = pnand %p6465_p3, %p6459_p0 }
0x1348   :  { %4685 = vrot.lane.b32.xlu1 %v4645_v15, %s6500_s2 }
0x134c   :  { %4718 = vrot.lane.b32.xlu1 %v4717_v17, %s6492_s13 }
0x1350   :  { %4721 = vrot.lane.b32.xlu1 %v4717_v17, %s6483_s28 }
0x1354   :  { %4724 = vrot.lane.b32.xlu1 %v4717_v17, %s6494_s16 }
0x1358   :  { %4727 = vrot.lane.b32.xlu1 %v4717_v17, %s6484_s30 }
0x135c   :  { %4730 = vrot.lane.b32.xlu1 %v4717_v17, %s6496_s12 }
0x1360   :  { %4733 = vrot.lane.b32.xlu1 %v4717_v17, %s6482_s27 }
0x1364   :  { %4688 = vrot.lane.b32.xlu1 %v4645_v15, %s6499_s11 }
0x1368   :  { %4757 = vrot.lane.b32.xlu1 %v4717_v17, %s6500_s2 }
0x1369   :  { %6469 = shalt.err (!%p6466_p4)
}
0x136a   :  { %s6470_s30 = scalar_lea.hbm %s7732_s18, 16 }
0x136b   :  { %p6471_p5 = scmp.ne.s32.totalorder %s7732_s18, %s6470_s30  ;;  %p6474_p6 = scmp.lt.u32.totalorder %s6470_s30, %s7732_s18 }
0x136d   :  { %p6476_p7 = pnand %p6474_p6, %p6471_p5 }
0x136f   :  { %6479 = shalt.err (!%p6476_p7)
}
0x1370   :  { %4833 = dma.vmem_to_hbm [thread:$0]  %s4831_s0, 16, %s7732_s18, [#allocation3]   ;;  %vm4693_vm14 = vcmask 97280   ;;  %vm4696_vm15 = vcmask 162816   ;;  %vm4699_vm13 = vcmask 228352   ;;  %vm4702_vm12 = vcmask 293888  }
0x1371   :  { %vm4705_vm11 = vcmask 359424   ;;  %vm4708_vm3 = vcmask 424960  }
0x138a   :  { %v4647_v3 = vpop.permute.xlu1 %4646  ;;  %v4662_v31 = vpop.permute.xlu0 %4661 }
0x138b   :  { %v4691_v44 = vsel %vm4600_vm10, %v7622_v18, %v4647_v3 }
0x138e   :  { %v4650_v4 = vpop.permute.xlu1 %4649  ;;  %v4737_v33 = vpop.permute.xlu0 %4736 }
0x138f   :  { %v4692_v45 = vsel %vm768_vm4, %v4691_v44, %v4650_v4 }
0x1392   :  { %v4653_v19 = vpop.permute.xlu1 %4652  ;;  %v4740_v35 = vpop.permute.xlu0 %4739 }
0x1393   :  { %v4694_v48 = vsel %vm4693_vm14, %v4692_v45, %v4653_v19 }
0x1396   :  { %v4656_v20 = vpop.permute.xlu1 %4655  ;;  %v4743_v36 = vpop.permute.xlu0 %4742 }
0x1397   :  { %v4695_v49 = vsel %vm826_vm6, %v4694_v48, %v4656_v20 }
0x139a   :  { %v4659_v21 = vpop.permute.xlu1 %4658  ;;  %v4746_v42 = vpop.permute.xlu0 %4745 }
0x139b   :  { %v4697_v51 = vsel %vm4696_vm15, %v4695_v49, %v4659_v21 }
0x139c   :  { %v4698_v52 = vsel %vm828_vm7, %v4697_v51, %v4662_v31 }
0x139e   :  { %v4665_v24 = vpop.permute.xlu1 %4664  ;;  %v4749_v47 = vpop.permute.xlu0 %4748 }
0x139f   :  { %v4700_v55 = vsel %vm4699_vm13, %v4698_v52, %v4665_v24 }
0x13a2   :  { %v4668_v26 = vpop.permute.xlu1 %4667  ;;  %v4752_v58 = vpop.permute.xlu0 %4751 }
0x13a3   :  { %v4701_v57 = vsel %vm65_vm0, %v4700_v55, %v4668_v26 }
0x13a6   :  { %v4671_v29 = vpop.permute.xlu1 %4670  ;;  %v4755_v7 = vpop.permute.xlu0 %4754 }
0x13a7   :  { %v4703_v40 = vsel %vm4702_vm12, %v4701_v57, %v4671_v29 }
0x13aa   :  { %v4674_v30 = vpop.permute.xlu1 %4673  ;;  %v4761_v17 = vpop.permute.xlu0 %4760 }
0x13ab   :  { %v4704_v60 = vsel %vm831_vm8, %v4703_v40, %v4674_v30 }
0x13ae   :  { %v4677_v32 = vpop.permute.xlu1 %4676 }
0x13af   :  { %v4706_v63 = vsel %vm4705_vm11, %v4704_v60, %v4677_v32 }
0x13b2   :  { %v4680_v34 = vpop.permute.xlu1 %4679 }
0x13b3   :  { %v4707_v1 = vsel %vm833_vm9, %v4706_v63, %v4680_v34 }
0x13b6   :  { %v4683_v25 = vpop.permute.xlu1 %4682 }
0x13b7   :  { %v4709_v5 = vsel %vm4708_vm3, %v4707_v1, %v4683_v25 }
0x13ba   :  { %v4686_v46 = vpop.permute.xlu1 %4685 }
0x13bb   :  { %v4710_v8 = vsel %vm603_vm2, %v4709_v5, %v4686_v46 }
0x13be   :  { %v4719_v37 = vpop.permute.xlu1 %4718 }
0x13bf   :  { %v4763_v53 = vsel %vm4600_vm10, %v7630_v16, %v4719_v37 }
0x13c2   :  { %v4722_v39 = vpop.permute.xlu1 %4721 }
0x13c3   :  { %v4764_v56 = vsel %vm768_vm4, %v4763_v53, %v4722_v39  ;;  %vm4711_vm4 = vcmask 490496  }
0x13c6   :  { %v4725_v43 = vpop.permute.xlu1 %4724 }
0x13c7   :  { %v4765_v59 = vsel %vm4693_vm14, %v4764_v56, %v4725_v43 }
0x13ca   :  { %v4728_v50 = vpop.permute.xlu1 %4727 }
0x13cb   :  { %v4766_v41 = vsel %vm826_vm6, %v4765_v59, %v4728_v50 }
0x13ce   :  { %v4731_v54 = vpop.permute.xlu1 %4730 }
0x13cf   :  { %v4767_v61 = vsel %vm4696_vm15, %v4766_v41, %v4731_v54 }
0x13d2   :  { %v4734_v62 = vpop.permute.xlu1 %4733 }
0x13d3   :  { %v4768_v0 = vsel %vm828_vm7, %v4767_v61, %v4734_v62 }
0x13d4   :  { %v4769_v2 = vsel %vm4699_vm13, %v4768_v0, %v4737_v33 }
0x13d5   :  { %v4770_v6 = vsel %vm65_vm0, %v4769_v2, %v4740_v35 }
0x13d6   :  { %v4771_v9 = vsel %vm4702_vm12, %v4770_v6, %v4743_v36  ;;  %v4689_v10 = vpop.permute.xlu1 %4688 }
0x13d7   :  { %v4712_v11 = vsel %vm4711_vm4, %v4710_v8, %v4689_v10  ;;  %v4772_v12 = vsel %vm831_vm8, %v4771_v9, %v4746_v42 }
0x13d8   :  { %v4773_v18 = vsel %vm4705_vm11, %v4772_v12, %v4749_v47  ;;  %v4781_v13 = vrot.slane %v4712_v11, %v6774_v38 }
0x13d9   :  { %v4774_v14 = vsel %vm833_vm9, %v4773_v18, %v4752_v58 }
0x13da   :  { %v4758_v15 = vpop.permute.xlu1 %4757  ;;  %v4775_v16 = vsel %vm4708_vm3, %v4774_v14, %v4755_v7  ;;  %v4782_v4 = vmul.f32 %v4781_v13, %v7578_v22  ;;  %v4783_v20 = vmul.f32 %v4781_v13, %v7580_v23  ;;  %v4784_v21 = vmul.f32 %v4781_v13, %v7586_v27 }
0x13db   :  { %v4776_v3 = vsel %vm603_vm2, %v4775_v16, %v4758_v15  ;;  %v4785_v24 = vmul.f32 %v4781_v13, %v7589_v28 }
0x13dc   :  { %v4777_v19 = vsel %vm4711_vm4, %v4776_v3, %v4761_v17 }
0x13dd   :  { %v4789_v26 = vrot.slane %v4777_v19, %v6774_v38 }
0x13df   :  { %v4790_v29 = vadd.f32 %v4789_v26, %v4782_v4  ;;  %v4791_v30 = vadd.f32 %v4789_v26, %v4783_v20  ;;  %v4792_v31 = vadd.f32 %v4789_v26, %v4784_v21  ;;  %v4793_v32 = vadd.f32 %v4789_v26, %v4785_v24 }
0x13e1   :  { %v5107_v33 = vmul.f32 -1.442695, %v4790_v29  ;;  %v5108_v34 = vmul.f32 -1.442695, %v4791_v30  ;;  %v5109_v25 = vmul.f32 -1.442695, %v4792_v31 }
0x13e2   :  { %v5110_v35 = vmul.f32 -1.442695, %v4793_v32 }
0x13e3   :  { %6442 = vpow2.f32 %v5107_v33 }
0x13e4   :  { %6444 = vpow2.f32 %v5108_v34 }
0x13e5   :  { %6446 = vpow2.f32 %v5109_v25 }
0x13e6   :  { %6448 = vpow2.f32 %v5110_v35 }
0x13ed   :  { %v6443_v22 = vpop.eup %6442 }
0x13ee   :  { %v6445_v23 = vpop.eup %6444  ;;  %v4806_v46 = vadd.f32 1.0, %v6443_v22 }
0x13ef   :  { %v6447_v27 = vpop.eup %6446  ;;  %v4807_v36 = vadd.f32 1.0, %v6445_v23 }
0x13f0   :  { %v6449_v28 = vpop.eup %6448  ;;  %v4808_v37 = vadd.f32 1.0, %v6447_v27  ;;  %6450 = vrcp.f32 %v4806_v46 }
0x13f1   :  { %v4809_v38 = vadd.f32 1.0, %v6449_v28  ;;  %6452 = vrcp.f32 %v4807_v36 }
0x13f2   :  { %6454 = vrcp.f32 %v4808_v37 }
0x13f3   :  { %6456 = vrcp.f32 %v4809_v38 }
0x13fa   :  { %v6451_v39 = vpop.eup %6450 }
0x13fb   :  { %v6453_v42 = vpop.eup %6452  ;;  %4818 = vst.msk [vmem:[%s7731_s17] sm:$0xff] %vm248_vm1, %v6451_v39 }
0x13fc   :  { %v6455_v43 = vpop.eup %6454  ;;  %4819 = vst.msk [vmem:[%s7731_s17 + $0x8] sm:$0xff] %vm248_vm1, %v6453_v42 }
0x13fd   :  { %v6457_v44 = vpop.eup %6456  ;;  %4820 = vst.msk [vmem:[%s7731_s17 + $0x10] sm:$0xff] %vm248_vm1, %v6455_v43 }
0x13fe   :  { %4821 = vst.msk [vmem:[%s7731_s17 + $0x18] sm:$0xff] %vm248_vm1, %v6457_v44 }
0x13ff   :  { %6480 = dma.done.wait [#allocation3], 16  }
0x1400   :  { %6481 = vsyncadd [#allocation3], 4294967280 }
0x1401   :  { %4839 = vsyncpa [#allocation3], 1 }

</bundles_post_ra>
